<compile_context>
chip_gen: v5e
topology: v5e:2x2
jax: 0.10.0
libtpu: 0.0.40
codegen_flags: <defaults>
</compile_context>

<pallas_src>
import functools

import jax
import jax.numpy as jnp
from jax.experimental import pallas as pl
from jax.experimental.pallas import tpu as pltpu

EPS = 1e-8
CAB_RATIO = 32


# ---------------------------------------------------------------------------
# Kernel
# ---------------------------------------------------------------------------
def _laopt2_kernel(xl_ref, xg_ref, w_ref, gb_ref, w1_ref, w2_ref, idx_ref, out_ref,
                   *, depthwise, upsample, t_true):
    """One grid step = `block_b` batch samples; full (C, T) extent resident in VMEM."""
    bb, c_out, t_pad = out_ref.shape
    tg = xg_ref.shape[-1]

    gamma = gb_ref[:, 0:1]                           # (C, 1) f32
    beta = gb_ref[:, 1:2]                            # (C, 1) f32
    w = w_ref[...]                                   # (C, inp) bf16  |  (C, 1) f32 depthwise
    w1 = w1_ref[...]                                 # (h, C) f32
    w2 = w2_ref[...]                                 # (C, h) f32

    inv_n = 1.0 / float(c_out * tg)                  # GroupNorm(1, C): stats over (C, Tg)
    inv_t = 1.0 / float(t_true)                      # CAB avg-pool divides by the TRUE T

    # Nearest-upsample plumbing (sample independent -> hoisted out of the batch loop).
    if upsample == "gather":
        gather_idx = jnp.broadcast_to(idx_ref[...], (c_out, t_pad))              # (C, T) i32
    else:
        # Fallback: one-hot built in-kernel from iota (no HBM matrix, exact 0/1 values).
        src = jax.lax.broadcasted_iota(jnp.int32, (tg, t_pad), 0)                # (Tg, T)
        onehot = (src == jnp.broadcast_to(idx_ref[...], (tg, t_pad))).astype(jnp.float32)

    for b in range(bb):                              # block_b is small and static
        # --- ConvNorm: 1x1 conv (+ GroupNorm(1, oup, eps=1e-8)) on x_g[b] -----------
        if depthwise:
            # Conv1d(groups=inp, k=1, bias=False) == per-channel scale -> VPU multiply.
            y = w * xg_ref[b].astype(jnp.float32)                                # (C, Tg)
        else:
            # bf16 x bf16 -> f32 accumulation on the MXU.
            y = jnp.dot(w, xg_ref[b], preferred_element_type=jnp.float32)        # (C, Tg)

        # One-pass GroupNorm statistics: sum and sum-of-squares.
        s = jnp.sum(y)
        ss = jnp.sum(y * y)
        mean = s * inv_n
        var = jnp.maximum(ss * inv_n - mean * mean, 0.0)
        gact = (y - mean) * jax.lax.rsqrt(var + EPS) * gamma + beta              # (C, Tg)

        sig = jax.nn.sigmoid(gact)                                               # (C, Tg)

        # --- nearest-neighbour upsample Tg -> T_pad ---------------------------------
        if upsample == "gather":
            sig_up = jnp.take_along_axis(
                sig, gather_idx, axis=1,
                mode=jax.lax.GatherScatterMode.PROMISE_IN_BOUNDS)                # (C, T)
        else:
            # HIGHEST precision keeps the 0/1 gather bit-exact on the fallback path.
            sig_up = jnp.dot(sig, onehot, preferred_element_type=jnp.float32,
                             precision=jax.lax.Precision.HIGHEST)                # (C, T)

        xl = xl_ref[b].astype(jnp.float32)                                       # (C, T)
        out1 = xl * sig_up                                                       # (C, T)

        # --- CAB gate: avg-pool(T) -> fc -> ReLU -> fc -> sigmoid -------------------
        pooled = jnp.sum(out1, axis=-1, keepdims=True) * inv_t                   # (C, 1)
        hid = jnp.maximum(jnp.dot(w1, pooled, preferred_element_type=jnp.float32), 0.0)
        gate = jax.nn.sigmoid(jnp.dot(w2, hid, preferred_element_type=jnp.float32))  # (C, 1)

        out_ref[b] = (gate * out1).astype(out_ref.dtype)


# ---------------------------------------------------------------------------
# Wrapper
# ---------------------------------------------------------------------------
def _pick_block_b(batch, per_sample_bytes, budget_bytes=24 * 1024 * 1024):
    """Biggest batch block that (a) fits a ~24 MiB VMEM budget (safe on v7x's 64 MiB),
    (b) keeps >= 2 grid steps when possible (v7x has 2 TCs), (c) divides the batch."""
    bb = int(max(1, min(batch, budget_bytes // max(per_sample_bytes, 1))))
    if batch >= 2:
        bb = max(1, min(bb, batch // 2))
    while batch % bb:
        bb -= 1
    return bb


@functools.partial(jax.jit, static_argnames=("depthwise", "upsample"))
def _laopt2_call(x_l, x_g, params, *, depthwise, upsample):
    B, C, T = x_l.shape
    _, C_in, Tg = x_g.shape
    hidden = params["cab_w1"].shape[0]

    # bf16 operands for the dense MXU matmul (f32 accumulation happens in-kernel).
    if depthwise:
        w = params["w_conv"].astype(jnp.float32)            # (C, 1) per-channel scale
    else:
        w = params["w_conv"].astype(jnp.bfloat16)            # (C, C_in)
        x_g = x_g.astype(jnp.bfloat16)

    gb = jnp.stack([params["gn_gamma"], params["gn_beta"]], axis=-1).astype(jnp.float32)  # (C, 2)
    w1 = params["cab_w1"].astype(jnp.float32)
    w2 = params["cab_w2"].astype(jnp.float32)

    # Lane-dense output: pad T to a multiple of 128.  x_l's zero padding keeps the CAB
    # average-pool exact because the kernel divides by the true T; the tail is sliced off.
    T_pad = ((T + 127) // 128) * 128
    if T_pad != T:
        x_l = jnp.pad(x_l, ((0, 0), (0, 0), (0, T_pad - T)))

    # PyTorch nearest rule: src = floor(dst * Tg / T); clip indices in the padded tail.
    idx = jnp.minimum((jnp.arange(T_pad, dtype=jnp.int32) * Tg) // T, Tg - 1)
    idx = idx[None, :].astype(jnp.int32)                     # (1, T_pad)

    # VMEM-budget-driven batch blocking.
    per_sample = (2 * 2 * C * T_pad * x_l.dtype.itemsize     # x_l + out blocks, double-buffered
                  + 2 * C_in * Tg * x_g.dtype.itemsize       # x_g block, double-buffered
                  + 4 * C * T_pad * 4)                       # in-kernel f32/i32 temporaries
    bb = _pick_block_b(B, per_sample)
    grid = (B // bb,)

    kernel = functools.partial(_laopt2_kernel, depthwise=depthwise,
                               upsample=upsample, t_true=T)

    flops = (2 * B * C * (1 if depthwise else C_in) * Tg     # 1x1 conv
             + 4 * B * hidden * C                            # CAB fcs
             + 8 * B * C * T_pad)                            # elementwise epilogue
    transcendentals = B * (C * Tg + C + 1)                   # sigmoids + rsqrt
    bytes_accessed = (x_l.size * x_l.dtype.itemsize + x_g.size * x_g.dtype.itemsize
                      + B * C * T_pad * x_l.dtype.itemsize
                      + w.size * w.dtype.itemsize + gb.size * 4
                      + w1.size * 4 + w2.size * 4 + idx.size * 4)

    const2d = lambda shape: pl.BlockSpec(shape, lambda i: (0, 0))

    out = pl.pallas_call(
        kernel,
        out_shape=jax.ShapeDtypeStruct((B, C, T_pad), x_l.dtype),
        grid=grid,
        in_specs=[
            pl.BlockSpec((bb, C, T_pad), lambda i: (i, 0, 0)),   # x_l
            pl.BlockSpec((bb, C_in, Tg), lambda i: (i, 0, 0)),   # x_g
            const2d(w.shape),                                    # conv weight
            const2d((C, 2)),                                     # packed GroupNorm gamma/beta
            const2d((hidden, C)),                                # CAB fc1
            const2d((C, hidden)),                                # CAB fc2
            const2d((1, T_pad)),                                 # nearest-interp index row
        ],
        out_specs=pl.BlockSpec((bb, C, T_pad), lambda i: (i, 0, 0)),
        compiler_params=pltpu.CompilerParams(
            dimension_semantics=("parallel",),
            vmem_limit_bytes=48 * 1024 * 1024),
        cost_estimate=pl.CostEstimate(flops=int(flops),
                                      transcendentals=int(transcendentals),
                                      bytes_accessed=int(bytes_accessed)),
    )(x_l, x_g, w, gb, w1, w2, idx)

    return out[..., :T] if T_pad != T else out


def laopt2_forward(x_l, x_g, params, *, depthwise):
    """Prefers the lane-gather upsample; falls back to the in-kernel one-hot matmul
    (still no HBM interpolation matrix) if the gather lowering is unavailable."""
    try:
        return jax.block_until_ready(
            _laopt2_call(x_l, x_g, params, depthwise=depthwise, upsample="gather"))
    except Exception:  # backend-dependent lowering support
        return jax.block_until_ready(
            _laopt2_call(x_l, x_g, params, depthwise=depthwise, upsample="onehot"))


# ---------------------------------------------------------------------------
# Parameter construction + pure-JAX reference (silent correctness check)
# ---------------------------------------------------------------------------
def init_laopt2_params(key, inp, oup, ratio=CAB_RATIO):
    """Deterministic synthetic init mirroring LAOpt2.__init__ shapes (kernel=1)."""
    depthwise = (inp == oup)
    ks = jax.random.split(key, 5)
    if depthwise:
        w = 0.5 + 0.1 * jax.random.normal(ks[0], (oup, 1), jnp.float32)      # grouped 1x1 conv
    else:
        w = 0.1 * jax.random.normal(ks[0], (oup, inp), jnp.float32)          # dense 1x1 conv
    gamma = 1.0 + 0.1 * jax.random.normal(ks[1], (oup,), jnp.float32)
    beta = 0.1 * jax.random.normal(ks[2], (oup,), jnp.float32)
    hidden = max(oup // ratio, 1)
    w1 = (oup ** -0.5) * jax.random.normal(ks[3], (hidden, oup), jnp.float32)
    w2 = (hidden ** -0.5) * jax.random.normal(ks[4], (oup, hidden), jnp.float32)
    return {"w_conv": w, "gn_gamma": gamma, "gn_beta": beta,
            "cab_w1": w1, "cab_w2": w2}, depthwise


def laopt2_reference(x_l, x_g, params, *, depthwise, match_kernel_quant=False):
    """Pure-JAX reference of LAOpt2.forward (f32; optionally mirrors the kernel's bf16
    quantization of the dense 1x1-conv operands)."""
    w = params["w_conv"].astype(jnp.float32)
    xg = x_g.astype(jnp.float32)
    if depthwise:
        y = w[None, :, :] * xg
    else:
        if match_kernel_quant:
            w = w.astype(jnp.bfloat16).astype(jnp.float32)
            xg = xg.astype(jnp.bfloat16).astype(jnp.float32)
        y = jnp.einsum("oi,bit->bot", w, xg)
    mean = jnp.mean(y, axis=(1, 2), keepdims=True)
    var = jnp.mean((y - mean) ** 2, axis=(1, 2), keepdims=True)
    gact = (y - mean) / jnp.sqrt(var + EPS)
    gact = gact * params["gn_gamma"][None, :, None] + params["gn_beta"][None, :, None]
    sig = jax.nn.sigmoid(gact)

    T, Tg = x_l.shape[-1], x_g.shape[-1]
    idx = (jnp.arange(T) * Tg) // T                       # nearest: floor(dst * Tg / T)
    sig_up = sig[:, :, idx]
    out1 = x_l * sig_up

    pooled = jnp.mean(out1, axis=-1)                      # AdaptiveAvgPool1d(1)
    hid = jax.nn.relu(pooled @ params["cab_w1"].T)        # (B, hidden)
    gate = jax.nn.sigmoid(hid @ params["cab_w2"].T)       # (B, C)
    return gate[:, :, None] * out1


def _run_case(name, key, *, B, inp, oup, T, Tg):
    k_xl, k_xg, k_p = jax.random.split(key, 3)
    x_l = jax.random.normal(k_xl, (B, oup, T), jnp.float32)
    x_g = jax.random.normal(k_xg, (B, inp, Tg), jnp.float32)
    params, depthwise = init_laopt2_params(k_p, inp, oup)

    out = laopt2_forward(x_l, x_g, params, depthwise=depthwise)
    assert out.shape == (B, oup, T), f"{name}: bad output shape {out.shape}"

    ref_q = laopt2_reference(x_l, x_g, params, depthwise=depthwise, match_kernel_quant=True)
    ref_f = laopt2_reference(x_l, x_g, params, depthwise=depthwise, match_kernel_quant=False)
    assert jnp.allclose(out, ref_q, rtol=5e-3, atol=2e-3), f"{name}: mismatch vs matched ref"
    assert jnp.allclose(out, ref_f, rtol=5e-2, atol=5e-2), f"{name}: mismatch vs f32 ref"


if __name__ == "__main__":
    key = jax.random.PRNGKey(0)
    k_dense, k_dw = jax.random.split(key)
    # Dense 1x1-conv path (inp != oup), lane-aligned T, integer upsample ratio.
    _run_case("dense", k_dense, B=2, inp=32, oup=64, T=256, Tg=64)
    # Depthwise path (inp == oup -> groups=inp); T not a multiple of 128 exercises the
    # lane-padding path and the non-integer T/Tg ratio exercises the general nearest rule.
    _run_case("depthwise", k_dw, B=2, inp=64, oup=64, T=200, Tg=48)
    print("KERNEL_OK")
</pallas_src>

<mosaic_0001>
module attributes {stable_mosaic.version = 11 : i64} {
  func.func @_laopt2_kernel(%arg0: i32, %arg1: memref<1x64x256xf32, #tpu.memory_space<vmem>>, %arg2: memref<1x32x64xbf16, #tpu.memory_space<vmem>>, %arg3: memref<64x32xbf16, #tpu.memory_space<vmem>>, %arg4: memref<64x2xf32, #tpu.memory_space<vmem>>, %arg5: memref<2x64xf32, #tpu.memory_space<vmem>>, %arg6: memref<64x2xf32, #tpu.memory_space<vmem>>, %arg7: memref<1x256xi32, #tpu.memory_space<vmem>>, %arg8: memref<1x64x256xf32, #tpu.memory_space<vmem>>) attributes {dimension_semantics = [#tpu.dimension_semantics<parallel>], iteration_bounds = array<i64: 2>, scalar_prefetch = 0 : i64, scratch_operands = 0 : i64, tpu.core_type = #tpu.core_type<tc>, window_params = [{transform_indices = @transform_0, window_bounds = array<i64: 1, 64, 256>}, {transform_indices = @transform_1, window_bounds = array<i64: 1, 32, 64>}, {pipeline_mode = #tpu.pipeline_mode<synchronous>, transform_indices = @transform_2, window_bounds = array<i64: 64, 32>}, {pipeline_mode = #tpu.pipeline_mode<synchronous>, transform_indices = @transform_3, window_bounds = array<i64: 64, 2>}, {pipeline_mode = #tpu.pipeline_mode<synchronous>, transform_indices = @transform_4, window_bounds = array<i64: 2, 64>}, {pipeline_mode = #tpu.pipeline_mode<synchronous>, transform_indices = @transform_5, window_bounds = array<i64: 64, 2>}, {pipeline_mode = #tpu.pipeline_mode<synchronous>, transform_indices = @transform_6, window_bounds = array<i64: 1, 256>}, {transform_indices = @transform_7, window_bounds = array<i64: 1, 64, 256>}]} {
    %c0 = arith.constant 0 : index
    %c0_0 = arith.constant 0 : index
    %0 = vector.load %arg4[%c0, %c0_0] : memref<64x2xf32, #tpu.memory_space<vmem>>, vector<64x1xf32>
    %c0_1 = arith.constant 0 : index
    %c1 = arith.constant 1 : index
    %1 = vector.load %arg4[%c0_1, %c1] : memref<64x2xf32, #tpu.memory_space<vmem>>, vector<64x1xf32>
    %c0_2 = arith.constant 0 : index
    %c0_3 = arith.constant 0 : index
    %2 = vector.load %arg3[%c0_2, %c0_3] : memref<64x32xbf16, #tpu.memory_space<vmem>>, vector<64x32xbf16>
    %c0_4 = arith.constant 0 : index
    %c0_5 = arith.constant 0 : index
    %3 = vector.load %arg5[%c0_4, %c0_5] : memref<2x64xf32, #tpu.memory_space<vmem>>, vector<2x64xf32>
    %c0_6 = arith.constant 0 : index
    %c0_7 = arith.constant 0 : index
    %4 = vector.load %arg6[%c0_6, %c0_7] : memref<64x2xf32, #tpu.memory_space<vmem>>, vector<64x2xf32>
    %c0_8 = arith.constant 0 : index
    %c0_9 = arith.constant 0 : index
    %5 = vector.load %arg7[%c0_8, %c0_9] : memref<1x256xi32, #tpu.memory_space<vmem>>, vector<1x256xi32>
    %6 = vector.shape_cast %5 : vector<1x256xi32> to vector<1x256xi32>
    %7 = vector.broadcast %6 : vector<1x256xi32> to vector<64x256xi32>
    %c0_10 = arith.constant 0 : index
    %c0_11 = arith.constant 0 : index
    %c0_12 = arith.constant 0 : index
    %8 = vector.load %arg2[%c0_10, %c0_11, %c0_12] : memref<1x32x64xbf16, #tpu.memory_space<vmem>>, vector<1x32x64xbf16>
    %9 = vector.shape_cast %8 : vector<1x32x64xbf16> to vector<32x64xbf16>
    %cst = arith.constant dense<0.000000e+00> : vector<64x64xf32>
    %10 = tpu.matmul %2, %9, %cst {dimension_numbers = #tpu.dot_dimension_numbers<[1], [0], [0], [1], [0, 0, 1, 1], [], []>} : vector<64x32xbf16>, vector<32x64xbf16>, vector<64x64xf32> -> vector<64x64xf32>
    %11 = vector.shape_cast %10 : vector<64x64xf32> to vector<1x64x64xf32>
    %cst_13 = arith.constant dense<0.000000e+00> : vector<1xf32>
    %12 = vector.multi_reduction <add>, %11, %cst_13 [1, 2] : vector<1x64x64xf32> to vector<1xf32>
    %13 = vector.shape_cast %12 : vector<1xf32> to vector<1x1x1xf32>
    %14 = vector.extract %13[0, 0, 0] : f32 from vector<1x1x1xf32>
    %15 = arith.mulf %10, %10 : vector<64x64xf32>
    %16 = vector.shape_cast %15 : vector<64x64xf32> to vector<1x64x64xf32>
    %cst_14 = arith.constant dense<0.000000e+00> : vector<1xf32>
    %17 = vector.multi_reduction <add>, %16, %cst_14 [1, 2] : vector<1x64x64xf32> to vector<1xf32>
    %18 = vector.shape_cast %17 : vector<1xf32> to vector<1x1x1xf32>
    %19 = vector.extract %18[0, 0, 0] : f32 from vector<1x1x1xf32>
    %cst_15 = arith.constant 2.44140625E-4 : f32
    %20 = arith.mulf %14, %cst_15 : f32
    %cst_16 = arith.constant 2.44140625E-4 : f32
    %21 = arith.mulf %19, %cst_16 : f32
    %22 = arith.mulf %20, %20 : f32
    %23 = arith.subf %21, %22 : f32
    %cst_17 = arith.constant 0.000000e+00 : f32
    %24 = arith.maximumf %23, %cst_17 : f32
    %25 = vector.broadcast %20 : f32 to vector<64x64xf32>
    %26 = arith.subf %10, %25 : vector<64x64xf32>
    %cst_18 = arith.constant 9.99999993E-9 : f32
    %27 = arith.addf %24, %cst_18 : f32
    %28 = math.rsqrt %27 : f32
    %29 = vector.broadcast %28 : f32 to vector<64x64xf32>
    %30 = arith.mulf %26, %29 : vector<64x64xf32>
    %31 = vector.broadcast %0 : vector<64x1xf32> to vector<64x64xf32>
    %32 = arith.mulf %30, %31 : vector<64x64xf32>
    %33 = vector.broadcast %1 : vector<64x1xf32> to vector<64x64xf32>
    %34 = arith.addf %32, %33 : vector<64x64xf32>
    %35 = arith.negf %34 : vector<64x64xf32>
    %36 = math.exp %35 : vector<64x64xf32>
    %cst_19 = arith.constant 1.000000e+00 : f32
    %37 = vector.broadcast %cst_19 : f32 to vector<64x64xf32>
    %38 = arith.addf %37, %36 : vector<64x64xf32>
    %39 = arith.divf %37, %38 : vector<64x64xf32>
    %c0_i32 = arith.constant 0 : i32
    %40 = vector.broadcast %c0_i32 : i32 to vector<64x256xi32>
    %41 = arith.cmpi slt, %7, %40 : vector<64x256xi32>
    %c64_i32 = arith.constant 64 : i32
    %42 = vector.broadcast %c64_i32 : i32 to vector<64x256xi32>
    %43 = arith.addi %7, %42 : vector<64x256xi32>
    %44 = arith.select %41, %43, %7 : vector<64x256xi1>, vector<64x256xi32>
    %45 = vector.shape_cast %44 : vector<64x256xi32> to vector<64x256x1xi32>
    %46 = vector.shape_cast %45 : vector<64x256x1xi32> to vector<64x256xi32>
    %47 = tpu.dynamic_gather %39[%46] in [1] : vector<64x64xf32>, vector<64x256xi32> -> vector<64x256xf32>
    %c0_20 = arith.constant 0 : index
    %c0_21 = arith.constant 0 : index
    %c0_22 = arith.constant 0 : index
    %48 = vector.load %arg1[%c0_20, %c0_21, %c0_22] : memref<1x64x256xf32, #tpu.memory_space<vmem>>, vector<1x64x256xf32>
    %49 = vector.shape_cast %48 : vector<1x64x256xf32> to vector<64x256xf32>
    %50 = arith.mulf %49, %47 : vector<64x256xf32>
    %cst_23 = arith.constant dense<0.000000e+00> : vector<64xf32>
    %51 = vector.multi_reduction <add>, %50, %cst_23 [1] : vector<64x256xf32> to vector<64xf32>
    %52 = vector.shape_cast %51 : vector<64xf32> to vector<64x1xf32>
    %cst_24 = arith.constant 3.906250e-03 : f32
    %53 = vector.broadcast %cst_24 : f32 to vector<64x1xf32>
    %54 = arith.mulf %52, %53 : vector<64x1xf32>
    %cst_25 = arith.constant dense<0.000000e+00> : vector<2x1xf32>
    %55 = tpu.matmul %3, %54, %cst_25 {dimension_numbers = #tpu.dot_dimension_numbers<[1], [0], [0], [1], [0, 0, 1, 1], [], []>} : vector<2x64xf32>, vector<64x1xf32>, vector<2x1xf32> -> vector<2x1xf32>
    %cst_26 = arith.constant 0.000000e+00 : f32
    %56 = vector.broadcast %cst_26 : f32 to vector<2x1xf32>
    %57 = arith.maximumf %55, %56 : vector<2x1xf32>
    %cst_27 = arith.constant dense<0.000000e+00> : vector<64x1xf32>
    %58 = tpu.matmul %4, %57, %cst_27 {dimension_numbers = #tpu.dot_dimension_numbers<[1], [0], [0], [1], [0, 0, 1, 1], [], []>} : vector<64x2xf32>, vector<2x1xf32>, vector<64x1xf32> -> vector<64x1xf32>
    %59 = arith.negf %58 : vector<64x1xf32>
    %60 = math.exp %59 : vector<64x1xf32>
    %cst_28 = arith.constant 1.000000e+00 : f32
    %61 = vector.broadcast %cst_28 : f32 to vector<64x1xf32>
    %62 = arith.addf %61, %60 : vector<64x1xf32>
    %63 = arith.divf %61, %62 : vector<64x1xf32>
    %64 = vector.broadcast %63 : vector<64x1xf32> to vector<64x256xf32>
    %65 = arith.mulf %64, %50 : vector<64x256xf32>
    %c0_29 = arith.constant 0 : index
    %c0_30 = arith.constant 0 : index
    %c0_31 = arith.constant 0 : index
    %66 = vector.load %arg8[%c0_29, %c0_30, %c0_31] : memref<1x64x256xf32, #tpu.memory_space<vmem>>, vector<1x64x256xf32>
    %67 = vector.shape_cast %66 : vector<1x64x256xf32> to vector<64x256xf32>
    %68 = vector.shape_cast %65 : vector<64x256xf32> to vector<1x64x256xf32>
    tpu.vector_store %arg8[%c0_29, %c0_30, %c0_31], %68 {strides = array<i32>} : memref<1x64x256xf32, #tpu.memory_space<vmem>>, vector<1x64x256xf32>,
    return
  }
  func.func @transform_0(%arg0: i32) -> (i32, i32, i32) {
    %c0_i32 = arith.constant 0 : i32
    %c0_i32_0 = arith.constant 0 : i32
    %c0_i32_1 = arith.constant 0 : i32
    return %arg0, %c0_i32, %c0_i32_0 : i32, i32, i32
  }
  func.func @transform_1(%arg0: i32) -> (i32, i32, i32) {
    %c0_i32 = arith.constant 0 : i32
    %c0_i32_0 = arith.constant 0 : i32
    %c0_i32_1 = arith.constant 0 : i32
    return %arg0, %c0_i32, %c0_i32_0 : i32, i32, i32
  }
  func.func @transform_2(%arg0: i32) -> (i32, i32) {
    %c0_i32 = arith.constant 0 : i32
    %c0_i32_0 = arith.constant 0 : i32
    %c0_i32_1 = arith.constant 0 : i32
    return %c0_i32, %c0_i32_0 : i32, i32
  }
  func.func @transform_3(%arg0: i32) -> (i32, i32) {
    %c0_i32 = arith.constant 0 : i32
    %c0_i32_0 = arith.constant 0 : i32
    %c0_i32_1 = arith.constant 0 : i32
    return %c0_i32, %c0_i32_0 : i32, i32
  }
  func.func @transform_4(%arg0: i32) -> (i32, i32) {
    %c0_i32 = arith.constant 0 : i32
    %c0_i32_0 = arith.constant 0 : i32
    %c0_i32_1 = arith.constant 0 : i32
    return %c0_i32, %c0_i32_0 : i32, i32
  }
  func.func @transform_5(%arg0: i32) -> (i32, i32) {
    %c0_i32 = arith.constant 0 : i32
    %c0_i32_0 = arith.constant 0 : i32
    %c0_i32_1 = arith.constant 0 : i32
    return %c0_i32, %c0_i32_0 : i32, i32
  }
  func.func @transform_6(%arg0: i32) -> (i32, i32) {
    %c0_i32 = arith.constant 0 : i32
    %c0_i32_0 = arith.constant 0 : i32
    %c0_i32_1 = arith.constant 0 : i32
    return %c0_i32, %c0_i32_0 : i32, i32
  }
  func.func @transform_7(%arg0: i32) -> (i32, i32, i32) {
    %c0_i32 = arith.constant 0 : i32
    %c0_i32_0 = arith.constant 0 : i32
    %c0_i32_1 = arith.constant 0 : i32
    return %arg0, %c0_i32, %c0_i32_0 : i32, i32, i32
  }
}

module attributes {stable_mosaic.version = 11 : i64} {
  func.func @_laopt2_kernel(%arg0: i32, %arg1: memref<1x64x256xf32, #tpu.memory_space<vmem>>, %arg2: memref<1x32x64xbf16, #tpu.memory_space<vmem>>, %arg3: memref<64x32xbf16, #tpu.memory_space<vmem>>, %arg4: memref<64x2xf32, #tpu.memory_space<vmem>>, %arg5: memref<2x64xf32, #tpu.memory_space<vmem>>, %arg6: memref<64x2xf32, #tpu.memory_space<vmem>>, %arg7: memref<1x256xi32, #tpu.memory_space<vmem>>, %arg8: memref<1x64x256xf32, #tpu.memory_space<vmem>>) attributes {dimension_semantics = [#tpu.dimension_semantics<parallel>], iteration_bounds = array<i64: 2>, scalar_prefetch = 0 : i64, scratch_operands = 0 : i64, tpu.core_type = #tpu.core_type<tc>, window_params = [{transform_indices = @transform_0, window_bounds = array<i64: 1, 64, 256>}, {transform_indices = @transform_1, window_bounds = array<i64: 1, 32, 64>}, {pipeline_mode = #tpu.pipeline_mode<synchronous>, transform_indices = @transform_2, window_bounds = array<i64: 64, 32>}, {pipeline_mode = #tpu.pipeline_mode<synchronous>, transform_indices = @transform_3, window_bounds = array<i64: 64, 2>}, {pipeline_mode = #tpu.pipeline_mode<synchronous>, transform_indices = @transform_4, window_bounds = array<i64: 2, 64>}, {pipeline_mode = #tpu.pipeline_mode<synchronous>, transform_indices = @transform_5, window_bounds = array<i64: 64, 2>}, {pipeline_mode = #tpu.pipeline_mode<synchronous>, transform_indices = @transform_6, window_bounds = array<i64: 1, 256>}, {transform_indices = @transform_7, window_bounds = array<i64: 1, 64, 256>}]} {
    %c0 = arith.constant 0 : index
    %c0_0 = arith.constant 0 : index
    %0 = vector.load %arg4[%c0, %c0_0] : memref<64x2xf32, #tpu.memory_space<vmem>>, vector<64x1xf32>
    %c0_1 = arith.constant 0 : index
    %c1 = arith.constant 1 : index
    %1 = vector.load %arg4[%c0_1, %c1] : memref<64x2xf32, #tpu.memory_space<vmem>>, vector<64x1xf32>
    %c0_2 = arith.constant 0 : index
    %c0_3 = arith.constant 0 : index
    %2 = vector.load %arg3[%c0_2, %c0_3] : memref<64x32xbf16, #tpu.memory_space<vmem>>, vector<64x32xbf16>
    %c0_4 = arith.constant 0 : index
    %c0_5 = arith.constant 0 : index
    %3 = vector.load %arg5[%c0_4, %c0_5] : memref<2x64xf32, #tpu.memory_space<vmem>>, vector<2x64xf32>
    %c0_6 = arith.constant 0 : index
    %c0_7 = arith.constant 0 : index
    %4 = vector.load %arg6[%c0_6, %c0_7] : memref<64x2xf32, #tpu.memory_space<vmem>>, vector<64x2xf32>
    %5 = tpu.iota {dimensions = array<i32: 0>} : vector<64x256xi32>
    %c0_8 = arith.constant 0 : index
    %c0_9 = arith.constant 0 : index
    %6 = vector.load %arg7[%c0_8, %c0_9] : memref<1x256xi32, #tpu.memory_space<vmem>>, vector<1x256xi32>
    %7 = vector.shape_cast %6 : vector<1x256xi32> to vector<1x256xi32>
    %8 = vector.broadcast %7 : vector<1x256xi32> to vector<64x256xi32>
    %9 = arith.cmpi eq, %5, %8 : vector<64x256xi32>
    %10 = arith.extui %9 : vector<64x256xi1> to vector<64x256xi32>
    %11 = arith.sitofp %10 : vector<64x256xi32> to vector<64x256xf32>
    %c0_10 = arith.constant 0 : index
    %c0_11 = arith.constant 0 : index
    %c0_12 = arith.constant 0 : index
    %12 = vector.load %arg2[%c0_10, %c0_11, %c0_12] : memref<1x32x64xbf16, #tpu.memory_space<vmem>>, vector<1x32x64xbf16>
    %13 = vector.shape_cast %12 : vector<1x32x64xbf16> to vector<32x64xbf16>
    %cst = arith.constant dense<0.000000e+00> : vector<64x64xf32>
    %14 = tpu.matmul %2, %13, %cst {dimension_numbers = #tpu.dot_dimension_numbers<[1], [0], [0], [1], [0, 0, 1, 1], [], []>} : vector<64x32xbf16>, vector<32x64xbf16>, vector<64x64xf32> -> vector<64x64xf32>
    %15 = vector.shape_cast %14 : vector<64x64xf32> to vector<1x64x64xf32>
    %cst_13 = arith.constant dense<0.000000e+00> : vector<1xf32>
    %16 = vector.multi_reduction <add>, %15, %cst_13 [1, 2] : vector<1x64x64xf32> to vector<1xf32>
    %17 = vector.shape_cast %16 : vector<1xf32> to vector<1x1x1xf32>
    %18 = vector.extract %17[0, 0, 0] : f32 from vector<1x1x1xf32>
    %19 = arith.mulf %14, %14 : vector<64x64xf32>
    %20 = vector.shape_cast %19 : vector<64x64xf32> to vector<1x64x64xf32>
    %cst_14 = arith.constant dense<0.000000e+00> : vector<1xf32>
    %21 = vector.multi_reduction <add>, %20, %cst_14 [1, 2] : vector<1x64x64xf32> to vector<1xf32>
    %22 = vector.shape_cast %21 : vector<1xf32> to vector<1x1x1xf32>
    %23 = vector.extract %22[0, 0, 0] : f32 from vector<1x1x1xf32>
    %cst_15 = arith.constant 2.44140625E-4 : f32
    %24 = arith.mulf %18, %cst_15 : f32
    %cst_16 = arith.constant 2.44140625E-4 : f32
    %25 = arith.mulf %23, %cst_16 : f32
    %26 = arith.mulf %24, %24 : f32
    %27 = arith.subf %25, %26 : f32
    %cst_17 = arith.constant 0.000000e+00 : f32
    %28 = arith.maximumf %27, %cst_17 : f32
    %29 = vector.broadcast %24 : f32 to vector<64x64xf32>
    %30 = arith.subf %14, %29 : vector<64x64xf32>
    %cst_18 = arith.constant 9.99999993E-9 : f32
    %31 = arith.addf %28, %cst_18 : f32
    %32 = math.rsqrt %31 : f32
    %33 = vector.broadcast %32 : f32 to vector<64x64xf32>
    %34 = arith.mulf %30, %33 : vector<64x64xf32>
    %35 = vector.broadcast %0 : vector<64x1xf32> to vector<64x64xf32>
    %36 = arith.mulf %34, %35 : vector<64x64xf32>
    %37 = vector.broadcast %1 : vector<64x1xf32> to vector<64x64xf32>
    %38 = arith.addf %36, %37 : vector<64x64xf32>
    %39 = arith.negf %38 : vector<64x64xf32>
    %40 = math.exp %39 : vector<64x64xf32>
    %cst_19 = arith.constant 1.000000e+00 : f32
    %41 = vector.broadcast %cst_19 : f32 to vector<64x64xf32>
    %42 = arith.addf %41, %40 : vector<64x64xf32>
    %43 = arith.divf %41, %42 : vector<64x64xf32>
    %cst_20 = arith.constant dense<0.000000e+00> : vector<64x256xf32>
    %44 = tpu.matmul %43, %11, %cst_20 {dimension_numbers = #tpu.dot_dimension_numbers<[1], [0], [0], [1], [0, 0, 1, 1], [], []>, precision = #tpu.contract_precision<fp32>} : vector<64x64xf32>, vector<64x256xf32>, vector<64x256xf32> -> vector<64x256xf32>
    %c0_21 = arith.constant 0 : index
    %c0_22 = arith.constant 0 : index
    %c0_23 = arith.constant 0 : index
    %45 = vector.load %arg1[%c0_21, %c0_22, %c0_23] : memref<1x64x256xf32, #tpu.memory_space<vmem>>, vector<1x64x256xf32>
    %46 = vector.shape_cast %45 : vector<1x64x256xf32> to vector<64x256xf32>
    %47 = arith.mulf %46, %44 : vector<64x256xf32>
    %cst_24 = arith.constant dense<0.000000e+00> : vector<64xf32>
    %48 = vector.multi_reduction <add>, %47, %cst_24 [1] : vector<64x256xf32> to vector<64xf32>
    %49 = vector.shape_cast %48 : vector<64xf32> to vector<64x1xf32>
    %cst_25 = arith.constant 3.906250e-03 : f32
    %50 = vector.broadcast %cst_25 : f32 to vector<64x1xf32>
    %51 = arith.mulf %49, %50 : vector<64x1xf32>
    %cst_26 = arith.constant dense<0.000000e+00> : vector<2x1xf32>
    %52 = tpu.matmul %3, %51, %cst_26 {dimension_numbers = #tpu.dot_dimension_numbers<[1], [0], [0], [1], [0, 0, 1, 1], [], []>} : vector<2x64xf32>, vector<64x1xf32>, vector<2x1xf32> -> vector<2x1xf32>
    %cst_27 = arith.constant 0.000000e+00 : f32
    %53 = vector.broadcast %cst_27 : f32 to vector<2x1xf32>
    %54 = arith.maximumf %52, %53 : vector<2x1xf32>
    %cst_28 = arith.constant dense<0.000000e+00> : vector<64x1xf32>
    %55 = tpu.matmul %4, %54, %cst_28 {dimension_numbers = #tpu.dot_dimension_numbers<[1], [0], [0], [1], [0, 0, 1, 1], [], []>} : vector<64x2xf32>, vector<2x1xf32>, vector<64x1xf32> -> vector<64x1xf32>
    %56 = arith.negf %55 : vector<64x1xf32>
    %57 = math.exp %56 : vector<64x1xf32>
    %cst_29 = arith.constant 1.000000e+00 : f32
    %58 = vector.broadcast %cst_29 : f32 to vector<64x1xf32>
    %59 = arith.addf %58, %57 : vector<64x1xf32>
    %60 = arith.divf %58, %59 : vector<64x1xf32>
    %61 = vector.broadcast %60 : vector<64x1xf32> to vector<64x256xf32>
    %62 = arith.mulf %61, %47 : vector<64x256xf32>
    %c0_30 = arith.constant 0 : index
    %c0_31 = arith.constant 0 : index
    %c0_32 = arith.constant 0 : index
    %63 = vector.load %arg8[%c0_30, %c0_31, %c0_32] : memref<1x64x256xf32, #tpu.memory_space<vmem>>, vector<1x64x256xf32>
    %64 = vector.shape_cast %63 : vector<1x64x256xf32> to vector<64x256xf32>
    %65 = vector.shape_cast %62 : vector<64x256xf32> to vector<1x64x256xf32>
    tpu.vector_store %arg8[%c0_30, %c0_31, %c0_32], %65 {strides = array<i32>} : memref<1x64x256xf32, #tpu.memory_space<vmem>>, vector<1x64x256xf32>,
    return
  }
  func.func @transform_0(%arg0: i32) -> (i32, i32, i32) {
    %c0_i32 = arith.constant 0 : i32
    %c0_i32_0 = arith.constant 0 : i32
    %c0_i32_1 = arith.constant 0 : i32
    return %arg0, %c0_i32, %c0_i32_0 : i32, i32, i32
  }
  func.func @transform_1(%arg0: i32) -> (i32, i32, i32) {
    %c0_i32 = arith.constant 0 : i32
    %c0_i32_0 = arith.constant 0 : i32
    %c0_i32_1 = arith.constant 0 : i32
    return %arg0, %c0_i32, %c0_i32_0 : i32, i32, i32
  }
  func.func @transform_2(%arg0: i32) -> (i32, i32) {
    %c0_i32 = arith.constant 0 : i32
    %c0_i32_0 = arith.constant 0 : i32
    %c0_i32_1 = arith.constant 0 : i32
    return %c0_i32, %c0_i32_0 : i32, i32
  }
  func.func @transform_3(%arg0: i32) -> (i32, i32) {
    %c0_i32 = arith.constant 0 : i32
    %c0_i32_0 = arith.constant 0 : i32
    %c0_i32_1 = arith.constant 0 : i32
    return %c0_i32, %c0_i32_0 : i32, i32
  }
  func.func @transform_4(%arg0: i32) -> (i32, i32) {
    %c0_i32 = arith.constant 0 : i32
    %c0_i32_0 = arith.constant 0 : i32
    %c0_i32_1 = arith.constant 0 : i32
    return %c0_i32, %c0_i32_0 : i32, i32
  }
  func.func @transform_5(%arg0: i32) -> (i32, i32) {
    %c0_i32 = arith.constant 0 : i32
    %c0_i32_0 = arith.constant 0 : i32
    %c0_i32_1 = arith.constant 0 : i32
    return %c0_i32, %c0_i32_0 : i32, i32
  }
  func.func @transform_6(%arg0: i32) -> (i32, i32) {
    %c0_i32 = arith.constant 0 : i32
    %c0_i32_0 = arith.constant 0 : i32
    %c0_i32_1 = arith.constant 0 : i32
    return %c0_i32, %c0_i32_0 : i32, i32
  }
  func.func @transform_7(%arg0: i32) -> (i32, i32, i32) {
    %c0_i32 = arith.constant 0 : i32
    %c0_i32_0 = arith.constant 0 : i32
    %c0_i32_1 = arith.constant 0 : i32
    return %arg0, %c0_i32, %c0_i32_0 : i32, i32, i32
  }
}

</mosaic_0001>

<bundles_post_ra>
// kernel: _laopt2_call.1
= control target key start
LH: loop header
LB: loop body
LE: loop exit
PB: predicated region body
PF: predicated region fallthrough
CT: control target
= control target key end

     0   :  { %12 = vsyncpa [#allocation3], 0  ;;  %s2033_s0 = inlined_call_operand.vmem [shape: f32[2,64,256], index: 0, kind: input, shape index: {}]   ;;  %s2034_s1 = inlined_call_operand.vmem [shape: bf16[2,32,64], index: 1, kind: input, shape index: {}]   ;;  %s2035_s2 = inlined_call_operand.vmem [shape: bf16[64,32], index: 2, kind: input, shape index: {}]   ;;  %s2036_s3 = inlined_call_operand.vmem [shape: f32[64,2], index: 3, kind: input, shape index: {}]   ;;  %s2037_s4 = inlined_call_operand.vmem [shape: f32[2,64], index: 4, kind: input, shape index: {}]   ;;  %s2038_s5 = inlined_call_operand.vmem [shape: f32[64,2], index: 5, kind: input, shape index: {}]   ;;  %s2039_s6 = inlined_call_operand.vmem [shape: s32[1,256], index: 6, kind: input, shape index: {}]   ;;  %s2040_s7 = inlined_call_operand.hbm [shape: f32[2,64,256], index: 7, kind: output, shape index: {}]  }
   0x1   :  { %14 = vsyncpa [#allocation3 + $0x1], 0  ;;  %s1590_s24 = smov 0   ;;  %s1592_s25 = smov 0  }
   0x2   :  { %s1594_s26 = smov 0   ;;  %s1596_s27 = smov 0  }
   0x3 LB: > { %s1611_s28 = sadd.s32 4294967295, %s1543_s27   ;;  %s1263_s29 = sadd.s32 4294967294, %s1543_s27   ;;  %s1543_s27 = sphi %s1596_s27, %s2050_s27   ;;  %s1539_s26 = sphi %s1594_s26, %s2049_s26   ;;  %s1535_s25 = sphi %s1592_s25, %s2048_s25   ;;  %s1531_s24 = sphi %s1590_s24, %s2047_s24  }
   0x4   : > { %s1615_s30 = sadd.s32 1, %s1543_s27   ;;  %s184_s8 = sadd.s32 1, %s1539_s26 }
   0x5   : > { %s181_s9 = ssub.s32 %s1543_s27, %s1615_s30  ;;  %p194_p0 = scmp.ne.s32.totalorder %s1539_s26, %s1535_s25 }
   0x6   : > { %p182_p1 = scmp.eq.s32.totalorder %s181_s9, 0  ;;  %p195_p2 = scmp.eq.s32.totalorder %s1611_s28, 1 }
   0x7   : > { %p200_p3 = scmp.ne.s32.totalorder %s1535_s25, %s1531_s24  ;;  %p201_p4 = scmp.eq.s32.totalorder %s1263_s29, 1 }
   0x8   : > { %s1626_s10 = scalar_select %p182_p1, %s1539_s26, %s184_s8  }
   0x9   : > { %p1628_p5 = por %p195_p2, %p194_p0  ;;  %p1632_p6 = por %p201_p4, %p200_p3 }
   0xa   : > { %p1266_p7 = scmp.ge.s32.totalorder %s1543_s27, 1  ;;  %p250_p8 = scmp.lt.s32.totalorder %s1543_s27, 3 }
   0xc   : > { %p251_p9 = pnand %p1266_p7, %p250_p8 }
   0xd   : > { %p287_p10 = scmp.lt.s32.totalorder (!%p251_p9), %s1611_s28, 1  ;;  %s1547_s22 = smov (!%p251_p9), 0.0  }
   0xe   : > { %254 = sbr.rel (%p251_p9) target bundleno = 1242 (0x4da), region = 48  ;;  %s1339_s8 = sshll.u32 (!%p251_p9), %s1611_s28, 7 }
  0x13   : > { %s1640_s13 = scalar_select %p287_p10, %s1611_s28, 1  ;;  %v1333_v2 = vld [vmem:[%s2035_s2] sm:$0xff]  ;;  %v1335_v3 = vld [vmem:[%s2035_s2 + $0x10] sm:$0xff]  ;;  %vm362_vm0 = vcmask 261120   ;;  %v1334_v4 = vld [vmem:[%s2035_s2 + $0x8] sm:$0xff]  ;;  %vm404_vm1 = vcmask 523264  }
  0x14   : > { %v1336_v5 = vld [vmem:[%s2035_s2 + $0x18] sm:$0xff]  ;;  %v1545_v13 = vmov 0   ;;  %v304_v25 = vld [vmem:[%s2036_s3 + $0x30] sm:$0xff]  ;;  %v302_v55 = vld [vmem:[%s2036_s3 + $0x20] sm:$0xff]  ;;  %v1546_v56 = vmov 1  }
  0x15   : > { %s1332_s14 = sshll.u32 %s1640_s13, 4  ;;  %v305_v12 = vld [vmem:[%s2036_s3 + $0x38] sm:$0xff]  ;;  %1396 = vset.pattern.permute.xlu1 %v1545_v13  ;;  %1397 = vset.pattern.permute.xlu2 %v1546_v56  ;;  %v300_v58 = vld [vmem:[%s2036_s3 + $0x10] sm:$0xff]  ;;  %v303_v59 = vld [vmem:[%s2036_s3 + $0x28] sm:$0xff]  ;;  %s1331_s15 = sshll.u32 %s1640_s13, 7 }
  0x16   : > { %s296_s17 = scalar_lea.vmem %s2034_s1, %s1332_s14  ;;  %534 = vperm.xlu1 %1396, %v305_v12   ;;  %v301_v57 = vld [vmem:[%s2036_s3 + $0x18] sm:$0xff]  ;;  %1399 = vset.pattern.permute.xlu0 %v1546_v56  ;;  %v298_v60 = vld [vmem:[%s2036_s3] sm:$0xff]  ;;  %v299_v61 = vld [vmem:[%s2036_s3 + $0x8] sm:$0xff] }
  0x17   : > { %v1338_v0 = vld [vmem:[%s296_s17 + $0x8] sm:$0xff]  ;;  %v1337_v1 = vld [vmem:[%s296_s17] sm:$0xff]  ;;  %574 = vperm.xlu2 %1397, %v305_v12  }
  0x18   : > { %381 = vmatpush.bf16.msra.mxu0 %v1338_v0  ;;  %1341 = vmatpush.bf16.msra.mxu3 %v1338_v0 }
  0x19   : > { %1340 = vmatpush.bf16.msra.mxu1 %v1338_v0 }
  0x1c   : > { %382 = vmatpush.bf16.msra.mxu0 %v1337_v1  ;;  %1343 = vmatpush.bf16.msra.mxu3 %v1337_v1 }
  0x1d   : > { %1342 = vmatpush.bf16.msra.mxu1 %v1337_v1 }
  0x1e   : > { %529 = vperm.xlu1 %1396, %v304_v25  }
  0x1f   : > { %1296 = vmatmul.msk.bf16.vlgmr.msra.gmra.mxu0 %vm362_vm0, %v1333_v2  ;;  %1298 = vmatmul.msk.bf16.vlgmr.msra.gmra.mxu3 %vm362_vm0, %v1335_v3 }
  0x20   : > { %1297 = vmatmul.msk.bf16.vlgmr.msra.gmra.mxu1 %vm362_vm0, %v1334_v4  ;;  %1398 = vset.pattern.permute.xlu2 %v1545_v13 }
  0x21   : > { %524 = vperm.xlu2 %1398, %v303_v59  }
  0x26   : > { %519 = vperm.xlu1 %1396, %v302_v55  }
  0x29   : > { %1400 = vset.pattern.permute.xlu2 %v1546_v56 }
  0x2a   : > { %566 = vperm.xlu2 %1400, %v303_v59  }
  0x2e   : > { %514 = vperm.xlu1 %1396, %v301_v57  }
  0x2f   : > { %1299 = vmatmul.msk.bf16.gmra.mxu3 %vm362_vm0, %v1336_v5 }
  0x32   : > { %562 = vperm.xlu2 %1400, %v302_v55  }
  0x36   : > { %509 = vperm.xlu1 %1396, %v300_v58  }
  0x3a   : > { %558 = vperm.xlu2 %1400, %v301_v57  }
  0x3e   : > { %504 = vperm.xlu1 %1396, %v299_v61  }
  0x42   : > { %554 = vperm.xlu2 %1400, %v300_v58  }
  0x46   : > { %499 = vperm.xlu1 %1396, %v298_v60  }
  0x4a   : > { %550 = vperm.xlu2 %1400, %v299_v61  }
  0x9c   : > { %v1658_v6 = vpop.f32.mrf.mxu0 }
  0x9d   : > { %v1660_v7 = vpop.f32.mrf.mxu1  ;;  %v405_v10 = vsel %vm404_vm1, %v1658_v6, 0.0  ;;  %v429_v15 = vmul.f32 %v1658_v6, %v1658_v6 }
  0x9e   : > { %v408_v16 = vsel %vm404_vm1, %v1660_v7, 0.0  ;;  %v431_v22 = vmul.f32 %v1660_v7, %v1660_v7 }
  0x9f   : > { %v437_v21 = vsel %vm404_vm1, %v429_v15, 0.0 }
  0xa0   : > { %v440_v28 = vsel %vm404_vm1, %v431_v22, 0.0 }
  0xa2   : > { %v1662_v8 = vpop.f32.mrf.mxu3 }
  0xa3   : > { %v412_v31 = vsel %vm404_vm1, %v1662_v8, 0.0  ;;  %v433_v35 = vmul.f32 %v1662_v8, %v1662_v8 }
  0xa4   : > { %v1664_v9 = vpop.f32.mrf.mxu0 }
  0xa5   : > { %v406_v11 = vsel %vm404_vm1, %v1664_v9, 0.0  ;;  %v430_v17 = vmul.f32 %v1664_v9, %v1664_v9  ;;  %v1680_v18 = vpop.f32.mrf.mxu1  ;;  %v444_v42 = vsel %vm404_vm1, %v433_v35, 0.0  ;;  %v323_v35 = vld [vmem:[%s2039_s6] sm:$0x3] }
  0xa6   : > { %v407_v14 = vadd.f32 %v406_v11, %v405_v10  ;;  %v410_v24 = vsel %vm404_vm1, %v1680_v18, 0.0  ;;  %v432_v29 = vmul.f32 %v1680_v18, %v1680_v18 }
  0xa7   : > { %v438_v23 = vsel %vm404_vm1, %v430_v17, 0.0 }
  0xa8   : > { %v409_v20 = vadd.f32 %v408_v16, %v407_v14  ;;  %v439_v26 = vadd.f32 %v438_v23, %v437_v21  ;;  %v442_v34 = vsel %vm404_vm1, %v432_v29, 0.0 }
  0xaa   : > { %v1682_v19 = vpop.f32.mrf.mxu3  ;;  %v411_v27 = vadd.f32 %v410_v24, %v409_v20  ;;  %v441_v32 = vadd.f32 %v440_v28, %v439_v26  ;;  %v535_v28 = vpop.permute.xlu1 %534 }
  0xab   : > { %v414_v36 = vsel %vm404_vm1, %v1682_v19, 0.0  ;;  %v434_v43 = vmul.f32 %v1682_v19, %v1682_v19 }
  0xac   : > { %v413_v33 = vadd.f32 %v412_v31, %v411_v27  ;;  %v443_v38 = vadd.f32 %v442_v34, %v441_v32  ;;  %v575_v27 = vpop.permute.xlu2 %574 }
  0xad   : > { %v446_v49 = vsel %vm404_vm1, %v434_v43, 0.0 }
  0xae   : > { %v415_v39 = vadd.f32 %v414_v36, %v413_v33  ;;  %v445_v47 = vadd.f32 %v444_v42, %v443_v38  ;;  %v324_v36 = vperm.slane %v323_v35, 0 }
  0xb0   : > { %v447_v51 = vadd.f32 %v446_v49, %v445_v47  ;;  %v739_v38 = vadd.s32 64, %v324_v36  ;;  %vm737_vm6 = vcmp.lt.s32.totalorder %v324_v36, 0 }
  0xb2   : > { %v1696_v30 = vpop.f32.mrf.mxu3  ;;  %v530_v31 = vpop.permute.xlu1 %529  ;;  %v1749_v42 = vsel %vm737_vm6, %v739_v38, %v324_v36 }
  0xb3   : > { %v416_v37 = vsel %vm404_vm1, %v1696_v30, 0.0  ;;  %v435_v44 = vmul.f32 %v1696_v30, %v1696_v30  ;;  %1401 = vset.pattern.permute.xlu1 %v1749_v42 }
  0xb4   : > { %v417_v41 = vadd.f32 %v416_v37, %v415_v39  ;;  %v525_v29 = vpop.permute.xlu2 %524  ;;  %v325_v37 = vperm.slane %v323_v35, 1 }
  0xb5   : > { %v448_v50 = vsel %vm404_vm1, %v435_v44, 0.0 }
  0xb6   : > { %v449_v53 = vadd.f32 %v448_v50, %v447_v51  ;;  %vm738_vm5 = vcmp.lt.s32.totalorder %v325_v37, 0  ;;  %v740_v39 = vadd.s32 64, %v325_v37 }
  0xba   : > { %v1707_v40 = vpop.f32.mrf.mxu3  ;;  %v520_v33 = vpop.permute.xlu1 %519 }
  0xbb   : > { %v418_v45 = vsel %vm404_vm1, %v1707_v40, 0.0  ;;  %v436_v48 = vmul.f32 %v1707_v40, %v1707_v40 }
  0xbc   : > { %v419_v46 = vadd.f32 %v418_v45, %v417_v41  ;;  %v567_v32 = vpop.permute.xlu2 %566  ;;  %v1747_v41 = vsel %vm738_vm5, %v740_v39, %v325_v37 }
  0xbd   : > { %v450_v52 = vsel %vm404_vm1, %v436_v48, 0.0  ;;  %1402 = vset.pattern.permute.xlu2 %v1747_v41 }
  0xbe   : > { %420 = vadd.xlane.f32.xlu0 %v419_v46  ;;  %v451_v54 = vadd.f32 %v450_v52, %v449_v53 }
  0xc2   : > { %v515_v44 = vpop.permute.xlu1 %514 }
  0xc4   : > { %v563_v34 = vpop.permute.xlu2 %562 }
  0xc6   : > { %452 = vadd.xlane.f32.xlu0 %v451_v54 }
  0xca   : > { %v510_v61 = vpop.permute.xlu1 %509 }
  0xcc   : > { %v559_v45 = vpop.permute.xlu2 %558 }
  0xda   : > { %570 = vperm.xlu0 %1399, %v304_v25  }
  0xe2   : > { %546 = vperm.xlu0 %1399, %v298_v60  }
  0xea   : > { %1403 = vset.pattern.permute.xlu0 %v1749_v42 }
 0x131   : > { %v421_v62 = vpop.xlane.xlu0 %420 }
 0x132   : > { %v422_v63 = vrot.slane %v421_v62, 4 }
 0x134   : > { %v423_v0 = vadd.f32 %v422_v63, %v421_v62 }
 0x136   : > { %v424_v1 = vrot.slane %v423_v0, 2 }
 0x138   : > { %v425_v2 = vadd.f32 %v424_v1, %v423_v0  ;;  %v555_v0 = vpop.permute.xlu2 %554 }
 0x139   : > { %v453_v3 = vpop.xlane.xlu0 %452 }
 0x13a   : > { %v454_v4 = vrot.slane %v453_v3, 4  ;;  %v426_v5 = vrot.slane %v425_v2, 1 }
 0x13c   : > { %v455_v10 = vadd.f32 %v454_v4, %v453_v3  ;;  %v427_v11 = vadd.f32 %v426_v5, %v425_v2  ;;  %v505_v5 = vpop.permute.xlu1 %504 }
 0x13e   : > { %v456_v12 = vrot.slane %v455_v10, 2  ;;  %1346 = vpush %v427_v11 }
 0x140   : > { %v457_v14 = vadd.f32 %v456_v12, %v455_v10 }
 0x142   : > { %v458_v15 = vrot.slane %v457_v14, 1 }
 0x144   : > { %v459_v16 = vadd.f32 %v458_v15, %v457_v14  ;;  %v551_v15 = vpop.permute.xlu2 %550 }
 0x146   : > { %1348 = vpush %v459_v16 }
 0x14c   : > { %v571_v60 = vpop.permute.xlu0 %570 }
 0x16f   : > { %s1347_s16 = spop %1346 }
 0x170   : > { %s1740_s17 = smul.f32 0.00024414063, %s1347_s16 }
 0x172   : > { %s463_s18 = smul.f32 %s1740_s17, %s1740_s17  ;;  %v466_v43 = vstv %s1740_s17 }
 0x173   : > { %v471_v46 = vsub.f32 %v1662_v8, %v466_v43  ;;  %v472_v47 = vsub.f32 %v1682_v19, %v466_v43  ;;  %v473_v48 = vsub.f32 %v1696_v30, %v466_v43  ;;  %v474_v49 = vsub.f32 %v1707_v40, %v466_v43 }
 0x174   : > { %v467_v51 = vsub.f32 %v1658_v6, %v466_v43  ;;  %v468_v3 = vsub.f32 %v1664_v9, %v466_v43  ;;  %v470_v11 = vsub.f32 %v1680_v18, %v466_v43 }
 0x177   : > { %s1349_s19 = spop %1348 }
 0x178   : > { %s462_s20 = smul.f32 0.00024414063, %s1349_s19 }
 0x17a   : > { %s464_s21 = ssub.f32 %s462_s20, %s463_s18  ;;  %s1823_s18 = scalar_lea.vmem %s2033_s0, %s1331_s15 }
 0x17b   : > { %s1185_s15 = scalar_lea.hbm %s2040_s7, %s1339_s8 }
 0x17c   : > { %s465_s23 = smax.f32 %s1547_s22, %s464_s21  ;;  %s284_s22 = sand.u32 1, %s1535_s25  }
 0x17d   : > { %s475_s29 = sadd.f32 1e-08, %s465_s23  ;;  %s1267_s23 = sshll.u32 %s284_s22, 7 }
 0x17e   : > { %s1188_s17 = sshll.u32 %s1185_s15, 4  ;;  %s1501_s21 = scalar_lea.hbm %s2040_s7, 256  ;;  %s1189_s17 = int_to_ptr.hbm [resolvable:$true] %s1188_s17 }
 0x17f   : > { %v476_v17 = vstv %s475_s29  ;;  %s1967_s29 = scalar_lea.vmem [#allocation2], %s1267_s23  ;;  %s1495_s13 = sshra.s32 %s1189_s17, 4  ;;  %s1496_s13 = int_to_ptr.hbm [resolvable:$true] %s1495_s13 }
 0x180   : > { %1415 = vrsqrt.f32 %v476_v17  ;;  %vm483_vm3 = vweird.f32 %v476_v17  ;;  %s1186_s16 = sshll.u32 %s1967_s29, 4  ;;  %s1497_s28 = scalar_lea.hbm %s1496_s13, 128  ;;  %s1187_s16 = int_to_ptr.vmem [resolvable:$true] %s1186_s16 }
 0x181   : > { %p1498_p11 = scmp.ne.s32.totalorder %s1496_s13, %s1497_s28  ;;  %p1502_p0 = scmp.lt.s32.totalorder %s1496_s13, %s2040_s7 }
 0x182   : > { %p1503_p1 = scmp.lt.s32.totalorder %s1501_s21, %s1497_s28 }
 0x183   : > { %p1499_p12 = pnand %p1498_p11, %p1628_p5 }
 0x184   : > { %p1504_p2 = por %p1503_p1, %p1502_p0 }
 0x185   : > { %p1500_p13 = pneg %p1499_p12 }
 0x186   : > { %v1416_v20 = vpop.eup %1415 }
 0x187   : > { %v478_v21 = vmul.f32 %v1416_v20, %v476_v17  ;;  %vm484_vm2 = vweird.f32 %v1416_v20  ;;  %p1505_p3 = pnand %p1504_p2, %p1500_p13 }
 0x188   : > { %vm485_vm4 = vmor %vm483_vm3, %vm484_vm2 }
 0x189   : > { %v479_v22 = vmul.f32 %v1416_v20, %v478_v21 }
 0x18b   : > { %v480_v23 = vmul.f32 0.5, %v479_v22 }
 0x18d   : > { %v481_v24 = vsub.f32 1.5, %v480_v23 }
 0x18f   : > { %v482_v25 = vmul.f32 %v1416_v20, %v481_v24 }
 0x191   : > { %v486_v26 = vsel %vm485_vm4, %v1416_v20, %v482_v25 }
 0x192   : > { %1350 = vpush %v486_v26  ;;  %v469_v26 = vsub.f32 %v1660_v7, %v466_v43 }
 0x1c3   : > { %s1351_s14 = spop %1350 }
 0x1c4   : > { %v488_v50 = vstv %s1351_s14 }
 0x1c5   : > { %v493_v52 = vmul.f32 %v488_v50, %v471_v46  ;;  %v494_v53 = vmul.f32 %v488_v50, %v472_v47  ;;  %v495_v54 = vmul.f32 %v488_v50, %v473_v48  ;;  %v496_v55 = vmul.f32 %v488_v50, %v474_v49 }
 0x1c6   : > { %v1760_v56 = vmul.f32 %v488_v50, %v467_v51  ;;  %v490_v4 = vmul.f32 %v488_v50, %v468_v3  ;;  %v492_v17 = vmul.f32 %v488_v50, %v470_v11  ;;  %v491_v18 = vmul.f32 %v488_v50, %v469_v26 }
 0x1c7   : > { %v541_v57 = vmul.f32 %v520_v33, %v493_v52  ;;  %v542_v58 = vmul.f32 %v525_v29, %v494_v53  ;;  %v543_v59 = vmul.f32 %v530_v31, %v495_v54  ;;  %v544_v8 = vmul.f32 %v535_v28, %v496_v55 }
 0x1c8   : > { %v538_v12 = vmul.f32 %v505_v5, %v490_v4  ;;  %v540_v24 = vmul.f32 %v515_v44, %v492_v17 }
 0x1c9   : > { %v582_v19 = vadd.f32 %v567_v32, %v542_v58  ;;  %v584_v62 = vadd.f32 %v575_v27, %v544_v8  ;;  %v583_v30 = vadd.f32 %v571_v60, %v543_v59  ;;  %v581_v63 = vadd.f32 %v563_v34, %v541_v57 }
 0x1ca   : > { %v578_v23 = vadd.f32 %v551_v15, %v538_v12  ;;  %v580_v29 = vadd.f32 %v559_v45, %v540_v24  ;;  %v539_v34 = vmul.f32 %v510_v61, %v491_v18  ;;  %v547_v12 = vpop.permute.xlu0 %546 }
 0x1cb   : > { %v1305_v40 = vmul.f32 -1.442695, %v582_v19  ;;  %v1307_v1 = vmul.f32 -1.442695, %v584_v62  ;;  %v1306_v6 = vmul.f32 -1.442695, %v583_v30 }
 0x1cc   : > { %v1304_v2 = vmul.f32 -1.442695, %v581_v63  ;;  %v1301_v27 = vmul.f32 -1.442695, %v578_v23  ;;  %v1303_v39 = vmul.f32 -1.442695, %v580_v29  ;;  %v579_v50 = vadd.f32 %v555_v0, %v539_v34  ;;  %v500_v0 = vpop.permute.xlu1 %499 }
 0x1cd   : > { %1417 = vpow2.f32 %v1305_v40  ;;  %v537_v5 = vmul.f32 %v500_v0, %v1760_v56 }
 0x1ce   : > { %1419 = vpow2.f32 %v1307_v1  ;;  %v1302_v62 = vmul.f32 -1.442695, %v579_v50 }
 0x1cf   : > { %1421 = vpow2.f32 %v1306_v6 }
 0x1d0   : > { %1423 = vpow2.f32 %v1304_v2 }
 0x1d3   : > { %v1418_v10 = vpop.eup %1417 }
 0x1d4   : > { %v1420_v14 = vpop.eup %1419  ;;  %v1764_v9 = vadd.f32 1.0, %v1418_v10 }
 0x1d5   : > { %v1422_v16 = vpop.eup %1421  ;;  %v616_v20 = vadd.f32 1.0, %v1420_v14 }
 0x1d6   : > { %v1424_v21 = vpop.eup %1423  ;;  %v615_v22 = vadd.f32 1.0, %v1422_v16  ;;  %v703_v2 = vand.u32 2147483648, %v1764_v9  ;;  %vm697_vm2 = vweird.f32 %v1764_v9  ;;  %v701_v10 = vand.u32 2147483647, %v1764_v9 }
 0x1d7   : > { %1425 = vrcp.f32 %v616_v20  ;;  %v1766_v25 = vadd.f32 1.0, %v1424_v21  ;;  %v733_v37 = vand.u32 2147483648, %v616_v20  ;;  %v731_v44 = vand.u32 2147483647, %v616_v20 }
 0x1d8   : > { %1427 = vrcp.f32 %v615_v22  ;;  %v718_v46 = vand.u32 2147483648, %v615_v22  ;;  %v716_v45 = vand.u32 2147483647, %v615_v22  ;;  %vm727_vm9 = vweird.f32 %v616_v20 }
 0x1d9   : > { %1429 = vrcp.f32 %v1764_v9  ;;  %v734_v52 = vor.u32 1.1754944e-38, %v733_v37  ;;  %vm712_vm11 = vweird.f32 %v615_v22  ;;  %vm732_vm12 = vcmp.eq.f32.partialorder %v731_v44, 8.507059e+37 }
 0x1da   : > { %1431 = vrcp.f32 %v1766_v25  ;;  %v719_v57 = vor.u32 1.1754944e-38, %v718_v46  ;;  %vm717_vm14 = vcmp.eq.f32.partialorder %v716_v45, 8.507059e+37  ;;  %v688_v11 = vand.u32 2147483648, %v1766_v25 }
 0x1db   : > { %1433 = vpow2.f32 %v1301_v27  ;;  %vm682_vm4 = vweird.f32 %v1766_v25  ;;  %v686_v14 = vand.u32 2147483647, %v1766_v25  ;;  %v704_v17 = vor.u32 1.1754944e-38, %v703_v2 }
 0x1dc   : > { %1435 = vpow2.f32 %v1303_v39  ;;  %v577_v21 = vadd.f32 %v547_v12, %v537_v5  ;;  %vm702_vm6 = vcmp.eq.f32.partialorder %v701_v10, 8.507059e+37  ;;  %v803_v10 = vld [vmem:[%s1823_s18 + $0x60] sm:$0xff] }
 0x1dd   : > { %v1426_v28 = vpop.eup %1425 }
 0x1de   : > { %v1428_v31 = vpop.eup %1427  ;;  %v723_v32 = vmul.f32 %v1426_v28, %v616_v20  ;;  %vm728_vm7 = vweird.f32 %v1426_v28  ;;  %v1300_v27 = vmul.f32 -1.442695, %v577_v21 }
 0x1df   : > { %v708_v33 = vmul.f32 %v1428_v31, %v615_v22  ;;  %v1771_v36 = vpop.eup %1429  ;;  %vm713_vm8 = vweird.f32 %v1428_v31  ;;  %vm729_vm10 = vmor %vm727_vm9, %vm728_vm7  ;;  %v689_v22 = vor.u32 1.1754944e-38, %v688_v11  ;;  %vm687_vm7 = vcmp.eq.f32.partialorder %v686_v14, 8.507059e+37  ;;  %v804_v11 = vld [vmem:[%s1823_s18 + $0x68] sm:$0xff]  ;;  %v799_v14 = vld [vmem:[%s1823_s18 + $0x40] sm:$0xff] }
 0x1e0   : > { %v724_v35 = vsub.f32 1.0, %v723_v32  ;;  %v1773_v7 = vpop.eup %1431  ;;  %v693_v49 = vmul.f32 %v1771_v36, %v1764_v9  ;;  %vm714_vm13 = vmor %vm712_vm11, %vm713_vm8  ;;  %vm698_vm15 = vweird.f32 %v1771_v36 }
 0x1e1   : > { %v709_v38 = vsub.f32 1.0, %v708_v33  ;;  %v1434_v51 = vpop.eup %1433  ;;  %v678_v54 = vmul.f32 %v1773_v7, %v1766_v25  ;;  %vm683_vm0 = vweird.f32 %v1773_v7  ;;  %vm699_vm3 = vmor %vm697_vm2, %vm698_vm15 }
 0x1e2   : > { %v725_v43 = vmul.f32 %v1426_v28, %v724_v35  ;;  %v1779_v8 = vadd.f32 1.0, %v1434_v51  ;;  %v694_v19 = vsub.f32 1.0, %v693_v49  ;;  %v1436_v30 = vpop.eup %1435  ;;  %vm684_vm5 = vmor %vm682_vm4, %vm683_vm0 }
 0x1e3   : > { %v710_v47 = vmul.f32 %v1428_v31, %v709_v38  ;;  %v679_v61 = vsub.f32 1.0, %v678_v54  ;;  %v1784_v1 = vadd.f32 1.0, %v1436_v30 }
 0x1e4   : > { %v726_v48 = vadd.f32 %v1426_v28, %v725_v43  ;;  %1437 = vrcp.f32 %v1779_v8  ;;  %v695_v63 = vmul.f32 %v1771_v36, %v694_v19  ;;  %v643_v33 = vand.u32 2147483648, %v1779_v8 }
 0x1e5   : > { %v711_v53 = vadd.f32 %v1428_v31, %v710_v47  ;;  %v680_v40 = vmul.f32 %v1773_v7, %v679_v61  ;;  %1439 = vpow2.f32 %v1302_v62  ;;  %vm637_vm9 = vweird.f32 %v1779_v8 }
 0x1e6   : > { %v730_v55 = vsel %vm729_vm10, %v1426_v28, %v726_v48  ;;  %v696_v6 = vadd.f32 %v1771_v36, %v695_v63  ;;  %1441 = vrcp.f32 %v1784_v1  ;;  %v641_v34 = vand.u32 2147483647, %v1779_v8 }
 0x1e7   : > { %v735_v58 = vsel %vm732_vm12, %v734_v52, %v730_v55  ;;  %v715_v59 = vsel %vm714_vm13, %v1428_v31, %v711_v53  ;;  %v681_v3 = vadd.f32 %v1773_v7, %v680_v40  ;;  %v644_v39 = vor.u32 1.1754944e-38, %v643_v33 }
 0x1e8   : > { %789 = vperm.xlu2 %1402, %v735_v58   ;;  %786 = vperm.xlu1 %1401, %v735_v58   ;;  %v720_v60 = vsel %vm717_vm14, %v719_v57, %v715_v59  ;;  %v700_v16 = vsel %vm699_vm3, %v1771_v36, %v696_v6  ;;  %vm642_vm11 = vcmp.eq.f32.partialorder %v641_v34, 8.507059e+37  ;;  %v673_v47 = vand.u32 2147483648, %v1784_v1 }
 0x1e9   : > { %780 = vperm.xlu0 %1403, %v720_v60   ;;  %v685_v56 = vsel %vm684_vm5, %v1773_v7, %v681_v3  ;;  %v705_v23 = vsel %vm702_vm6, %v704_v17, %v700_v16  ;;  %vm667_vm13 = vweird.f32 %v1784_v1  ;;  %v671_v45 = vand.u32 2147483647, %v1784_v1 }
 0x1ea   : > { %v1438_v4 = vpop.eup %1437  ;;  %v690_v24 = vsel %vm687_vm7, %v689_v22, %v685_v56  ;;  %v674_v50 = vor.u32 1.1754944e-38, %v673_v47 }
 0x1eb   : > { %v1440_v15 = vpop.eup %1439  ;;  %v633_v20 = vmul.f32 %v1438_v4, %v1779_v8  ;;  %vm638_vm8 = vweird.f32 %v1438_v4  ;;  %vm672_vm15 = vcmp.eq.f32.partialorder %v671_v45, 8.507059e+37  ;;  %v793_v45 = vld [vmem:[%s1823_s18 + $0x10] sm:$0xff] }
 0x1ec   : > { %v611_v9 = vadd.f32 1.0, %v1440_v15  ;;  %v1442_v25 = vpop.eup %1441  ;;  %vm639_vm10 = vmor %vm637_vm9, %vm638_vm8  ;;  %v800_v15 = vld [vmem:[%s1823_s18 + $0x48] sm:$0xff]  ;;  %vm904_vm9 = vcmask 1041408  }
 0x1ed   : > { %v634_v26 = vsub.f32 1.0, %v633_v20  ;;  %v663_v18 = vmul.f32 %v1442_v25, %v1784_v1  ;;  %vm668_vm12 = vweird.f32 %v1442_v25  ;;  %v805_v1 = vld [vmem:[%s1823_s18 + $0x70] sm:$0xff] }
 0x1ee   : > { %1443 = vrcp.f32 %v611_v9  ;;  %vm669_vm14 = vmor %vm667_vm13, %vm668_vm12  ;;  %v658_v54 = vand.u32 2147483648, %v611_v9  ;;  %vm652_vm2 = vweird.f32 %v611_v9  ;;  %v656_v55 = vand.u32 2147483647, %v611_v9 }
 0x1ef   : > { %v635_v28 = vmul.f32 %v1438_v4, %v634_v26  ;;  %1445 = vpow2.f32 %v1300_v27  ;;  %v664_v29 = vsub.f32 1.0, %v663_v18 }
 0x1f0   : > { %1405 = vset.pattern.permute.xlu2 %v1749_v42  ;;  %1404 = vset.pattern.permute.xlu1 %v1747_v41  ;;  %v659_v59 = vor.u32 1.1754944e-38, %v658_v54  ;;  %vm657_vm4 = vcmp.eq.f32.partialorder %v656_v55, 8.507059e+37  ;;  %v791_v54 = vld [vmem:[%s1823_s18] sm:$0xff]  ;;  %v792_v55 = vld [vmem:[%s1823_s18 + $0x8] sm:$0xff] }
 0x1f1   : > { %1406 = vset.pattern.permute.xlu0 %v1747_v41  ;;  %v636_v32 = vadd.f32 %v1438_v4, %v635_v28  ;;  %v665_v36 = vmul.f32 %v1442_v25, %v664_v29 }
 0x1f3   : > { %v640_v38 = vsel %vm639_vm10, %v1438_v4, %v636_v32  ;;  %v666_v44 = vadd.f32 %v1442_v25, %v665_v36  ;;  %v797_v32 = vld [vmem:[%s1823_s18 + $0x30] sm:$0xff]  ;;  %vm879_vm10 = vcmask 15360  }
 0x1f4   : > { %v1444_v31 = vpop.eup %1443  ;;  %v645_v43 = vsel %vm642_vm11, %v644_v39, %v640_v38  ;;  %v796_v38 = vld [vmem:[%s1823_s18 + $0x28] sm:$0xff]  ;;  %v795_v39 = vld [vmem:[%s1823_s18 + $0x20] sm:$0xff] }
 0x1f5   : > { %v1446_v35 = vpop.eup %1445  ;;  %v648_v37 = vmul.f32 %v1444_v31, %v611_v9  ;;  %v670_v48 = vsel %vm669_vm14, %v1442_v25, %v666_v44  ;;  %vm653_vm0 = vweird.f32 %v1444_v31  ;;  %v802_v25 = vld [vmem:[%s1823_s18 + $0x58] sm:$0xff] }
 0x1f6   : > { %v609_v7 = vadd.f32 1.0, %v1446_v35  ;;  %v675_v51 = vsel %vm672_vm15, %v674_v50, %v670_v48  ;;  %vm654_vm3 = vmor %vm652_vm2, %vm653_vm0  ;;  %v794_v48 = vld [vmem:[%s1823_s18 + $0x18] sm:$0xff] }
 0x1f7   : > { %v649_v46 = vsub.f32 1.0, %v648_v37 }
 0x1f8   : > { %774 = vperm.xlu2 %1405, %v705_v23   ;;  %783 = vperm.xlu1 %1404, %v720_v60   ;;  %1447 = vrcp.f32 %v609_v7  ;;  %v628_v62 = vand.u32 2147483648, %v609_v7  ;;  %vm622_vm6 = vweird.f32 %v609_v7  ;;  %v626_v30 = vand.u32 2147483647, %v609_v7 }
 0x1f9   : > { %771 = vperm.xlu0 %1406, %v690_v24   ;;  %v650_v49 = vmul.f32 %v1444_v31, %v649_v46 }
 0x1fa   : > { %v629_v40 = vor.u32 1.1754944e-38, %v628_v62  ;;  %vm627_vm8 = vcmp.eq.f32.partialorder %v626_v30, 8.507059e+37 }
 0x1fb   : > { %v651_v52 = vadd.f32 %v1444_v31, %v650_v49 }
 0x1fd   : > { %v655_v57 = vsel %vm654_vm3, %v1444_v31, %v651_v52  ;;  %v798_v31 = vld [vmem:[%s1823_s18 + $0x38] sm:$0xff] }
 0x1fe   : > { %v1448_v53 = vpop.eup %1447  ;;  %v660_v8 = vsel %vm657_vm4, %v659_v59, %v655_v57 }
 0x1ff   : > { %v618_v58 = vmul.f32 %v1448_v53, %v609_v7  ;;  %vm623_vm5 = vweird.f32 %v1448_v53 }
 0x200   : > { %768 = vperm.xlu2 %1405, %v690_v24   ;;  %777 = vperm.xlu1 %1404, %v705_v23   ;;  %vm624_vm7 = vmor %vm622_vm6, %vm623_vm5  ;;  %v801_v24 = vld [vmem:[%s1823_s18 + $0x50] sm:$0xff] }
 0x201   : > { %1409 = vset.pattern.permute.xlu0 %v1749_v42  ;;  %v619_v60 = vsub.f32 1.0, %v618_v58 }
 0x203   : > { %v620_v19 = vmul.f32 %v1448_v53, %v619_v60 }
 0x205   : > { %v621_v61 = vadd.f32 %v1448_v53, %v620_v19 }
 0x207   : > { %v625_v63 = vsel %vm624_vm7, %v1448_v53, %v621_v61 }
 0x208   : > { %1408 = vset.pattern.permute.xlu2 %v1747_v41  ;;  %1407 = vset.pattern.permute.xlu1 %v1749_v42  ;;  %v630_v0 = vsel %vm627_vm8, %v629_v40, %v625_v63 }
 0x209   : > { %750 = vperm.xlu0 %1409, %v645_v43  }
 0x210   : > { %765 = vperm.xlu2 %1408, %v675_v51   ;;  %762 = vperm.xlu1 %1407, %v675_v51  }
 0x211   : > { %1412 = vset.pattern.permute.xlu0 %v1545_v13 }
 0x218   : > { %759 = vperm.xlu2 %1408, %v660_v8   ;;  %756 = vperm.xlu1 %1407, %v660_v8  }
 0x220   : > { %1411 = vset.pattern.permute.xlu2 %v1749_v42  ;;  %1410 = vset.pattern.permute.xlu1 %v1747_v41  ;;  %v806_v42 = vld [vmem:[%s1823_s18 + $0x78] sm:$0xff]  ;;  %s1174_s18 = scalar_lea.sflag [#allocation3], %s284_s22 }
 0x228   : > { %753 = vperm.xlu1 %1410, %v645_v43   ;;  %744 = vperm.xlu2 %1411, %v630_v0  }
 0x230   : > { %747 = vperm.xlu1 %1410, %v630_v0   ;;  %1413 = vset.pattern.permute.xlu2 %v1545_v13 }
 0x238   : > { %1414 = vset.pattern.permute.xlu1 %v1545_v13 }
 0x242   : > { %v790_v41 = vpop.permute.xlu2 %789 }
 0x243   : > { %v1827_v2 = vmul.f32 %v806_v42, %v790_v41 }
 0x252   : > { %v775_v4 = vpop.permute.xlu2 %774 }
 0x253   : > { %v1851_v27 = vmul.f32 %v801_v24, %v775_v4  ;;  %v320_v24 = vld [vmem:[%s2038_s5 + $0x28] sm:$0xff] }
 0x25a   : > { %v787_v6 = vpop.permute.xlu1 %786  ;;  %v769_v12 = vpop.permute.xlu2 %768 }
 0x25b   : > { %v1829_v3 = vmul.f32 %v805_v1, %v787_v6  ;;  %v781_v5 = vpop.permute.xlu0 %780  ;;  %v1841_v21 = vmul.f32 %v799_v14, %v769_v12 }
 0x25c   : > { %v1837_v17 = vmul.f32 %v803_v10, %v781_v5 }
 0x25d   : > { %v844_v13 = vadd.f32 %v1827_v2, %v1829_v3 }
 0x25f   : > { %845 = vadd.xlane.f32.xlu2 %v844_v13 }
 0x26a   : > { %v784_v16 = vpop.permute.xlu1 %783  ;;  %v766_v29 = vpop.permute.xlu2 %765 }
 0x26b   : > { %v1839_v56 = vmul.f32 %v804_v11, %v784_v16  ;;  %v772_v20 = vpop.permute.xlu0 %771  ;;  %v1859_v34 = vmul.f32 %v798_v31, %v766_v29  ;;  %v314_v11 = vld [vmem:[%s2037_s4] sm:$0x3]  ;;  %v317_v16 = vld [vmem:[%s2038_s5 + $0x10] sm:$0xff] }
 0x26c   : > { %v1843_v22 = vmul.f32 %v800_v15, %v772_v20  ;;  %v315_v15 = vld [vmem:[%s2038_s5] sm:$0xff]  ;;  %v318_v20 = vld [vmem:[%s2038_s5 + $0x18] sm:$0xff] }
 0x26d   : > { %v841_v23 = vadd.f32 %v1839_v56, %v1837_v17 }
 0x26e   : > { %v835_v9 = vadd.f32 %v1843_v22, %v1841_v21 }
 0x26f   : > { %842 = vadd.xlane.f32.xlu0 %v841_v23  ;;  %v316_v23 = vld [vmem:[%s2038_s5 + $0x8] sm:$0xff] }
 0x270   : > { %836 = vadd.xlane.f32.xlu2 %v835_v9  ;;  %v319_v9 = vld [vmem:[%s2038_s5 + $0x20] sm:$0xff] }
 0x272   : > { %v778_v26 = vpop.permute.xlu1 %777  ;;  %v760_v37 = vpop.permute.xlu2 %759 }
 0x273   : > { %v1853_v18 = vmul.f32 %v802_v25, %v778_v26  ;;  %v1867_v43 = vmul.f32 %v796_v38, %v760_v37  ;;  %v321_v25 = vld [vmem:[%s2038_s5 + $0x30] sm:$0xff]  ;;  %v322_v26 = vld [vmem:[%s2038_s5 + $0x38] sm:$0xff] }
 0x275   : > { %v838_v28 = vadd.f32 %v1853_v18, %v1851_v27 }
 0x277   : > { %839 = vadd.xlane.f32.xlu1 %v838_v28 }
 0x27b   : > { %v751_v47 = vpop.permute.xlu0 %750 }
 0x27c   : > { %v1875_v50 = vmul.f32 %v793_v45, %v751_v47 }
 0x282   : > { %v763_v33 = vpop.permute.xlu1 %762  ;;  %v745_v53 = vpop.permute.xlu2 %744 }
 0x283   : > { %v1861_v35 = vmul.f32 %v797_v32, %v763_v33  ;;  %v1883_v58 = vmul.f32 %v791_v54, %v745_v53 }
 0x285   : > { %v832_v36 = vadd.f32 %v1859_v34, %v1861_v35 }
 0x287   : > { %833 = vadd.xlane.f32.xlu2 %v832_v36 }
 0x28a   : > { %v757_v7 = vpop.permute.xlu1 %756 }
 0x28b   : > { %v1869_v44 = vmul.f32 %v795_v39, %v757_v7 }
 0x28d   : > { %v829_v46 = vadd.f32 %v1867_v43, %v1869_v44 }
 0x28f   : > { %830 = vadd.xlane.f32.xlu0 %v829_v46 }
 0x29a   : > { %v754_v49 = vpop.permute.xlu1 %753 }
 0x29b   : > { %v1877_v51 = vmul.f32 %v794_v48, %v754_v49 }
 0x29d   : > { %v826_v52 = vadd.f32 %v1877_v51, %v1875_v50 }
 0x29f   : > { %827 = vadd.xlane.f32.xlu1 %v826_v52 }
 0x2a2   : > { %v748_v57 = vpop.permute.xlu1 %747 }
 0x2a3   : > { %v1885_v59 = vmul.f32 %v792_v55, %v748_v57 }
 0x2a5   : > { %v823_v8 = vadd.f32 %v1885_v59, %v1883_v58 }
 0x2a7   : > { %824 = vadd.xlane.f32.xlu2 %v823_v8 }
 0x2d2   : > { %v846_v60 = vpop.xlane.xlu2 %845 }
 0x2d3   : > { %v854_v19 = vmul.f32 0.00390625, %v846_v60 }
 0x2d5   : > { %866 = vmatpush.msrb.mxu1 %v854_v19 }
 0x2e2   : > { %v843_v61 = vpop.xlane.xlu0 %842 }
 0x2e3   : > { %v853_v62 = vmul.f32 0.00390625, %v843_v61  ;;  %v837_v30 = vpop.xlane.xlu2 %836 }
 0x2e4   : > { %v851_v0 = vmul.f32 0.00390625, %v837_v30 }
 0x2e5   : > { %867 = vmatpush.msrb.mxu1 %v853_v62 }
 0x2ea   : > { %v840_v63 = vpop.xlane.xlu1 %839 }
 0x2eb   : > { %v852_v40 = vmul.f32 0.00390625, %v840_v63 }
 0x2ed   : > { %868 = vmatpush.msrb.mxu1 %v852_v40 }
 0x2ef   : > { %869 = vmatpush.msrb.mxu1 %v851_v0 }
 0x2fa   : > { %v834_v41 = vpop.xlane.xlu2 %833 }
 0x2fb   : > { %v850_v42 = vmul.f32 0.00390625, %v834_v41 }
 0x2fd   : > { %870 = vmatpush.msrb.mxu1 %v850_v42 }
 0x302   : > { %v831_v1 = vpop.xlane.xlu0 %830 }
 0x303   : > { %v849_v6 = vmul.f32 0.00390625, %v831_v1 }
 0x305   : > { %871 = vmatpush.msrb.mxu1 %v849_v6 }
 0x312   : > { %v828_v13 = vpop.xlane.xlu1 %827 }
 0x313   : > { %v848_v4 = vmul.f32 0.00390625, %v828_v13 }
 0x315   : > { %872 = vmatpush.msrb.mxu1 %v848_v4 }
 0x31a   : > { %v825_v5 = vpop.xlane.xlu2 %824 }
 0x31b   : > { %v847_v10 = vmul.f32 0.00390625, %v825_v5 }
 0x31d   : > { %873 = vmatpush.msrb.mxu1 %v847_v10 }
 0x31e   : > { %1308 = vmatmul.msk.f32.vlgmr.msrb.gmra.mxu1 %vm404_vm1, %v314_v11 }
 0x39b   : > { %v875_v12 = vpop.f32.mrf.mxu1 }
 0x39c   : > { %v878_v14 = vmax.f32 %v875_v12, 0.0 }
 0x39e   : > { %1309 = vmatpush.msk.msrb.mxu0 %vm904_vm9, %v878_v14  ;;  %1344 = vmatpush.msk.msra.mxu1 %vm904_vm9, %v878_v14 }
 0x39f   : > { %1345 = vmatpush.msk.msra.mxu2 %vm904_vm9, %v878_v14  ;;  %1310 = vmatmul.msk.f32.vlgmr.msrb.gmra.mxu0 %vm879_vm10, %v315_v15 }
 0x3a0   : > { %1312 = vmatmul.msk.f32.vlgmr.msra.gmra.mxu1 %vm879_vm10, %v317_v16  ;;  %1313 = vmatmul.msk.f32.vlgmr.msra.gmra.mxu2 %vm879_vm10, %v318_v20 }
 0x3a7   : > { %1311 = vmatmul.msk.f32.gmra.mxu0 %vm879_vm10, %v316_v23 }
 0x3a8   : > { %1314 = vmatmul.msk.f32.gmra.mxu2 %vm879_vm10, %v319_v9 }
 0x3b0   : > { %1315 = vmatmul.msk.f32.gmra.mxu2 %vm879_vm10, %v320_v24 }
 0x3b8   : > { %1316 = vmatmul.msk.f32.gmra.mxu2 %vm879_vm10, %v321_v25 }
 0x3c0   : > { %1317 = vmatmul.msk.f32.gmra.mxu2 %vm879_vm10, %v322_v26 }
 0x41c   : > { %v925_v28 = vpop.f32.mrf.mxu0 }
 0x41d   : > { %v1318_v29 = vmul.f32 -1.442695, %v925_v28  ;;  %v931_v31 = vpop.f32.mrf.mxu1 }
 0x41e   : > { %v1320_v32 = vmul.f32 -1.442695, %v931_v31 }
 0x41f   : > { %1449 = vpow2.f32 %v1318_v29 }
 0x420   : > { %1451 = vpow2.f32 %v1320_v32 }
 0x423   : > { %v934_v33 = vpop.f32.mrf.mxu2 }
 0x424   : > { %v1321_v36 = vmul.f32 -1.442695, %v934_v33  ;;  %v928_v37 = vpop.f32.mrf.mxu0 }
 0x425   : > { %v1450_v38 = vpop.eup %1449  ;;  %v1319_v39 = vmul.f32 -1.442695, %v928_v37 }
 0x426   : > { %v1452_v7 = vpop.eup %1451  ;;  %v973_v46 = vadd.f32 1.0, %v1450_v38  ;;  %1453 = vpow2.f32 %v1321_v36 }
 0x427   : > { %v975_v47 = vadd.f32 1.0, %v1452_v7  ;;  %1455 = vpow2.f32 %v1319_v39 }
 0x428   : > { %1457 = vrcp.f32 %v973_v46  ;;  %vm986_vm1 = vweird.f32 %v973_v46  ;;  %v992_v19 = vand.u32 2147483648, %v973_v46  ;;  %v990_v30 = vand.u32 2147483647, %v973_v46 }
 0x429   : > { %1459 = vrcp.f32 %v975_v47  ;;  %v1022_v61 = vand.u32 2147483648, %v975_v47  ;;  %vm1016_vm12 = vweird.f32 %v975_v47  ;;  %v1020_v40 = vand.u32 2147483647, %v975_v47 }
 0x42a   : > { %v993_v4 = vor.u32 1.1754944e-38, %v992_v19  ;;  %vm991_vm0 = vcmp.eq.f32.partialorder %v990_v30, 8.507059e+37 }
 0x42b   : > { %v937_v45 = vpop.f32.mrf.mxu2  ;;  %v1023_v11 = vor.u32 1.1754944e-38, %v1022_v61  ;;  %vm1021_vm2 = vcmp.eq.f32.partialorder %v1020_v40, 8.507059e+37 }
 0x42c   : > { %v1454_v48 = vpop.eup %1453  ;;  %v1322_v49 = vmul.f32 -1.442695, %v937_v45 }
 0x42d   : > { %v1456_v52 = vpop.eup %1455  ;;  %v1925_v53 = vadd.f32 1.0, %v1454_v48 }
 0x42e   : > { %v1458_v54 = vpop.eup %1457  ;;  %v1927_v55 = vadd.f32 1.0, %v1456_v52  ;;  %1461 = vpow2.f32 %v1322_v49 }
 0x42f   : > { %v1460_v57 = vpop.eup %1459  ;;  %1463 = vrcp.f32 %v1925_v53  ;;  %v982_v8 = vmul.f32 %v1458_v54, %v973_v46  ;;  %vm987_vm11 = vweird.f32 %v1458_v54  ;;  %v1037_v26 = vand.u32 2147483648, %v1925_v53 }
 0x430   : > { %1465 = vrcp.f32 %v1927_v55  ;;  %v1012_v60 = vmul.f32 %v1460_v57, %v975_v47  ;;  %vm1017_vm13 = vweird.f32 %v1460_v57  ;;  %vm1932_vm14 = vmor %vm986_vm1, %vm987_vm11  ;;  %v1035_v31 = vand.u32 2147483647, %v1925_v53 }
 0x431   : > { %v983_v62 = vsub.f32 1.0, %v982_v8  ;;  %vm1018_vm15 = vmor %vm1016_vm12, %vm1017_vm13  ;;  %vm1031_vm4 = vweird.f32 %v1925_v53  ;;  %vm1001_vm5 = vweird.f32 %v1927_v55  ;;  %v1005_v39 = vand.u32 2147483647, %v1927_v55 }
 0x432   : > { %v1013_v63 = vsub.f32 1.0, %v1012_v60  ;;  %v1038_v47 = vor.u32 1.1754944e-38, %v1037_v26  ;;  %v1007_v48 = vand.u32 2147483648, %v1927_v55  ;;  %vm1036_vm8 = vcmp.eq.f32.partialorder %v1035_v31, 8.507059e+37 }
 0x433   : > { %v940_v0 = vpop.f32.mrf.mxu2  ;;  %v984_v41 = vmul.f32 %v1458_v54, %v983_v62  ;;  %vm1006_vm10 = vcmp.eq.f32.partialorder %v1005_v39, 8.507059e+37 }
 0x434   : > { %v1462_v42 = vpop.eup %1461  ;;  %v1323_v1 = vmul.f32 -1.442695, %v940_v0  ;;  %v1014_v6 = vmul.f32 %v1460_v57, %v1013_v63  ;;  %v1008_v19 = vor.u32 1.1754944e-38, %v1007_v48 }
 0x435   : > { %v1464_v5 = vpop.eup %1463  ;;  %v1936_v10 = vadd.f32 1.0, %v1462_v42  ;;  %v985_v12 = vadd.f32 %v1458_v54, %v984_v41 }
 0x436   : > { %v1466_v14 = vpop.eup %1465  ;;  %1467 = vpow2.f32 %v1323_v1  ;;  %v1015_v15 = vadd.f32 %v1460_v57, %v1014_v6  ;;  %v1027_v16 = vmul.f32 %v1464_v5, %v1925_v53  ;;  %vm1032_vm3 = vweird.f32 %v1464_v5 }
 0x437   : > { %1469 = vrcp.f32 %v1936_v10  ;;  %v989_v20 = vsel %vm1932_vm14, %v1458_v54, %v985_v12  ;;  %v997_v28 = vmul.f32 %v1466_v14, %v1927_v55  ;;  %vm1002_vm6 = vweird.f32 %v1466_v14  ;;  %vm1033_vm7 = vmor %vm1031_vm4, %vm1032_vm3 }
 0x438   : > { %v1019_v23 = vsel %vm1018_vm15, %v1460_v57, %v1015_v15  ;;  %v994_v9 = vsel %vm991_vm0, %v993_v4, %v989_v20  ;;  %v1028_v24 = vsub.f32 1.0, %v1027_v16  ;;  %vm1953_vm9 = vmor %vm1001_vm5, %vm1002_vm6  ;;  %v1052_v60 = vand.u32 2147483648, %v1936_v10 }
 0x439   : > { %v1024_v25 = vsel %vm1021_vm2, %v1023_v11, %v1019_v23  ;;  %1103 = vperm.xlu0 %1412, %v994_v9   ;;  %v998_v33 = vsub.f32 1.0, %v997_v28  ;;  %v1050_v62 = vand.u32 2147483647, %v1936_v10  ;;  %vm1046_vm11 = vweird.f32 %v1936_v10 }
 0x43a   : > { %1113 = vperm.xlu2 %1413, %v1024_v25   ;;  %v1029_v29 = vmul.f32 %v1464_v5, %v1028_v24  ;;  %v1053_v1 = vor.u32 1.1754944e-38, %v1052_v60 }
 0x43b   : > { %v943_v32 = vpop.f32.mrf.mxu2  ;;  %v999_v45 = vmul.f32 %v1466_v14, %v998_v33  ;;  %vm1051_vm13 = vcmp.eq.f32.partialorder %v1050_v62, 8.507059e+37 }
 0x43c   : > { %v1468_v36 = vpop.eup %1467  ;;  %v1324_v37 = vmul.f32 -1.442695, %v943_v32  ;;  %v1030_v38 = vadd.f32 %v1464_v5, %v1029_v29 }
 0x43d   : > { %v1470_v7 = vpop.eup %1469  ;;  %v978_v46 = vadd.f32 1.0, %v1468_v36  ;;  %v1000_v54 = vadd.f32 %v1466_v14, %v999_v45 }
 0x43e   : > { %1471 = vpow2.f32 %v1324_v37  ;;  %v1034_v49 = vsel %vm1033_vm7, %v1464_v5, %v1030_v38  ;;  %v1042_v52 = vmul.f32 %v1470_v7, %v1936_v10  ;;  %vm1047_vm1 = vweird.f32 %v1470_v7 }
 0x43f   : > { %1473 = vrcp.f32 %v978_v46  ;;  %v1039_v53 = vsel %vm1036_vm8, %v1038_v47, %v1034_v49  ;;  %v1004_v30 = vsel %vm1953_vm9, %v1466_v14, %v1000_v54  ;;  %vm1048_vm12 = vmor %vm1046_vm11, %vm1047_vm1  ;;  %v1067_v12 = vand.u32 2147483648, %v978_v46 }
 0x440   : > { %1118 = vperm.xlu1 %1414, %v1039_v53   ;;  %v1043_v8 = vsub.f32 1.0, %v1042_v52  ;;  %v1009_v6 = vsel %vm1006_vm10, %v1008_v19, %v1004_v30  ;;  %v1065_v15 = vand.u32 2147483647, %v978_v46  ;;  %vm1061_vm15 = vweird.f32 %v978_v46 }
 0x441   : > { %v1068_v9 = vor.u32 1.1754944e-38, %v1067_v12 }
 0x442   : > { %v1044_v61 = vmul.f32 %v1470_v7, %v1043_v8  ;;  %vm1066_vm2 = vcmp.eq.f32.partialorder %v1065_v15, 8.507059e+37 }
 0x443   : > { %v946_v63 = vpop.f32.mrf.mxu2 }
 0x444   : > { %v1472_v40 = vpop.eup %1471  ;;  %v1325_v55 = vmul.f32 -1.442695, %v946_v63  ;;  %v1045_v0 = vadd.f32 %v1470_v7, %v1044_v61 }
 0x445   : > { %v1474_v41 = vpop.eup %1473  ;;  %v979_v42 = vadd.f32 1.0, %v1472_v40 }
 0x446   : > { %1475 = vpow2.f32 %v1325_v55  ;;  %v1049_v13 = vsel %vm1048_vm12, %v1470_v7, %v1045_v0  ;;  %v1057_v4 = vmul.f32 %v1474_v41, %v978_v46  ;;  %vm1062_vm14 = vweird.f32 %v1474_v41 }
 0x447   : > { %1477 = vrcp.f32 %v979_v42  ;;  %v1054_v5 = vsel %vm1051_vm13, %v1053_v1, %v1049_v13  ;;  %vm1063_vm0 = vmor %vm1061_vm15, %vm1062_vm14  ;;  %v1082_v29 = vand.u32 2147483648, %v979_v42  ;;  %v1080_v32 = vand.u32 2147483647, %v979_v42 }
 0x448   : > { %1123 = vperm.xlu2 %1413, %v1054_v5   ;;  %1108 = vperm.xlu1 %1414, %v1009_v6   ;;  %v1058_v11 = vsub.f32 1.0, %v1057_v4  ;;  %vm1076_vm4 = vweird.f32 %v979_v42 }
 0x449   : > { %v1083_v37 = vor.u32 1.1754944e-38, %v1082_v29  ;;  %vm1081_vm6 = vcmp.eq.f32.partialorder %v1080_v32, 8.507059e+37 }
 0x44a   : > { %v1059_v14 = vmul.f32 %v1474_v41, %v1058_v11 }
 0x44c   : > { %v1476_v16 = vpop.eup %1475  ;;  %v1060_v10 = vadd.f32 %v1474_v41, %v1059_v14 }
 0x44d   : > { %v1478_v20 = vpop.eup %1477  ;;  %v980_v23 = vadd.f32 1.0, %v1476_v16 }
 0x44e   : > { %v1064_v24 = vsel %vm1063_vm0, %v1474_v41, %v1060_v10  ;;  %v1072_v25 = vmul.f32 %v1478_v20, %v979_v42  ;;  %vm1077_vm3 = vweird.f32 %v1478_v20 }
 0x44f   : > { %1479 = vrcp.f32 %v980_v23  ;;  %v1069_v26 = vsel %vm1066_vm2, %v1068_v9, %v1064_v24  ;;  %vm1078_vm5 = vmor %vm1076_vm4, %vm1077_vm3  ;;  %v1097_v47 = vand.u32 2147483648, %v980_v23  ;;  %v1095_v48 = vand.u32 2147483647, %v980_v23 }
 0x450   : > { %1128 = vperm.xlu1 %1414, %v1069_v26   ;;  %v1073_v28 = vsub.f32 1.0, %v1072_v25  ;;  %vm1091_vm8 = vweird.f32 %v980_v23 }
 0x451   : > { %v1098_v52 = vor.u32 1.1754944e-38, %v1097_v47  ;;  %vm1096_vm10 = vcmp.eq.f32.partialorder %v1095_v48, 8.507059e+37 }
 0x452   : > { %v1074_v31 = vmul.f32 %v1478_v20, %v1073_v28 }
 0x454   : > { %v1075_v33 = vadd.f32 %v1478_v20, %v1074_v31 }
 0x455   : > { %v1480_v36 = vpop.eup %1479 }
 0x456   : > { %v1079_v38 = vsel %vm1078_vm5, %v1478_v20, %v1075_v33  ;;  %v1087_v39 = vmul.f32 %v1480_v36, %v980_v23  ;;  %vm1092_vm7 = vweird.f32 %v1480_v36 }
 0x457   : > { %v1084_v7 = vsel %vm1081_vm6, %v1083_v37, %v1079_v38  ;;  %vm1093_vm9 = vmor %vm1091_vm8, %vm1092_vm7 }
 0x458   : > { %1133 = vperm.xlu2 %1413, %v1084_v7   ;;  %v1088_v46 = vsub.f32 1.0, %v1087_v39 }
 0x45a   : > { %v1089_v45 = vmul.f32 %v1480_v36, %v1088_v46 }
 0x45c   : > { %v1090_v49 = vadd.f32 %v1480_v36, %v1089_v45 }
 0x45e   : > { %v1094_v53 = vsel %vm1093_vm9, %v1480_v36, %v1090_v49 }
 0x45f   : > { %v1099_v54 = vsel %vm1096_vm10, %v1098_v52, %v1094_v53 }
 0x460   : > { %1138 = vperm.xlu0 %1412, %v1099_v54  }
 0x494   : > { %v1114_v57 = vpop.permute.xlu2 %1113 }
 0x495   : > { %v1145_v8 = vmul.f32 %v1114_v57, %v1869_v44  ;;  %v1146_v60 = vmul.f32 %v1114_v57, %v1867_v43 }
 0x497   : > { %1161 = vst [vmem:[%s1967_s29 + $0x20] sm:$0xff] %v1145_v8 }
 0x498   : > { %1162 = vst [vmem:[%s1967_s29 + $0x28] sm:$0xff] %v1146_v60 }
 0x4a2   : > { %v1124_v19 = vpop.permute.xlu2 %1123 }
 0x4a3   : > { %v1149_v61 = vmul.f32 %v1124_v19, %v1841_v21  ;;  %v1150_v62 = vmul.f32 %v1124_v19, %v1843_v22 }
 0x4a5   : > { %1165 = vst [vmem:[%s1967_s29 + $0x40] sm:$0xff] %v1149_v61 }
 0x4a6   : > { %1166 = vst [vmem:[%s1967_s29 + $0x48] sm:$0xff] %v1150_v62 }
 0x4ab   : > { %v1104_v43 = vpop.permute.xlu0 %1103 }
 0x4ac   : > { %v1141_v44 = vmul.f32 %v1104_v43, %v1883_v58  ;;  %v1142_v30 = vmul.f32 %v1104_v43, %v1885_v59 }
 0x4ae   : > { %1157 = vst [vmem:[%s1967_s29] sm:$0xff] %v1141_v44 }
 0x4af   : > { %1158 = vst [vmem:[%s1967_s29 + $0x8] sm:$0xff] %v1142_v30 }
 0x4b2   : > { %v1119_v63 = vpop.permute.xlu1 %1118  ;;  %v1134_v40 = vpop.permute.xlu2 %1133 }
 0x4b3   : > { %v1147_v21 = vmul.f32 %v1119_v63, %v1861_v35  ;;  %v1148_v22 = vmul.f32 %v1119_v63, %v1859_v34  ;;  %v1153_v55 = vmul.f32 %v1134_v40, %v1837_v17  ;;  %v1154_v0 = vmul.f32 %v1134_v40, %v1839_v56 }
 0x4b5   : > { %1163 = vst [vmem:[%s1967_s29 + $0x30] sm:$0xff] %v1147_v21 }
 0x4b6   : > { %1164 = vst [vmem:[%s1967_s29 + $0x38] sm:$0xff] %v1148_v22 }
 0x4b7   : > { %1169 = vst [vmem:[%s1967_s29 + $0x60] sm:$0xff] %v1153_v55 }
 0x4b8   : > { %1170 = vst [vmem:[%s1967_s29 + $0x68] sm:$0xff] %v1154_v0 }
 0x4ba   : > { %v1109_v58 = vpop.permute.xlu1 %1108 }
 0x4bb   : > { %v1143_v59 = vmul.f32 %v1109_v58, %v1875_v50  ;;  %v1144_v41 = vmul.f32 %v1109_v58, %v1877_v51 }
 0x4bd   : > { %1159 = vst [vmem:[%s1967_s29 + $0x10] sm:$0xff] %v1143_v59 }
 0x4be   : > { %1160 = vst [vmem:[%s1967_s29 + $0x18] sm:$0xff] %v1144_v41 }
 0x4c2   : > { %v1129_v34 = vpop.permute.xlu1 %1128 }
 0x4c3   : > { %v1151_v17 = vmul.f32 %v1129_v34, %v1851_v27  ;;  %v1152_v56 = vmul.f32 %v1129_v34, %v1853_v18 }
 0x4c5   : > { %1167 = vst [vmem:[%s1967_s29 + $0x50] sm:$0xff] %v1151_v17 }
 0x4c6   : > { %1168 = vst [vmem:[%s1967_s29 + $0x58] sm:$0xff] %v1152_v56 }
 0x4d2   : > { %v1139_v35 = vpop.permute.xlu0 %1138 }
 0x4d3   : > { %v1155_v50 = vmul.f32 %v1139_v35, %v1829_v3  ;;  %v1156_v51 = vmul.f32 %v1139_v35, %v1827_v2 }
 0x4d5   : > { %1171 = vst [vmem:[%s1967_s29 + $0x70] sm:$0xff] %v1155_v50 }
 0x4d6   : > { %1172 = vst [vmem:[%s1967_s29 + $0x78] sm:$0xff] %v1156_v51 }
 0x4d7   : > { %1508 = shalt.err (!%p1505_p3)
}
 0x4d8   : > { %s1548_s22 = smov 256   ;;  %s1549_s29 = smov 16  }
 0x4d9   : > { %1352 = dma.vmem_to_hbm [thread:$0]  (%p1628_p5), %s1187_s16, 2048, %s1189_s17, %s1174_s18, %s1548_s22, %s1548_s22, %s1549_s29  }
 0x4da PF: > { %p1358_p4 = scmp.ge.s32.totalorder %s1543_s27, 2  ;;  %s1203_s9 = sand.u32 1, %s1531_s24  }
 0x4db   : > { %s1204_s14 = scalar_lea.sflag [#allocation3], %s1203_s9 }
 0x4dc   : > { %p1355_p7 = pnand %p1358_p4, %p1632_p6 }
 0x4de   : > { %p1356_p8 = pneg %p1355_p7 }
 0x4e0   : > { %1526 = dma.done.wait (%p1356_p8), %s1204_s14, 2048  }
 0x4e1   : > { %1528 = vsyncadd (%p1356_p8), %s1204_s14, 4294965248  ;;  %p17_p9 = scmp.ge.s32.totalorder %s1615_s30, 4   ;;  %s2047_s24 = smov %s1535_s25 }
 0x4e2   : > { %s2048_s25 = smov %s1539_s26  ;;  %s2049_s26 = smov %s1626_s10 }
 0x4e3   : > { %s2050_s27 = smov %s1615_s30  ;;  %19 = sbr.rel (!%p17_p9) target bundleno = 3 (0x3), region = 86 }
 0x4e8   :  { %1210 = vsyncpa [#allocation3], 1 }
 0x4e9   :  { %1212 = vsyncpa [#allocation3 + $0x1], 1 }

// kernel: _laopt2_call.1
= control target key start
LH: loop header
LB: loop body
LE: loop exit
PB: predicated region body
PF: predicated region fallthrough
CT: control target
= control target key end

     0   :  { %12 = vsyncpa [#allocation3], 0  ;;  %s3890_s0 = inlined_call_operand.vmem [shape: f32[2,64,256], index: 0, kind: input, shape index: {}]   ;;  %s3891_s1 = inlined_call_operand.vmem [shape: bf16[2,32,64], index: 1, kind: input, shape index: {}]   ;;  %s3892_s2 = inlined_call_operand.vmem [shape: bf16[64,32], index: 2, kind: input, shape index: {}]   ;;  %s3893_s3 = inlined_call_operand.vmem [shape: f32[64,2], index: 3, kind: input, shape index: {}]   ;;  %s3894_s4 = inlined_call_operand.vmem [shape: f32[2,64], index: 4, kind: input, shape index: {}]   ;;  %s3895_s5 = inlined_call_operand.vmem [shape: f32[64,2], index: 5, kind: input, shape index: {}]   ;;  %s3896_s6 = inlined_call_operand.vmem [shape: s32[1,256], index: 6, kind: input, shape index: {}]   ;;  %s3897_s7 = inlined_call_operand.hbm [shape: f32[2,64,256], index: 7, kind: output, shape index: {}]  }
   0x1   :  { %14 = vsyncpa [#allocation3 + $0x1], 0  ;;  %s2598_s24 = smov 0   ;;  %s2600_s25 = smov 0  }
   0x2   :  { %s2602_s26 = smov 0   ;;  %s2604_s27 = smov 0  }
   0x3 LB: > { %s2619_s28 = sadd.s32 4294967295, %s2549_s27   ;;  %s2198_s29 = sadd.s32 4294967294, %s2549_s27   ;;  %s2549_s27 = sphi %s2604_s27, %s3958_s27   ;;  %s2545_s26 = sphi %s2602_s26, %s3957_s26   ;;  %s2541_s25 = sphi %s2600_s25, %s3956_s25   ;;  %s2537_s24 = sphi %s2598_s24, %s3955_s24  }
   0x4   : > { %s2623_s30 = sadd.s32 1, %s2549_s27   ;;  %s184_s8 = sadd.s32 1, %s2545_s26 }
   0x5   : > { %s181_s9 = ssub.s32 %s2549_s27, %s2623_s30  ;;  %p194_p0 = scmp.ne.s32.totalorder %s2545_s26, %s2541_s25 }
   0x6   : > { %p182_p1 = scmp.eq.s32.totalorder %s181_s9, 0  ;;  %p195_p2 = scmp.eq.s32.totalorder %s2619_s28, 1 }
   0x7   : > { %p200_p3 = scmp.ne.s32.totalorder %s2541_s25, %s2537_s24  ;;  %p201_p4 = scmp.eq.s32.totalorder %s2198_s29, 1 }
   0x8   : > { %s2634_s10 = scalar_select %p182_p1, %s2545_s26, %s184_s8  }
   0x9   : > { %p2636_p5 = por %p195_p2, %p194_p0  ;;  %p2640_p6 = por %p201_p4, %p200_p3 }
   0xa   : > { %p2201_p7 = scmp.ge.s32.totalorder %s2549_s27, 1  ;;  %p250_p8 = scmp.lt.s32.totalorder %s2549_s27, 3 }
   0xc   : > { %p251_p9 = pnand %p2201_p7, %p250_p8 }
   0xd   : > { %p287_p10 = scmp.lt.s32.totalorder (!%p251_p9), %s2619_s28, 1  ;;  %s2553_s22 = smov (!%p251_p9), 0.0  }
   0xe   : > { %254 = sbr.rel (%p251_p9) target bundleno = 1481 (0x5c9), region = 48  ;;  %s2338_s8 = sshll.u32 (!%p251_p9), %s2619_s28, 7 }
  0x13   : > { %s2648_s13 = scalar_select %p287_p10, %s2619_s28, 1  ;;  %v2332_v2 = vld [vmem:[%s3892_s2] sm:$0xff]  ;;  %vm419_vm0 = vcmask 261120   ;;  %v2333_v3 = vld [vmem:[%s3892_s2 + $0x8] sm:$0xff]  ;;  %v2334_v4 = vld [vmem:[%s3892_s2 + $0x10] sm:$0xff]  ;;  %v2551_v12 = vmov 0  }
  0x14   : > { %v2335_v5 = vld [vmem:[%s3892_s2 + $0x18] sm:$0xff]  ;;  %v302_v11 = vld [vmem:[%s3893_s3 + $0x20] sm:$0xff]  ;;  %2407 = vset.pattern.permute.xlu1 %v2551_v12  ;;  %2409 = vset.pattern.permute.xlu0 %v2551_v12  ;;  %vm461_vm1 = vcmask 523264   ;;  %v299_v30 = vld [vmem:[%s3893_s3 + $0x8] sm:$0xff]  ;;  %v2552_v56 = vmov 1  }
  0x15   : > { %s2331_s14 = sshll.u32 %s2648_s13, 4  ;;  %576 = vperm.xlu1 %2407, %v302_v11   ;;  %v298_v15 = vld [vmem:[%s3893_s3] sm:$0xff]  ;;  %2408 = vset.pattern.permute.xlu2 %v2552_v56  ;;  %v300_v57 = vld [vmem:[%s3893_s3 + $0x10] sm:$0xff]  ;;  %v303_v58 = vld [vmem:[%s3893_s3 + $0x28] sm:$0xff]  ;;  %s2330_s15 = sshll.u32 %s2648_s13, 7 }
  0x16   : > { %s296_s17 = scalar_lea.vmem %s3891_s1, %s2331_s14  ;;  %619 = vperm.xlu2 %2408, %v302_v11   ;;  %v304_v59 = vld [vmem:[%s3893_s3 + $0x30] sm:$0xff]  ;;  %v301_v60 = vld [vmem:[%s3893_s3 + $0x18] sm:$0xff] }
  0x17   : > { %v2337_v0 = vld [vmem:[%s296_s17 + $0x8] sm:$0xff]  ;;  %v2336_v1 = vld [vmem:[%s296_s17] sm:$0xff] }
  0x18   : > { %438 = vmatpush.bf16.msra.mxu0 %v2337_v0 }
  0x1c   : > { %439 = vmatpush.bf16.msra.mxu0 %v2336_v1 }
  0x1d   : > { %556 = vperm.xlu1 %2407, %v298_v15  }
  0x1e   : > { %603 = vperm.xlu2 %2408, %v298_v15  }
  0x1f   : > { %2247 = vmatmul.msk.bf16.vlgmr.msra.gmra.mxu0 %vm419_vm0, %v2332_v2 }
  0x25   : > { %561 = vperm.xlu1 %2407, %v299_v30  }
  0x26   : > { %623 = vperm.xlu2 %2408, %v303_v58  }
  0x2d   : > { %2410 = vset.pattern.permute.xlu1 %v2552_v56 }
  0x2e   : > { %607 = vperm.xlu1 %2410, %v299_v30   ;;  %2411 = vset.pattern.permute.xlu2 %v2551_v12 }
  0x2f   : > { %2248 = vmatmul.msk.bf16.gmra.mxu0 %vm419_vm0, %v2333_v3  ;;  %586 = vperm.xlu2 %2411, %v304_v59  }
  0x36   : > { %2412 = vset.pattern.permute.xlu1 %v2551_v12 }
  0x37   : > { %566 = vperm.xlu1 %2412, %v300_v57   ;;  %2413 = vset.pattern.permute.xlu2 %v2552_v56 }
  0x38   : > { %627 = vperm.xlu2 %2413, %v304_v59  }
  0x3f   : > { %2249 = vmatmul.msk.bf16.gmra.mxu0 %vm419_vm0, %v2334_v4  ;;  %2414 = vset.pattern.permute.xlu1 %v2552_v56 }
  0x40   : > { %611 = vperm.xlu1 %2414, %v300_v57   ;;  %2415 = vset.pattern.permute.xlu2 %v2551_v12 }
  0x48   : > { %2416 = vset.pattern.permute.xlu1 %v2551_v12 }
  0x49   : > { %571 = vperm.xlu1 %2416, %v301_v60  }
  0x4f   : > { %2250 = vmatmul.msk.bf16.gmra.mxu0 %vm419_vm0, %v2335_v5 }
  0x9c   : > { %v2666_v6 = vpop.f32.mrf.mxu0 }
  0x9d   : > { %v462_v16 = vsel %vm461_vm1, %v2666_v6, 0.0  ;;  %v486_v23 = vmul.f32 %v2666_v6, %v2666_v6 }
  0x9f   : > { %v494_v32 = vsel %vm461_vm1, %v486_v23, 0.0 }
  0xa4   : > { %v2668_v7 = vpop.f32.mrf.mxu0 }
  0xa5   : > { %v463_v14 = vsel %vm461_vm1, %v2668_v7, 0.0  ;;  %v487_v19 = vmul.f32 %v2668_v7, %v2668_v7 }
  0xa6   : > { %v464_v18 = vadd.f32 %v463_v14, %v462_v16  ;;  %v305_v16 = vld [vmem:[%s3893_s3 + $0x38] sm:$0xff] }
  0xa7   : > { %v495_v27 = vsel %vm461_vm1, %v487_v19, 0.0  ;;  %591 = vperm.xlu2 %2415, %v305_v16  }
  0xa8   : > { %v496_v36 = vadd.f32 %v495_v27, %v494_v32 }
  0xac   : > { %v2670_v8 = vpop.f32.mrf.mxu0 }
  0xad   : > { %v465_v17 = vsel %vm461_vm1, %v2670_v8, 0.0  ;;  %v488_v24 = vmul.f32 %v2670_v8, %v2670_v8 }
  0xae   : > { %v466_v21 = vadd.f32 %v465_v17, %v464_v18 }
  0xaf   : > { %v497_v33 = vsel %vm461_vm1, %v488_v24, 0.0  ;;  %2417 = vset.pattern.permute.xlu2 %v2552_v56  ;;  %v2758_v24 = vpop.permute.xlu1 %576 }
  0xb0   : > { %v498_v40 = vadd.f32 %v497_v33, %v496_v36  ;;  %631 = vperm.xlu2 %2417, %v305_v16  }
  0xb4   : > { %v2672_v9 = vpop.f32.mrf.mxu0 }
  0xb5   : > { %v467_v20 = vsel %vm461_vm1, %v2672_v9, 0.0  ;;  %v489_v28 = vmul.f32 %v2672_v9, %v2672_v9 }
  0xb6   : > { %v468_v26 = vadd.f32 %v467_v20, %v466_v21 }
  0xb7   : > { %v499_v38 = vsel %vm461_vm1, %v489_v28, 0.0 }
  0xb8   : > { %v500_v46 = vadd.f32 %v499_v38, %v498_v40  ;;  %2420 = vset.pattern.permute.xlu2 %v2551_v12 }
  0xbc   : > { %v2674_v10 = vpop.f32.mrf.mxu0 }
  0xbd   : > { %v469_v25 = vsel %vm461_vm1, %v2674_v10, 0.0  ;;  %v490_v34 = vmul.f32 %v2674_v10, %v2674_v10 }
  0xbe   : > { %v470_v31 = vadd.f32 %v469_v25, %v468_v26  ;;  %v2760_v25 = vpop.permute.xlu2 %619 }
  0xbf   : > { %v501_v43 = vsel %vm461_vm1, %v490_v34, 0.0 }
  0xc0   : > { %v502_v50 = vadd.f32 %v501_v43, %v500_v46 }
  0xc4   : > { %v2681_v13 = vpop.f32.mrf.mxu0 }
  0xc5   : > { %v471_v29 = vsel %vm461_vm1, %v2681_v13, 0.0  ;;  %v491_v39 = vmul.f32 %v2681_v13, %v2681_v13 }
  0xc6   : > { %v472_v37 = vadd.f32 %v471_v29, %v470_v31  ;;  %v2762_v29 = vpop.permute.xlu1 %556  ;;  %v2764_v30 = vpop.permute.xlu2 %603 }
  0xc7   : > { %v503_v48 = vsel %vm461_vm1, %v491_v39, 0.0  ;;  %v2783_v39 = vld [vmem:[%s3896_s6] sm:$0x3] }
  0xc8   : > { %v504_v52 = vadd.f32 %v503_v48, %v502_v50 }
  0xcc   : > { %v2696_v22 = vpop.f32.mrf.mxu0 }
  0xcd   : > { %v473_v35 = vsel %vm461_vm1, %v2696_v22, 0.0  ;;  %v492_v44 = vmul.f32 %v2696_v22, %v2696_v22 }
  0xce   : > { %v474_v42 = vadd.f32 %v473_v35, %v472_v37  ;;  %v2766_v31 = vpop.permute.xlu1 %561  ;;  %v2768_v32 = vpop.permute.xlu2 %623  ;;  %v323_v37 = vlaneseq }
  0xcf   : > { %v505_v51 = vsel %vm461_vm1, %v492_v44, 0.0 }
  0xd0   : > { %v506_v54 = vadd.f32 %v505_v51, %v504_v52  ;;  %v2778_v38 = vshrl.u32 %v323_v37, 7 }
  0xd2   : > { %v2786_v40 = vadd.s32 56, %v2778_v38  ;;  %v2798_v44 = vadd.s32 48, %v2778_v38  ;;  %v2815_v51 = vadd.s32 40, %v2778_v38 }
  0xd4   : > { %v2721_v41 = vpop.f32.mrf.mxu0 }
  0xd5   : > { %v475_v45 = vsel %vm461_vm1, %v2721_v41, 0.0  ;;  %v493_v49 = vmul.f32 %v2721_v41, %v2721_v41 }
  0xd6   : > { %v476_v47 = vadd.f32 %v475_v45, %v474_v42  ;;  %v2770_v33 = vpop.permute.xlu1 %607  ;;  %v2772_v34 = vpop.permute.xlu2 %586  ;;  %v2789_v42 = vperm.slane %v2783_v39, 0  ;;  %v3904_v45 = vmov 0.0  }
  0xd7   : > { %v507_v53 = vsel %vm461_vm1, %v493_v49, 0.0 }
  0xd8   : > { %477 = vadd.xlane.f32.xlu0 %v476_v47  ;;  %v508_v55 = vadd.f32 %v507_v53, %v506_v54  ;;  %vm2793_vm5 = vcmp.eq.s32.totalorder %v2786_v40, %v2789_v42  ;;  %vm2810_vm6 = vcmp.eq.s32.totalorder %v2798_v44, %v2789_v42  ;;  %vm2825_vm7 = vcmp.eq.s32.totalorder %v2815_v51, %v2789_v42 }
  0xd9   : > { %v2221_v46 = vsel %vm2793_vm5, 1.0, %v3904_v45  ;;  %v2219_v52 = vsel %vm2810_vm6, 1.0, %v3904_v45  ;;  %vm2936_vm12 = vcmp.eq.s32.totalorder %v2778_v38, %v2789_v42 }
  0xda   : > { %v2806_v49 = vsub.f32 %v2221_v46, %v2221_v46 }
  0xde   : > { %v2774_v35 = vpop.permute.xlu1 %566  ;;  %v2776_v36 = vpop.permute.xlu2 %627 }
  0xe0   : > { %509 = vadd.xlane.f32.xlu0 %v508_v55  ;;  %v917_v55 = vand.u32 4294901760, %v2806_v49 }
  0xe6   : > { %v2804_v48 = vpop.permute.xlu1 %611 }
  0xf4   : > { %581 = vperm.xlu0 %2409, %v303_v58   ;;  %v2830_v58 = vadd.s32 32, %v2778_v38 }
  0xf6   : > { %vm2846_vm8 = vcmp.eq.s32.totalorder %v2830_v58, %v2789_v42 }
  0xfc   : > { %2418 = vset.pattern.permute.xlu0 %v2552_v56  ;;  %v2821_v56 = vsub.f32 %v2219_v52, %v2219_v52 }
  0xfd   : > { %615 = vperm.xlu0 %2418, %v301_v60  }
 0x101   : > { %v592_v53 = vpop.permute.xlu2 %591 }
 0x105   : > { %2419 = vset.pattern.permute.xlu0 %v2551_v12 }
 0x14b   : > { %v478_v61 = vpop.xlane.xlu0 %477 }
 0x14c   : > { %v479_v62 = vrot.slane %v478_v61, 4 }
 0x14e   : > { %v480_v63 = vadd.f32 %v479_v62, %v478_v61  ;;  %v2217_v62 = vsel %vm2825_vm7, 1.0, %v3904_v45 }
 0x150   : > { %v481_v0 = vrot.slane %v480_v63, 2 }
 0x152   : > { %v482_v1 = vadd.f32 %v481_v0, %v480_v63  ;;  %v918_v63 = vsub.f32 %v2806_v49, %v917_v55  ;;  %v3906_v0 = vand.u32 4294901760, %v2821_v56 }
 0x153   : > { %v510_v2 = vpop.xlane.xlu0 %509 }
 0x154   : > { %v511_v3 = vrot.slane %v510_v2, 4  ;;  %v483_v4 = vrot.slane %v482_v1, 1 }
 0x156   : > { %v512_v5 = vadd.f32 %v511_v3, %v510_v2  ;;  %v484_v11 = vadd.f32 %v483_v4, %v482_v1  ;;  %v2842_v1 = vsub.f32 %v2217_v62, %v2217_v62  ;;  %v2215_v2 = vsel %vm2846_vm8, 1.0, %v3904_v45 }
 0x157   : > { %v2856_v3 = vadd.s32 24, %v2778_v38  ;;  %v919_v4 = vand.u32 4294901760, %v918_v63 }
 0x158   : > { %v513_v14 = vrot.slane %v512_v5, 2  ;;  %2355 = vpush %v484_v11  ;;  %v3903_v11 = vand.u32 4294901760, %v2842_v1 }
 0x159   : > { %vm2869_vm9 = vcmp.eq.s32.totalorder %v2856_v3, %v2789_v42  ;;  %920 = vmatpush.msra.mxu2 %v919_v4  ;;  %2339 = vmatpush.msra.mxu3 %v919_v4 }
 0x15a   : > { %v514_v15 = vadd.f32 %v513_v14, %v512_v5  ;;  %v924_v5 = vsub.f32 %v2821_v56, %v3906_v0  ;;  %v2862_v14 = vsub.f32 %v2215_v2, %v2215_v2 }
 0x15c   : > { %v515_v17 = vrot.slane %v514_v15, 1 }
 0x15e   : > { %v516_v18 = vadd.f32 %v515_v17, %v514_v15  ;;  %v925_v17 = vand.u32 4294901760, %v924_v5  ;;  %v632_v5 = vpop.permute.xlu2 %631 }
 0x160   : > { %2357 = vpush %v516_v18  ;;  %v930_v18 = vsub.f32 %v2842_v1, %v3903_v11  ;;  %926 = vmatpush.msra.mxu2 %v925_v17  ;;  %2340 = vmatpush.msra.mxu3 %v925_v17 }
 0x166   : > { %v582_v54 = vpop.permute.xlu0 %581 }
 0x189   : > { %s2356_s16 = spop %2355 }
 0x18a   : > { %s2754_s17 = smul.f32 0.00024414063, %s2356_s16 }
 0x18c   : > { %s520_s18 = smul.f32 %s2754_s17, %s2754_s17  ;;  %v523_v47 = vstv %s2754_s17 }
 0x18d   : > { %v524_v59 = vsub.f32 %v2666_v6, %v523_v47  ;;  %v525_v60 = vsub.f32 %v2668_v7, %v523_v47  ;;  %v526_v61 = vsub.f32 %v2670_v8, %v523_v47  ;;  %v528_v7 = vsub.f32 %v2674_v10, %v523_v47 }
 0x18e   : > { %v529_v8 = vsub.f32 %v2681_v13, %v523_v47  ;;  %v530_v10 = vsub.f32 %v2696_v22, %v523_v47  ;;  %v527_v13 = vsub.f32 %v2672_v9, %v523_v47  ;;  %v531_v15 = vsub.f32 %v2721_v41, %v523_v47 }
 0x18f   : > { %v2213_v9 = vsel %vm2869_vm9, 1.0, %v3904_v45  ;;  %v2880_v22 = vadd.s32 16, %v2778_v38 }
 0x191   : > { %s2358_s19 = spop %2357  ;;  %vm2904_vm10 = vcmp.eq.s32.totalorder %v2880_v22, %v2789_v42 }
 0x192   : > { %s519_s20 = smul.f32 0.00024414063, %s2358_s19 }
 0x194   : > { %s521_s21 = ssub.f32 %s519_s20, %s520_s18  ;;  %s3699_s18 = scalar_lea.vmem %s3890_s0, %s2330_s15 }
 0x195   : > { %s2120_s15 = scalar_lea.hbm %s3897_s7, %s2338_s8 }
 0x196   : > { %s522_s23 = smax.f32 %s2553_s22, %s521_s21  ;;  %s284_s22 = sand.u32 1, %s2541_s25  }
 0x197   : > { %s532_s29 = sadd.f32 1e-08, %s522_s23  ;;  %s2202_s23 = sshll.u32 %s284_s22, 7 }
 0x198   : > { %s2123_s17 = sshll.u32 %s2120_s15, 4  ;;  %s2507_s21 = scalar_lea.hbm %s3897_s7, 256  ;;  %s2124_s17 = int_to_ptr.hbm [resolvable:$true] %s2123_s17 }
 0x199   : > { %v533_v19 = vstv %s532_s29  ;;  %s3824_s29 = scalar_lea.vmem [#allocation2], %s2202_s23  ;;  %s2501_s13 = sshra.s32 %s2124_s17, 4  ;;  %s2502_s13 = int_to_ptr.hbm [resolvable:$true] %s2501_s13 }
 0x19a   : > { %2421 = vrsqrt.f32 %v533_v19  ;;  %vm540_vm3 = vweird.f32 %v533_v19  ;;  %s2121_s16 = sshll.u32 %s3824_s29, 4  ;;  %s2503_s28 = scalar_lea.hbm %s2502_s13, 128  ;;  %s2122_s16 = int_to_ptr.vmem [resolvable:$true] %s2121_s16 }
 0x19b   : > { %p2504_p11 = scmp.ne.s32.totalorder %s2502_s13, %s2503_s28  ;;  %p2508_p0 = scmp.lt.s32.totalorder %s2502_s13, %s3897_s7 }
 0x19c   : > { %p2509_p1 = scmp.lt.s32.totalorder %s2507_s21, %s2503_s28 }
 0x19d   : > { %p2505_p12 = pnand %p2504_p11, %p2636_p5 }
 0x19e   : > { %p2510_p2 = por %p2509_p1, %p2508_p0 }
 0x19f   : > { %p2506_p13 = pneg %p2505_p12 }
 0x1a0   : > { %v2422_v20 = vpop.eup %2421 }
 0x1a1   : > { %v535_v21 = vmul.f32 %v2422_v20, %v533_v19  ;;  %vm541_vm2 = vweird.f32 %v2422_v20  ;;  %v3902_v19 = vand.u32 4294901760, %v2862_v14  ;;  %p2511_p3 = pnand %p2510_p2, %p2506_p13 }
 0x1a2   : > { %vm542_vm4 = vmor %vm540_vm3, %vm541_vm2 }
 0x1a3   : > { %v536_v23 = vmul.f32 %v2422_v20, %v535_v21  ;;  %v2886_v21 = vadd.s32 8, %v2778_v38 }
 0x1a5   : > { %v537_v12 = vmul.f32 0.5, %v536_v23  ;;  %vm2910_vm11 = vcmp.eq.s32.totalorder %v2886_v21, %v2789_v42  ;;  %v2207_v42 = vsel %vm2936_vm12, 1.0, %v3904_v45 }
 0x1a7   : > { %v538_v26 = vsub.f32 1.5, %v537_v12 }
 0x1a9   : > { %v539_v27 = vmul.f32 %v2422_v20, %v538_v26 }
 0x1ab   : > { %v543_v28 = vsel %vm542_vm4, %v2422_v20, %v539_v27  ;;  %v2883_v20 = vsub.f32 %v2213_v9, %v2213_v9 }
 0x1ac   : > { %2359 = vpush %v543_v28  ;;  %v572_v28 = vpop.permute.xlu1 %571 }
 0x1dd   : > { %s2360_s14 = spop %2359 }
 0x1de   : > { %v545_v41 = vstv %s2360_s14 }
 0x1df   : > { %v546_v23 = vmul.f32 %v545_v41, %v524_v59  ;;  %v547_v12 = vmul.f32 %v545_v41, %v525_v60  ;;  %v548_v26 = vmul.f32 %v545_v41, %v526_v61  ;;  %v550_v27 = vmul.f32 %v545_v41, %v528_v7  ;;  %v616_v59 = vpop.permute.xlu0 %615 }
 0x1e0   : > { %v551_v37 = vmul.f32 %v545_v41, %v529_v8  ;;  %v552_v46 = vmul.f32 %v545_v41, %v530_v10  ;;  %v549_v47 = vmul.f32 %v545_v41, %v527_v13  ;;  %v553_v52 = vmul.f32 %v545_v41, %v531_v15 }
 0x1e1   : > { %v594_v62 = vmul.f32 %v2762_v29, %v546_v23  ;;  %v595_v63 = vmul.f32 %v2766_v31, %v547_v12  ;;  %v596_v2 = vmul.f32 %v2774_v35, %v548_v26  ;;  %v598_v4 = vmul.f32 %v2758_v24, %v550_v27 }
 0x1e2   : > { %v599_v60 = vmul.f32 %v582_v54, %v551_v37  ;;  %v600_v61 = vmul.f32 %v2772_v34, %v552_v46  ;;  %v597_v7 = vmul.f32 %v572_v28, %v549_v47  ;;  %v601_v9 = vmul.f32 %v592_v53, %v553_v52 }
 0x1e3   : > { %v634_v8 = vadd.f32 %v2764_v30, %v594_v62  ;;  %v635_v10 = vadd.f32 %v2770_v33, %v595_v63  ;;  %v636_v13 = vadd.f32 %v2804_v48, %v596_v2  ;;  %v638_v29 = vadd.f32 %v2760_v25, %v598_v4 }
 0x1e4   : > { %v639_v31 = vadd.f32 %v2768_v32, %v599_v60  ;;  %v640_v35 = vadd.f32 %v2776_v36, %v600_v61  ;;  %v641_v24 = vadd.f32 %v632_v5, %v601_v9  ;;  %v637_v15 = vadd.f32 %v616_v59, %v597_v7 }
 0x1e5   : > { %v2251_v17 = vmul.f32 -1.442695, %v634_v8  ;;  %v2252_v54 = vmul.f32 -1.442695, %v635_v10  ;;  %v2253_v41 = vmul.f32 -1.442695, %v636_v13  ;;  %v936_v34 = vsub.f32 %v2862_v14, %v3902_v19 }
 0x1e6   : > { %v2255_v30 = vmul.f32 -1.442695, %v638_v29  ;;  %v2256_v53 = vmul.f32 -1.442695, %v639_v31  ;;  %v2257_v32 = vmul.f32 -1.442695, %v640_v35  ;;  %v2967_v8 = vsub.f32 %v2207_v42, %v2207_v42 }
 0x1e7   : > { %2423 = vpow2.f32 %v2251_v17  ;;  %v2258_v36 = vmul.f32 -1.442695, %v641_v24  ;;  %v931_v48 = vand.u32 4294901760, %v930_v18  ;;  %v937_v23 = vand.u32 4294901760, %v936_v34 }
 0x1e8   : > { %2425 = vpow2.f32 %v2252_v54  ;;  %v3901_v12 = vand.u32 4294901760, %v2883_v20  ;;  %v2254_v26 = vmul.f32 -1.442695, %v637_v15  ;;  %v2211_v27 = vsel %vm2904_vm10, 1.0, %v3904_v45 }
 0x1e9   : > { %2427 = vpow2.f32 %v2253_v41  ;;  %932 = vmatpush.msra.mxu2 %v931_v48  ;;  %2341 = vmatpush.msra.mxu3 %v931_v48  ;;  %v2209_v28 = vsel %vm2910_vm11, 1.0, %v3904_v45  ;;  %v2555_v37 = vmov 1.0   ;;  %v2930_v46 = vsub.f32 %v2211_v27, %v2211_v27 }
 0x1ea   : > { %2429 = vpow2.f32 %v2255_v30  ;;  %2267 = vmatpush.msk.msrb.mxu0 %vm2793_vm5, %v2555_v37  ;;  %2259 = vmatpush.msk.msra.mxu1 %vm2793_vm5, %v2555_v37  ;;  %v942_v18 = vsub.f32 %v2883_v20, %v3901_v12  ;;  %v2932_v47 = vsub.f32 %v2209_v28, %v2209_v28  ;;  %v3898_v15 = vand.u32 4294901760, %v2967_v8 }
 0x1eb   : > { %2431 = vpow2.f32 %v2256_v53  ;;  %938 = vmatpush.msra.mxu2 %v937_v23  ;;  %2342 = vmatpush.msra.mxu3 %v937_v23  ;;  %v3900_v63 = vand.u32 4294901760, %v2930_v46 }
 0x1ec   : > { %2433 = vpow2.f32 %v2257_v32  ;;  %2268 = vmatpush.msk.msrb.mxu0 %vm2810_vm6, %v2555_v37  ;;  %v943_v62 = vand.u32 4294901760, %v942_v18  ;;  %2260 = vmatpush.msk.msra.mxu1 %vm2810_vm6, %v2555_v37  ;;  %v3899_v2 = vand.u32 4294901760, %v2932_v47  ;;  %v960_v30 = vsub.f32 %v2967_v8, %v3898_v15 }
 0x1ed   : > { %v2424_v4 = vpop.eup %2423  ;;  %2435 = vpow2.f32 %v2258_v36  ;;  %v948_v60 = vsub.f32 %v2930_v46, %v3900_v63 }
 0x1ee   : > { %v2426_v5 = vpop.eup %2425  ;;  %v2951_v59 = vadd.f32 1.0, %v2424_v4  ;;  %2437 = vpow2.f32 %v2254_v26  ;;  %944 = vmatpush.msra.mxu2 %v943_v62  ;;  %2343 = vmatpush.msra.mxu3 %v943_v62  ;;  %v954_v61 = vsub.f32 %v2932_v47, %v3899_v2  ;;  %v961_v23 = vand.u32 4294901760, %v960_v30 }
 0x1ef   : > { %v2428_v7 = vpop.eup %2427  ;;  %v2959_v9 = vadd.f32 1.0, %v2426_v5  ;;  %2269 = vmatpush.msk.msrb.mxu0 %vm2825_vm7, %v2555_v37  ;;  %2261 = vmatpush.msk.msra.mxu1 %vm2825_vm7, %v2555_v37  ;;  %v949_v29 = vand.u32 4294901760, %v948_v60  ;;  %v3021_v4 = vperm.slane %v2783_v39, 1 }
 0x1f0   : > { %v2430_v10 = vpop.eup %2429  ;;  %v2969_v13 = vadd.f32 1.0, %v2428_v7  ;;  %2439 = vrcp.f32 %v2951_v59  ;;  %v955_v31 = vand.u32 4294901760, %v954_v61  ;;  %v683_v36 = vand.u32 2147483647, %v2951_v59 }
 0x1f1   : > { %v2432_v35 = vpop.eup %2431  ;;  %v2972_v24 = vadd.f32 1.0, %v2430_v10  ;;  %2441 = vrcp.f32 %v2959_v9  ;;  %2270 = vmatpush.msk.msrb.mxu0 %vm2846_vm8, %v2555_v37  ;;  %2262 = vmatpush.msk.msra.mxu1 %vm2846_vm8, %v2555_v37  ;;  %v685_v26 = vand.u32 2147483648, %v2951_v59  ;;  %vm679_vm13 = vweird.f32 %v2951_v59 }
 0x1f2   : > { %v2434_v17 = vpop.eup %2433  ;;  %v2982_v54 = vadd.f32 1.0, %v2432_v35  ;;  %2443 = vrcp.f32 %v2969_v13  ;;  %950 = vmatpush.msra.mxu2 %v949_v29  ;;  %2344 = vmatpush.msra.mxu3 %v949_v29  ;;  %vm3028_vm14 = vcmp.eq.f32.partialorder %v683_v36, 8.507059e+37  ;;  %v713_v60 = vand.u32 2147483647, %v2969_v13 }
 0x1f3   : > { %v2436_v41 = vpop.eup %2435  ;;  %v2985_v34 = vadd.f32 1.0, %v2434_v17  ;;  %2445 = vrcp.f32 %v2972_v24  ;;  %2271 = vmatpush.msk.msrb.mxu0 %vm2869_vm9, %v2555_v37  ;;  %2263 = vmatpush.msk.msra.mxu1 %vm2869_vm9, %v2555_v37  ;;  %v743_v61 = vand.u32 2147483647, %v2972_v24  ;;  %v745_v15 = vand.u32 2147483648, %v2972_v24 }
 0x1f4   : > { %v2438_v53 = vpop.eup %2437  ;;  %2447 = vrcp.f32 %v2982_v54  ;;  %v2998_v32 = vadd.f32 1.0, %v2436_v41  ;;  %956 = vmatpush.msra.mxu2 %v955_v31  ;;  %2345 = vmatpush.msra.mxu3 %v955_v31  ;;  %v686_v31 = vor.u32 1.1754944e-38, %v685_v26 }
 0x1f5   : > { %2449 = vrcp.f32 %v2985_v34  ;;  %v3002_v48 = vadd.f32 1.0, %v2438_v53  ;;  %2272 = vmatpush.msk.msrb.mxu0 %vm2904_vm10, %v2555_v37  ;;  %2264 = vmatpush.msk.msra.mxu1 %vm2904_vm10, %v2555_v37  ;;  %vm3095_vm4 = vcmp.eq.f32.partialorder %v743_v61, 8.507059e+37  ;;  %v746_v11 = vor.u32 1.1754944e-38, %v745_v15 }
 0x1f6   : > { %v3011_v27 = vpop.eup %2439  ;;  %2451 = vrcp.f32 %v2998_v32  ;;  %v790_v28 = vand.u32 2147483648, %v2998_v32  ;;  %962 = vmatpush.msra.mxu2 %v961_v23  ;;  %2346 = vmatpush.msra.mxu3 %v961_v23  ;;  %v788_v10 = vand.u32 2147483647, %v2998_v32 }
 0x1f7   : > { %v3015_v18 = vpop.eup %2441  ;;  %v675_v62 = vmul.f32 %v3011_v27, %v2951_v59  ;;  %2453 = vrcp.f32 %v3002_v48  ;;  %2273 = vmatpush.msk.msrb.mxu0 %vm2910_vm11, %v2555_v37  ;;  %2265 = vmatpush.msk.msra.mxu1 %vm2910_vm11, %v2555_v37  ;;  %v728_v29 = vand.u32 2147483647, %v3002_v48  ;;  %v730_v53 = vand.u32 2147483648, %v3002_v48 }
 0x1f8   : > { %v3024_v42 = vpop.eup %2443  ;;  %v690_v5 = vmul.f32 %v3015_v18, %v2959_v9  ;;  %1006 = vmatpush.msrb.mxu3 %v2806_v49  ;;  %2275 = vmatpush.msk.msrb.mxu2 %vm2793_vm5, %v2555_v37  ;;  %v3052_v30 = vor.u32 1.1754944e-38, %v790_v28  ;;  %vm680_vm0 = vweird.f32 %v3011_v27  ;;  %v773_v49 = vand.u32 2147483647, %v2985_v34 }
 0x1f9   : > { %v3040_v39 = vpop.eup %2445  ;;  %v676_v7 = vsub.f32 1.0, %v675_v62  ;;  %2274 = vmatpush.msk.msrb.mxu0 %vm2936_vm12, %v2555_v37  ;;  %2266 = vmatpush.msk.msra.mxu1 %vm2936_vm12, %v2555_v37  ;;  %v3065_v23 = vmul.f32 %v3024_v42, %v2969_v13  ;;  %vm681_vm15 = vmor %vm679_vm13, %vm680_vm0  ;;  %vm3929_vm13 = vweird.f32 %v2972_v24  ;;  %vm695_vm0 = vweird.f32 %v3015_v18 }
 0x1fa   : > { %v3048_v35 = vpop.eup %2447  ;;  %v691_v17 = vsub.f32 1.0, %v690_v5  ;;  %v735_v41 = vmul.f32 %v3040_v39, %v2972_v24  ;;  %1009 = vmatpush.msrb.mxu3 %v2821_v56  ;;  %2276 = vmatpush.msk.msrb.mxu2 %vm2810_vm6, %v2555_v37  ;;  %vm740_vm3 = vweird.f32 %v3040_v39  ;;  %v700_v24 = vand.u32 2147483648, %v2959_v9 }
 0x1fb   : > { %v3061_v36 = vpop.eup %2449  ;;  %v3069_v26 = vmul.f32 %v3048_v35, %v2982_v54  ;;  %v677_v28 = vmul.f32 %v3011_v27, %v676_v7  ;;  %2347 = vmatpush.msk.msrb.mxu1 %vm2793_vm5, %v2555_v37  ;;  %vm784_vm5 = vweird.f32 %v2998_v32  ;;  %v731_v33 = vor.u32 1.1754944e-38, %v730_v53 }
 0x1fc   : > { %v3077_v62 = vpop.eup %2451  ;;  %v736_v5 = vsub.f32 1.0, %v735_v41  ;;  %v692_v2 = vmul.f32 %v3015_v18, %v691_v17  ;;  %v3090_v63 = vmul.f32 %v3061_v36, %v2985_v34  ;;  %1012 = vmatpush.msrb.mxu3 %v2842_v1  ;;  %2277 = vmatpush.msk.msrb.mxu2 %vm2825_vm7, %v2555_v37 }
 0x1fd   : > { %v3086_v7 = vpop.eup %2453  ;;  %v780_v41 = vmul.f32 %v3077_v62, %v2998_v32  ;;  %v678_v12 = vadd.f32 %v3011_v27, %v677_v28  ;;  %v751_v43 = vsub.f32 1.0, %v3069_v26  ;;  %2348 = vmatpush.msk.msrb.mxu1 %vm2810_vm6, %v2555_v37  ;;  %vm694_vm6 = vweird.f32 %v2959_v9 }
 0x1fe   : > { %v720_v17 = vmul.f32 %v3086_v7, %v3002_v48  ;;  %vm725_vm2 = vweird.f32 %v3086_v7  ;;  %v737_v61 = vmul.f32 %v3040_v39, %v736_v5  ;;  %v693_v45 = vadd.f32 %v3015_v18, %v692_v2  ;;  %1015 = vmatpush.msrb.mxu3 %v2862_v14  ;;  %2278 = vmatpush.msk.msrb.mxu2 %vm2846_vm8, %v2555_v37 }
 0x1ff   : > { %v781_v28 = vsub.f32 1.0, %v780_v41  ;;  %v682_v26 = vsel %vm681_vm15, %v3011_v27, %v678_v12  ;;  %2349 = vmatpush.msk.msrb.mxu1 %vm2825_vm7, %v2555_v37  ;;  %vm741_vm15 = vmor %vm3929_vm13, %vm740_vm3  ;;  %v698_v2 = vand.u32 2147483647, %v2959_v9  ;;  %v752_v16 = vmul.f32 %v3048_v35, %v751_v43 }
 0x200   : > { %v721_v59 = vsub.f32 1.0, %v720_v17  ;;  %v687_v5 = vsel %vm3028_vm14, %v686_v31, %v682_v26  ;;  %v738_v0 = vadd.f32 %v3040_v39, %v737_v61  ;;  %1018 = vmatpush.msrb.mxu3 %v2883_v20  ;;  %2279 = vmatpush.msk.msrb.mxu2 %vm2869_vm9, %v2555_v37  ;;  %vm3145_vm7 = vmor %vm694_vm6, %vm695_vm0  ;;  %vm785_vm14 = vweird.f32 %v3077_v62 }
 0x201   : > { %v782_v50 = vmul.f32 %v3077_v62, %v781_v28  ;;  %v795_v12 = vsel %vm461_vm1, %v687_v5, 0  ;;  %2350 = vmatpush.msk.msrb.mxu1 %vm2846_vm8, %v2555_v37  ;;  %vm3932_vm8 = vweird.f32 %v3002_v48  ;;  %vm699_vm6 = vcmp.eq.f32.partialorder %v698_v2, 8.507059e+37 }
 0x202   : > { %v722_v57 = vmul.f32 %v3086_v7, %v721_v59  ;;  %v3142_v15 = vand.u32 4294901760, %v795_v12  ;;  %v742_v27 = vsel %vm741_vm15, %v3040_v39, %v738_v0  ;;  %v697_v0 = vsel %vm3145_vm7, %v3015_v18, %v693_v45  ;;  %1021 = vmatpush.msrb.mxu3 %v2930_v46  ;;  %2280 = vmatpush.msk.msrb.mxu2 %vm2904_vm10, %v2555_v37  ;;  %vm3181_vm3 = vmor %vm3932_vm8, %vm725_vm2 }
 0x203   : > { %v3154_v31 = vadd.f32 %v3077_v62, %v782_v50  ;;  %v747_v41 = vsel %vm3095_vm4, %v746_v11, %v742_v27  ;;  %v701_v11 = vor.u32 1.1754944e-38, %v700_v24  ;;  %2351 = vmatpush.msk.msrb.mxu1 %vm2869_vm9, %v2555_v37  ;;  %vm3187_vm4 = vcmp.eq.f32.partialorder %v728_v29, 8.507059e+37  ;;  %vm3214_vm9 = vmor %vm784_vm5, %vm785_vm14 }
 0x204   : > { %v723_v6 = vadd.f32 %v3086_v7, %v722_v57  ;;  %964 = vmatmul.f32.vlgmr.msra.gmra.mxu2 %v3142_v15  ;;  %v3169_v9 = vsel %vm461_vm1, %v747_v41, 0  ;;  %v3172_v19 = vsub.f32 %v795_v12, %v3142_v15  ;;  %1024 = vmatpush.msrb.mxu3 %v2932_v47  ;;  %v706_v17 = vsub.f32 1.0, %v3065_v23 }
 0x205   : > { %v3192_v39 = vand.u32 4294901760, %v3169_v9  ;;  %2281 = vmatpush.msk.msrb.mxu2 %vm2910_vm11, %v2555_v37  ;;  %v702_v28 = vsel %vm699_vm6, %v701_v11, %v697_v0  ;;  %2352 = vmatpush.msk.msrb.mxu1 %vm2904_vm10, %v2555_v37  ;;  %v766_v43 = vsub.f32 1.0, %v3090_v63  ;;  %vm3220_vm2 = vcmp.eq.f32.partialorder %v788_v10, 8.507059e+37 }
 0x206   : > { %v727_v29 = vsel %vm3181_vm3, %v3086_v7, %v723_v6  ;;  %v3204_v61 = vand.u32 4294901760, %v3172_v19  ;;  %v798_v63 = vsel %vm461_vm1, %v702_v28, 0  ;;  %v753_v26 = vadd.f32 %v3048_v35, %v752_v16  ;;  %1027 = vmatpush.msrb.mxu3 %v2967_v8 }
 0x207   : > { %980 = vmatmul.f32.vlgmr.msra.gmra.mxu3 %v3192_v39  ;;  %2282 = vmatpush.msk.msrb.mxu2 %vm2936_vm12, %v2555_v37  ;;  %v787_v32 = vsel %vm3214_vm9, %v3077_v62, %v3154_v31  ;;  %v3239_v10 = vand.u32 4294901760, %v798_v63  ;;  %vm754_vm10 = vweird.f32 %v2982_v54  ;;  %v732_v53 = vsel %vm3187_vm4, %v731_v33, %v727_v29 }
 0x208   : > { %1096 = vmatmul.f32.vlgmr.msrb.gmra.mxu0 %v3204_v61  ;;  %v845_v48 = vsub.f32 %v3172_v19, %v3204_v61  ;;  %vm755_vm5 = vweird.f32 %v3048_v35  ;;  %v758_v59 = vand.u32 2147483647, %v2982_v54  ;;  %v760_v62 = vand.u32 2147483648, %v2982_v54  ;;  %2353 = vmatpush.msk.msrb.mxu1 %vm2910_vm11, %v2555_v37 }
 0x209   : > { %vm3253_vm13 = vmor %vm754_vm10, %vm755_vm5  ;;  %v3258_v12 = vsub.f32 %v798_v63, %v3239_v10  ;;  %v707_v2 = vmul.f32 %v3024_v42, %v706_v17  ;;  %vm709_vm15 = vweird.f32 %v2969_v13  ;;  %vm710_vm11 = vweird.f32 %v3024_v42 }
 0x20a   : > { %v3251_v5 = vand.u32 4294901760, %v845_v48  ;;  %v757_v54 = vsel %vm3253_vm13, %v3048_v35, %v753_v26  ;;  %vm759_vm0 = vcmp.eq.f32.partialorder %v758_v59, 8.507059e+37  ;;  %v761_v25 = vor.u32 1.1754944e-38, %v760_v62  ;;  %2354 = vmatpush.msk.msrb.mxu1 %vm2936_vm12, %v2555_v37  ;;  %vm3278_vm7 = vmor %vm709_vm15, %vm710_vm11 }
 0x20b   : > { %v3272_v57 = vand.u32 4294901760, %v3258_v12  ;;  %v708_v27 = vadd.f32 %v3024_v42, %v707_v2  ;;  %v715_v35 = vand.u32 2147483648, %v2969_v13  ;;  %v804_v24 = vsel %vm461_vm1, %v732_v53, 0 }
 0x20c   : > { %847 = vmatmul.f32.vlgmr.msra.gmra.mxu1 %v3251_v5  ;;  %968 = vmatmul.f32.gmra.mxu2 %v3239_v10  ;;  %v762_v31 = vsel %vm759_vm0, %v761_v25, %v757_v54  ;;  %v767_v52 = vmul.f32 %v3061_v36, %v766_v43  ;;  %vm770_vm12 = vweird.f32 %v3061_v36  ;;  %vm769_vm14 = vweird.f32 %v2985_v34 }
 0x20d   : > { %1153 = vmatpush.msra.mxu1 %v917_v55  ;;  %v3287_v0 = vsel %vm461_vm1, %v762_v31, 0  ;;  %v853_v13 = vsub.f32 %v3258_v12, %v3272_v57  ;;  %v712_v6 = vsel %vm3278_vm7, %v3024_v42, %v708_v27  ;;  %v716_v45 = vor.u32 1.1754944e-38, %v715_v35  ;;  %vm3306_vm3 = vmor %vm769_vm14, %vm770_vm12 }
 0x20e   : > { %v3296_v11 = vand.u32 4294901760, %v3287_v0  ;;  %v768_v18 = vadd.f32 %v3061_v36, %v767_v52  ;;  %v3945_v55 = vand.u32 4294901760, %v2821_v56  ;;  %v792_v16 = vsel %vm3220_vm2, %v3052_v30, %v787_v32 }
 0x20f   : > { %vm714_vm8 = vcmp.eq.f32.partialorder %v713_v60, 8.507059e+37  ;;  %v775_v17 = vand.u32 2147483648, %v2985_v34  ;;  %vm350_vm4 = vcmp.eq.s32.totalorder %v2786_v40, %v3021_v4  ;;  %v3313_v29 = vand.u32 4294901760, %v804_v24 }
 0x210   : > { %1157 = vmatpush.msra.mxu1 %v3945_v55  ;;  %1102 = vmatmul.f32.gmra.mxu0 %v3272_v57  ;;  %v717_v56 = vsel %vm714_vm8, %v716_v45, %v712_v6  ;;  %v772_v30 = vsel %vm3306_vm3, %v3061_v36, %v768_v18  ;;  %v3948_v28 = vmov 0.0   ;;  %v3327_v34 = vand.u32 4294901760, %v853_v13 }
 0x211   : > { %984 = vmatmul.f32.gmra.mxu3 %v3296_v11  ;;  %v2222_v43 = vsel %vm350_vm4, 1.0, %v3948_v28  ;;  %2291 = vmatpush.msk.msra.mxu2 %vm350_vm4, %v2555_v37  ;;  %v801_v23 = vsel %vm461_vm1, %v717_v56, 0  ;;  %v776_v7 = vor.u32 1.1754944e-38, %v775_v17  ;;  %v3949_v36 = vand.u32 4294901760, %v2842_v1 }
 0x212   : > { %v3330_v33 = vsub.f32 %v2222_v43, %v2222_v43  ;;  %2283 = vmatpush.msk.msra.mxu3 %vm350_vm4, %v2555_v37  ;;  %v3338_v63 = vand.u32 4294901760, %v801_v23  ;;  %vm774_vm6 = vcmp.eq.f32.partialorder %v773_v49, 8.507059e+37  ;;  %vm348_vm9 = vcmp.eq.s32.totalorder %v2798_v44, %v3021_v4 }
 0x213   : > { %1161 = vmatpush.msra.mxu1 %v3949_v36  ;;  %vm346_vm2 = vcmp.eq.s32.totalorder %v2815_v51, %v3021_v4  ;;  %v777_v26 = vsel %vm774_vm6, %v776_v7, %v772_v30  ;;  %v2220_v1 = vsel %vm348_vm9, 1.0, %v3948_v28  ;;  %vm344_vm10 = vcmp.eq.s32.totalorder %v2830_v58, %v3021_v4  ;;  %2292 = vmatpush.msk.msra.mxu2 %vm348_vm9, %v2555_v37 }
 0x214   : > { %855 = vmatmul.f32.gmra.mxu1 %v3327_v34  ;;  %v1371_v32 = vand.u32 4294901760, %v3330_v33  ;;  %2284 = vmatpush.msk.msra.mxu3 %vm348_vm9, %v2555_v37  ;;  %v3358_v48 = vsel %vm461_vm1, %v777_v26, 0  ;;  %v3361_v53 = vsub.f32 %v801_v23, %v3338_v63  ;;  %v3363_v59 = vsub.f32 %v2220_v1, %v2220_v1 }
 0x215   : > { %972 = vmatmul.f32.gmra.mxu2 %v3338_v63  ;;  %v2218_v62 = vsel %vm346_vm2, 1.0, %v3948_v28  ;;  %v3950_v50 = vand.u32 4294901760, %v2862_v14  ;;  %v3372_v2 = vsub.f32 %v804_v24, %v3313_v29  ;;  %v3388_v14 = vand.u32 4294901760, %v3358_v48 }
 0x216   : > { %v1372_v54 = vsub.f32 %v3330_v33, %v1371_v32  ;;  %v3377_v25 = vsub.f32 %v2218_v62, %v2218_v62  ;;  %2285 = vmatpush.msk.msra.mxu3 %vm346_vm2, %v2555_v37  ;;  %v3391_v27 = vand.u32 4294901760, %v3361_v53  ;;  %v1377_v60 = vand.u32 4294901760, %v3363_v59  ;;  %2293 = vmatpush.msk.msra.mxu2 %vm346_vm2, %v2555_v37 }
 0x217   : > { %1165 = vmatpush.msra.mxu1 %v3950_v50  ;;  %v2216_v35 = vsel %vm344_vm10, 1.0, %v3948_v28  ;;  %v3951_v24 = vand.u32 4294901760, %v2883_v20  ;;  %vm342_vm5 = vcmp.eq.s32.totalorder %v2856_v3, %v3021_v4  ;;  %v3414_v20 = vsel %vm461_vm1, %v792_v16, 0 }
 0x218   : > { %v1373_v31 = vand.u32 4294901760, %v1372_v54  ;;  %v1383_v41 = vand.u32 4294901760, %v3377_v25  ;;  %v3401_v52 = vsub.f32 %v2216_v35, %v2216_v35  ;;  %2286 = vmatpush.msk.msra.mxu3 %vm344_vm10, %v2555_v37  ;;  %1108 = vmatmul.f32.gmra.mxu0 %v3391_v27  ;;  %v861_v13 = vsub.f32 %v3361_v53, %v3391_v27 }
 0x219   : > { %1169 = vmatpush.msra.mxu1 %v3951_v24  ;;  %988 = vmatmul.f32.gmra.mxu3 %v3388_v14  ;;  %v1378_v6 = vsub.f32 %v3363_v59, %v1377_v60  ;;  %v2214_v45 = vsel %vm342_vm5, 1.0, %v3948_v28  ;;  %vm340_vm13 = vcmp.eq.s32.totalorder %v2880_v22, %v3021_v4  ;;  %v3442_v42 = vand.u32 4294901760, %v3372_v2 }
 0x21a   : > { %1374 = vmatpush.msra.mxu0 %v1373_v31  ;;  %v1384_v18 = vsub.f32 %v3377_v25, %v1383_v41  ;;  %v1389_v49 = vand.u32 4294901760, %v3401_v52  ;;  %v3431_v55 = vsub.f32 %v2214_v45, %v2214_v45  ;;  %2294 = vmatpush.msk.msra.mxu2 %vm344_vm10, %v2555_v37  ;;  %v3439_v16 = vand.u32 4294901760, %v861_v13 }
 0x21b   : > { %v1379_v17 = vand.u32 4294901760, %v1378_v6  ;;  %v2212_v56 = vsel %vm340_vm13, 1.0, %v3948_v28  ;;  %2287 = vmatpush.msk.msra.mxu3 %vm342_vm5, %v2555_v37  ;;  %v3952_v30 = vand.u32 4294901760, %v2930_v46  ;;  %v3465_v26 = vand.u32 4294901760, %v3414_v20 }
 0x21c   : > { %v1385_v43 = vand.u32 4294901760, %v1384_v18  ;;  %v1390_v23 = vsub.f32 %v3401_v52, %v1389_v49  ;;  %v1395_v7 = vand.u32 4294901760, %v3431_v55  ;;  %v3458_v36 = vsub.f32 %v2212_v56, %v2212_v56  ;;  %2295 = vmatpush.msk.msra.mxu2 %vm342_vm5, %v2555_v37  ;;  %863 = vmatmul.f32.gmra.mxu1 %v3439_v16 }
 0x21d   : > { %1173 = vmatpush.msra.mxu1 %v3952_v30  ;;  %976 = vmatmul.f32.gmra.mxu2 %v3313_v29  ;;  %vm338_vm15 = vcmp.eq.s32.totalorder %v2886_v21, %v3021_v4  ;;  %vm336_vm0 = vcmp.eq.s32.totalorder %v2778_v38, %v3021_v4  ;;  %v869_v54 = vsub.f32 %v3372_v2, %v3442_v42  ;;  %v3953_v13 = vand.u32 4294901760, %v2932_v47 }
 0x21e   : > { %1380 = vmatpush.msra.mxu0 %v1379_v17  ;;  %v1391_v46 = vand.u32 4294901760, %v1390_v23  ;;  %v1396_v1 = vsub.f32 %v3431_v55, %v1395_v7  ;;  %v1401_v62 = vand.u32 4294901760, %v3458_v36  ;;  %v2210_v50 = vsel %vm338_vm15, 1.0, %v3948_v28  ;;  %2288 = vmatpush.msk.msra.mxu3 %vm340_vm13, %v2555_v37 }
 0x21f   : > { %v3489_v35 = vsub.f32 %v3169_v9, %v3192_v39  ;;  %v3491_v24 = vsub.f32 %v2210_v50, %v2210_v50  ;;  %v2208_v31 = vsel %vm336_vm0, 1.0, %v3948_v28  ;;  %2296 = vmatpush.msk.msra.mxu2 %vm340_vm13, %v2555_v37  ;;  %1177 = vmatpush.msra.mxu1 %v3953_v13  ;;  %v3518_v17 = vand.u32 4294901760, %v869_v54 }
 0x220   : > { %1386 = vmatpush.msra.mxu0 %v1385_v43  ;;  %v1397_v6 = vand.u32 4294901760, %v1396_v1  ;;  %v1402_v9 = vsub.f32 %v3458_v36, %v1401_v62  ;;  %v3504_v45 = vsub.f32 %v2208_v31, %v2208_v31  ;;  %2289 = vmatpush.msk.msra.mxu3 %vm338_vm15, %v2555_v37  ;;  %v3954_v43 = vand.u32 4294901760, %v2967_v8 }
 0x221   : > { %992 = vmatmul.f32.gmra.mxu3 %v3465_v26  ;;  %1114 = vmatmul.f32.gmra.mxu0 %v3442_v42  ;;  %v1407_v28 = vand.u32 4294901760, %v3491_v24  ;;  %v3521_v56 = vand.u32 4294901760, %v3489_v35  ;;  %v3541_v50 = vsub.f32 %v3287_v0, %v3296_v11  ;;  %v3570_v40 = vsub.f32 %v3358_v48, %v3388_v14 }
 0x222   : > { %1392 = vmatpush.msra.mxu0 %v1391_v46  ;;  %v1403_v47 = vand.u32 4294901760, %v1402_v9  ;;  %v1413_v18 = vand.u32 4294901760, %v3504_v45  ;;  %2297 = vmatpush.msk.msra.mxu2 %vm338_vm15, %v2555_v37  ;;  %vm1839_vm11 = vcmask 1041408   ;;  %vm1814_vm7 = vcmask 15360  }
 0x223   : > { %v1408_v30 = vsub.f32 %v3491_v24, %v1407_v28  ;;  %1181 = vmatpush.msra.mxu1 %v3954_v43  ;;  %2290 = vmatpush.msk.msra.mxu3 %vm336_vm0, %v2555_v37  ;;  %v877_v1 = vsub.f32 %v3489_v35, %v3521_v56  ;;  %v3550_v31 = vand.u32 4294901760, %v3541_v50  ;;  %v3589_v51 = vand.u32 4294901760, %v3570_v40 }
 0x224   : > { %1398 = vmatpush.msra.mxu0 %v1397_v6  ;;  %v1414_v23 = vsub.f32 %v3504_v45, %v1413_v18  ;;  %2298 = vmatpush.msk.msra.mxu2 %vm336_vm0, %v2555_v37 }
 0x225   : > { %871 = vmatmul.f32.gmra.mxu1 %v3518_v17  ;;  %1240 = vmatmul.f32.vlgmr.msrb.gmra.mxu2 %v3142_v15  ;;  %v1409_v46 = vand.u32 4294901760, %v1408_v30  ;;  %v3547_v54 = vand.u32 4294901760, %v877_v1  ;;  %v885_v0 = vsub.f32 %v3541_v50, %v3550_v31  ;;  %v893_v58 = vsub.f32 %v3570_v40, %v3589_v51 }
 0x226   : > { %1404 = vmatpush.msra.mxu0 %v1403_v47  ;;  %v1415_v8 = vand.u32 4294901760, %v1414_v23 }
 0x227   : > { %v3586_v44 = vand.u32 4294901760, %v885_v0  ;;  %v894_v3 = vand.u32 4294901760, %v893_v58 }
 0x228   : > { %1410 = vmatpush.msra.mxu0 %v1409_v46 }
 0x229   : > { %1030 = vmatmul.f32.vlgmr.msrb.gmra.mxu3 %v3172_v19  ;;  %1120 = vmatmul.f32.gmra.mxu0 %v3521_v56 }
 0x22a   : > { %1416 = vmatpush.msra.mxu0 %v1415_v8  ;;  %1607 = vmatpush.msrb.mxu3 %v1371_v32  ;;  %v3605_v32 = vsub.f32 %v3414_v20, %v3465_v26 }
 0x22c   : > { %2299 = vmatpush.msk.msrb.mxu0 %vm350_vm4, %v2555_v37  ;;  %1611 = vmatpush.msrb.mxu3 %v1377_v60  ;;  %v3618_v22 = vand.u32 4294901760, %v3605_v32 }
 0x22d   : > { %879 = vmatmul.f32.gmra.mxu1 %v3547_v54  ;;  %1244 = vmatmul.f32.gmra.mxu2 %v3239_v10 }
 0x22e   : > { %2300 = vmatpush.msk.msrb.mxu0 %vm348_vm9, %v2555_v37  ;;  %1615 = vmatpush.msrb.mxu3 %v1383_v41  ;;  %v901_v21 = vsub.f32 %v3605_v32, %v3618_v22 }
 0x230   : > { %2301 = vmatpush.msk.msrb.mxu0 %vm346_vm2, %v2555_v37  ;;  %1619 = vmatpush.msrb.mxu3 %v1389_v49  ;;  %v902_v48 = vand.u32 4294901760, %v901_v21 }
 0x231   : > { %1035 = vmatmul.f32.gmra.mxu3 %v3258_v12  ;;  %1418 = vmatmul.f32.vlgmr.msra.gmra.mxu0 %v3142_v15 }
 0x232   : > { %2302 = vmatpush.msk.msrb.mxu0 %vm344_vm10, %v2555_v37  ;;  %1623 = vmatpush.msrb.mxu3 %v1395_v7 }
 0x234   : > { %2303 = vmatpush.msk.msrb.mxu0 %vm342_vm5, %v2555_v37  ;;  %1627 = vmatpush.msrb.mxu3 %v1401_v62 }
 0x235   : > { %887 = vmatmul.f32.gmra.mxu1 %v3586_v44  ;;  %1248 = vmatmul.f32.gmra.mxu2 %v3338_v63 }
 0x236   : > { %2304 = vmatpush.msk.msrb.mxu0 %vm340_vm13, %v2555_v37  ;;  %1631 = vmatpush.msrb.mxu3 %v1407_v28 }
 0x238   : > { %2305 = vmatpush.msk.msrb.mxu0 %vm338_vm15, %v2555_v37  ;;  %1635 = vmatpush.msrb.mxu3 %v1413_v18 }
 0x239   : > { %1040 = vmatmul.f32.gmra.mxu3 %v3361_v53  ;;  %1422 = vmatmul.f32.gmra.mxu0 %v3239_v10 }
 0x23a   : > { %2306 = vmatpush.msk.msrb.mxu0 %vm336_vm0, %v2555_v37 }
 0x23d   : > { %895 = vmatmul.f32.gmra.mxu1 %v894_v3  ;;  %1252 = vmatmul.f32.gmra.mxu2 %v3313_v29 }
 0x241   : > { %1045 = vmatmul.f32.gmra.mxu3 %v3372_v2  ;;  %1426 = vmatmul.f32.gmra.mxu0 %v3338_v63 }
 0x245   : > { %903 = vmatmul.f32.gmra.mxu1 %v902_v48  ;;  %1256 = vmatmul.f32.gmra.mxu2 %v3192_v39 }
 0x249   : > { %1050 = vmatmul.f32.gmra.mxu3 %v3489_v35  ;;  %1430 = vmatmul.f32.gmra.mxu0 %v3313_v29 }
 0x24d   : > { %1126 = vmatmul.f32.vlgmr.msrb.gmra.mxu1 %v3550_v31  ;;  %1260 = vmatmul.f32.gmra.mxu2 %v3296_v11 }
 0x24e   : > { %1460 = vmatpush.msrb.mxu1 %v3330_v33 }
 0x250   : > { %1463 = vmatpush.msrb.mxu1 %v3363_v59 }
 0x251   : > { %1055 = vmatmul.f32.gmra.mxu3 %v3541_v50  ;;  %1434 = vmatmul.f32.gmra.mxu0 %v3192_v39 }
 0x252   : > { %1466 = vmatpush.msrb.mxu1 %v3377_v25 }
 0x254   : > { %1469 = vmatpush.msrb.mxu1 %v3401_v52 }
 0x255   : > { %1132 = vmatmul.f32.gmra.mxu1 %v3589_v51  ;;  %1264 = vmatmul.f32.gmra.mxu2 %v3388_v14 }
 0x256   : > { %1472 = vmatpush.msrb.mxu1 %v3431_v55 }
 0x258   : > { %1475 = vmatpush.msrb.mxu1 %v3458_v36 }
 0x259   : > { %1060 = vmatmul.f32.gmra.mxu3 %v3570_v40  ;;  %1438 = vmatmul.f32.gmra.mxu0 %v3296_v11 }
 0x25a   : > { %1478 = vmatpush.msrb.mxu1 %v3491_v24 }
 0x25c   : > { %1481 = vmatpush.msrb.mxu1 %v3504_v45 }
 0x25d   : > { %1138 = vmatmul.f32.gmra.mxu1 %v3618_v22  ;;  %1268 = vmatmul.f32.gmra.mxu2 %v3465_v26 }
 0x261   : > { %1065 = vmatmul.f32.gmra.mxu3 %v3605_v32  ;;  %1442 = vmatmul.f32.gmra.mxu0 %v3388_v14 }
 0x265   : > { %1183 = vmatmul.f32.vlgmr.msra.gmra.mxu1 %v3142_v15  ;;  %1550 = vmatmul.f32.vlgmr.msra.gmra.mxu2 %v3204_v61 }
 0x269   : > { %1301 = vmatmul.f32.vlgmr.msra.gmra.mxu3 %v3251_v5  ;;  %1446 = vmatmul.f32.gmra.mxu0 %v3465_v26 }
 0x26d   : > { %1187 = vmatmul.f32.gmra.mxu1 %v3239_v10  ;;  %1556 = vmatmul.f32.gmra.mxu2 %v3272_v57 }
 0x271   : > { %1309 = vmatmul.f32.gmra.mxu3 %v3327_v34  ;;  %1694 = vmatmul.f32.vlgmr.msrb.gmra.mxu0 %v3142_v15 }
 0x275   : > { %1191 = vmatmul.f32.gmra.mxu1 %v3338_v63  ;;  %1562 = vmatmul.f32.gmra.mxu2 %v3391_v27 }
 0x279   : > { %1317 = vmatmul.f32.gmra.mxu3 %v3439_v16  ;;  %1698 = vmatmul.f32.gmra.mxu0 %v3239_v10 }
 0x27d   : > { %1195 = vmatmul.f32.gmra.mxu1 %v3313_v29  ;;  %1568 = vmatmul.f32.gmra.mxu2 %v3442_v42 }
 0x281   : > { %1325 = vmatmul.f32.gmra.mxu3 %v3518_v17  ;;  %1702 = vmatmul.f32.gmra.mxu0 %v3338_v63 }
 0x285   : > { %1199 = vmatmul.f32.gmra.mxu1 %v3192_v39  ;;  %1574 = vmatmul.f32.gmra.mxu2 %v3521_v56  ;;  %v1097_v34 = vpop.f32.mrf.mxu0 }
 0x287   : > { %v965_v59 = vpop.f32.mrf.mxu2 }
 0x289   : > { %1333 = vmatmul.f32.gmra.mxu3 %v3547_v54  ;;  %1706 = vmatmul.f32.gmra.mxu0 %v3313_v29  ;;  %v848_v38 = vpop.f32.mrf.mxu1 }
 0x28a   : > { %v981_v37 = vpop.f32.mrf.mxu3  ;;  %v966_v41 = vadd.f32 %v965_v59, %v848_v38 }
 0x28d   : > { %1203 = vmatmul.f32.gmra.mxu1 %v3296_v11  ;;  %1580 = vmatmul.f32.gmra.mxu2 %v3550_v31  ;;  %v1103_v27 = vpop.f32.mrf.mxu0 }
 0x28f   : > { %v969_v55 = vpop.f32.mrf.mxu2 }
 0x291   : > { %1341 = vmatmul.f32.gmra.mxu3 %v3586_v44  ;;  %1710 = vmatmul.f32.gmra.mxu0 %v3192_v39  ;;  %v856_v4 = vpop.f32.mrf.mxu1 }
 0x292   : > { %v970_v36 = vadd.f32 %v969_v55, %v856_v4  ;;  %v1726_v4 = vld [vmem:[%s3699_s18] sm:$0xff] }
 0x294   : > { %v985_v61 = vpop.f32.mrf.mxu3 }
 0x295   : > { %1207 = vmatmul.f32.gmra.mxu1 %v3388_v14  ;;  %1586 = vmatmul.f32.gmra.mxu2 %v3589_v51  ;;  %v1109_v42 = vpop.f32.mrf.mxu0 }
 0x298   : > { %v973_v13 = vpop.f32.mrf.mxu2 }
 0x299   : > { %1349 = vmatmul.f32.gmra.mxu3 %v894_v3  ;;  %1714 = vmatmul.f32.gmra.mxu0 %v3296_v11  ;;  %v864_v5 = vpop.f32.mrf.mxu1 }
 0x29a   : > { %v974_v9 = vadd.f32 %v973_v13, %v864_v5 }
 0x29c   : > { %v989_v57 = vpop.f32.mrf.mxu3 }
 0x29d   : > { %1211 = vmatmul.f32.gmra.mxu1 %v3465_v26  ;;  %1592 = vmatmul.f32.gmra.mxu2 %v3618_v22 }
 0x29e   : > { %v1115_v45 = vpop.f32.mrf.mxu0 }
 0x2a0   : > { %v977_v18 = vpop.f32.mrf.mxu2 }
 0x2a1   : > { %1357 = vmatmul.f32.gmra.mxu3 %v902_v48  ;;  %1718 = vmatmul.f32.gmra.mxu0 %v3388_v14 }
 0x2a2   : > { %v872_v33 = vpop.f32.mrf.mxu1 }
 0x2a3   : > { %v978_v56 = vadd.f32 %v977_v18, %v872_v33 }
 0x2a4   : > { %v993_v25 = vpop.f32.mrf.mxu3 }
 0x2a5   : > { %1484 = vmatmul.f32.vlgmr.msrb.gmra.mxu1 %v3172_v19 }
 0x2a6   : > { %v1121_v43 = vpop.f32.mrf.mxu0 }
 0x2a8   : > { %v1241_v8 = vpop.f32.mrf.mxu2 }
 0x2a9   : > { %1637 = vmatmul.f32.vlgmr.msrb.gmra.mxu3 %v3142_v15  ;;  %1722 = vmatmul.f32.gmra.mxu0 %v3465_v26 }
 0x2aa   : > { %v880_v60 = vpop.f32.mrf.mxu1 }
 0x2ab   : > { %v982_v52 = vadd.f32 %v981_v37, %v880_v60 }
 0x2ac   : > { %v1031_v20 = vpop.f32.mrf.mxu3 }
 0x2ad   : > { %v1032_v49 = vadd.f32 %v1031_v20, %v966_v41  ;;  %1489 = vmatmul.f32.gmra.mxu1 %v3258_v12 }
 0x2af   : > { %v1098_v16 = vadd.f32 %v1097_v34, %v1032_v49 }
 0x2b1   : > { %1641 = vmatmul.f32.gmra.mxu3 %v3239_v10 }
 0x2b2   : > { %v888_v7 = vpop.f32.mrf.mxu1 }
 0x2b3   : > { %v986_v19 = vadd.f32 %v985_v61, %v888_v7 }
 0x2b4   : > { %v1036_v62 = vpop.f32.mrf.mxu3 }
 0x2b5   : > { %v1037_v24 = vadd.f32 %v1036_v62, %v970_v36  ;;  %1494 = vmatmul.f32.gmra.mxu1 %v3361_v53 }
 0x2b7   : > { %v1104_v15 = vadd.f32 %v1103_v27, %v1037_v24  ;;  %v1728_v27 = vld [vmem:[%s3699_s18 + $0x10] sm:$0xff] }
 0x2b9   : > { %1645 = vmatmul.f32.gmra.mxu3 %v3338_v63 }
 0x2ba   : > { %v896_v6 = vpop.f32.mrf.mxu1 }
 0x2bb   : > { %v990_v12 = vadd.f32 %v989_v57, %v896_v6  ;;  %v1732_v6 = vld [vmem:[%s3699_s18 + $0x30] sm:$0xff] }
 0x2bc   : > { %v1041_v28 = vpop.f32.mrf.mxu3 }
 0x2bd   : > { %v1042_v47 = vadd.f32 %v1041_v28, %v974_v9  ;;  %1499 = vmatmul.f32.gmra.mxu1 %v3372_v2 }
 0x2bf   : > { %v1110_v10 = vadd.f32 %v1109_v42, %v1042_v47  ;;  %v1730_v42 = vld [vmem:[%s3699_s18 + $0x20] sm:$0xff] }
 0x2c1   : > { %1649 = vmatmul.f32.gmra.mxu3 %v3313_v29  ;;  %v1419_v29 = vpop.f32.mrf.mxu0 }
 0x2c2   : > { %v904_v17 = vpop.f32.mrf.mxu1 }
 0x2c3   : > { %v994_v30 = vadd.f32 %v993_v25, %v904_v17 }
 0x2c4   : > { %v1046_v53 = vpop.f32.mrf.mxu3 }
 0x2c5   : > { %v1047_v23 = vadd.f32 %v1046_v53, %v978_v56  ;;  %1504 = vmatmul.f32.gmra.mxu1 %v3489_v35  ;;  %v1245_v35 = vpop.f32.mrf.mxu2  ;;  %v1734_v56 = vld [vmem:[%s3699_s18 + $0x40] sm:$0xff] }
 0x2c7   : > { %v1116_v63 = vadd.f32 %v1115_v45, %v1047_v23 }
 0x2c9   : > { %1653 = vmatmul.f32.gmra.mxu3 %v3192_v39  ;;  %v1423_v58 = vpop.f32.mrf.mxu0 }
 0x2ca   : > { %v1127_v46 = vpop.f32.mrf.mxu1 }
 0x2cc   : > { %v1051_v1 = vpop.f32.mrf.mxu3 }
 0x2cd   : > { %v1052_v54 = vadd.f32 %v1051_v1, %v982_v52  ;;  %1509 = vmatmul.f32.gmra.mxu1 %v3541_v50  ;;  %v1249_v21 = vpop.f32.mrf.mxu2  ;;  %v1736_v1 = vld [vmem:[%s3699_s18 + $0x50] sm:$0xff] }
 0x2cf   : > { %v1122_v2 = vadd.f32 %v1121_v43, %v1052_v54 }
 0x2d1   : > { %1657 = vmatmul.f32.gmra.mxu3 %v3296_v11 }
 0x2d2   : > { %v1133_v31 = vpop.f32.mrf.mxu1 }
 0x2d4   : > { %v1056_v0 = vpop.f32.mrf.mxu3 }
 0x2d5   : > { %v1057_v44 = vadd.f32 %v1056_v0, %v986_v19  ;;  %1514 = vmatmul.f32.gmra.mxu1 %v3570_v40  ;;  %v1427_v40 = vpop.f32.mrf.mxu0  ;;  %v1253_v5 = vpop.f32.mrf.mxu2 }
 0x2d7   : > { %v1128_v51 = vadd.f32 %v1127_v46, %v1057_v44 }
 0x2d9   : > { %1661 = vmatmul.f32.gmra.mxu3 %v3388_v14 }
 0x2da   : > { %v1139_v39 = vpop.f32.mrf.mxu1 }
 0x2dc   : > { %v1061_v3 = vpop.f32.mrf.mxu3 }
 0x2dd   : > { %v1062_v22 = vadd.f32 %v1061_v3, %v990_v12  ;;  %1519 = vmatmul.f32.gmra.mxu1 %v3605_v32  ;;  %v1431_v33 = vpop.f32.mrf.mxu0  ;;  %v1257_v20 = vpop.f32.mrf.mxu2 }
 0x2df   : > { %v1134_v50 = vadd.f32 %v1133_v31, %v1062_v22 }
 0x2e1   : > { %1665 = vmatmul.f32.gmra.mxu3 %v3465_v26 }
 0x2e2   : > { %v1184_v11 = vpop.f32.mrf.mxu1 }
 0x2e3   : > { %v1185_v14 = vadd.f32 %v1184_v11, %v1098_v16 }
 0x2e4   : > { %v1066_v48 = vpop.f32.mrf.mxu3 }
 0x2e5   : > { %v1067_v38 = vadd.f32 %v1066_v48, %v994_v30  ;;  %v1242_v37 = vadd.f32 %v1241_v8, %v1185_v14  ;;  %v3708_v7 = vpop.f32.mrf.mxu0  ;;  %v1261_v9 = vpop.f32.mrf.mxu2 }
 0x2e7   : > { %v1140_v32 = vadd.f32 %v1139_v39, %v1067_v38  ;;  %v3702_v61 = vmul.f32 %v1726_v4, %v1242_v37 }
 0x2ea   : > { %v1188_v26 = vpop.f32.mrf.mxu1 }
 0x2eb   : > { %v1189_v57 = vadd.f32 %v1188_v26, %v1104_v15 }
 0x2ec   : > { %v1302_v34 = vpop.f32.mrf.mxu3 }
 0x2ed   : > { %v1420_v59 = vadd.f32 %v1419_v29, %v1302_v34  ;;  %v1246_v25 = vadd.f32 %v1245_v35, %v1189_v57  ;;  %v3715_v12 = vpop.f32.mrf.mxu0  ;;  %v1265_v53 = vpop.f32.mrf.mxu2 }
 0x2ef   : > { %v3705_v60 = vmul.f32 %v1728_v27, %v1246_v25  ;;  %v1727_v27 = vld [vmem:[%s3699_s18 + $0x8] sm:$0xff] }
 0x2f2   : > { %v1192_v41 = vpop.f32.mrf.mxu1 }
 0x2f3   : > { %v1193_v52 = vadd.f32 %v1192_v41, %v1110_v10 }
 0x2f4   : > { %v1310_v49 = vpop.f32.mrf.mxu3 }
 0x2f5   : > { %v1424_v55 = vadd.f32 %v1423_v58, %v1310_v49  ;;  %v1250_v16 = vadd.f32 %v1249_v21, %v1193_v52  ;;  %v3720_v23 = vpop.f32.mrf.mxu0  ;;  %v1269_v29 = vpop.f32.mrf.mxu2  ;;  %v1738_v58 = vld [vmem:[%s3699_s18 + $0x60] sm:$0xff] }
 0x2f7   : > { %v3710_v36 = vmul.f32 %v1730_v42, %v1250_v16 }
 0x2fa   : > { %v1196_v19 = vpop.f32.mrf.mxu1 }
 0x2fb   : > { %v1197_v62 = vadd.f32 %v1196_v19, %v1116_v63  ;;  %v1729_v19 = vld [vmem:[%s3699_s18 + $0x18] sm:$0xff] }
 0x2fc   : > { %v1318_v24 = vpop.f32.mrf.mxu3 }
 0x2fd   : > { %v1428_v15 = vadd.f32 %v1427_v40, %v1318_v24  ;;  %v1254_v13 = vadd.f32 %v1253_v5, %v1197_v62  ;;  %v3725_v44 = vpop.f32.mrf.mxu0  ;;  %v1551_v21 = vpop.f32.mrf.mxu2  ;;  %v1740_v40 = vld [vmem:[%s3699_s18 + $0x70] sm:$0xff] }
 0x2ff   : > { %v3713_v45 = vmul.f32 %v1732_v6, %v1254_v13 }
 0x302   : > { %v1200_v28 = vpop.f32.mrf.mxu1 }
 0x303   : > { %v1201_v47 = vadd.f32 %v1200_v28, %v1122_v2 }
 0x304   : > { %v1326_v10 = vpop.f32.mrf.mxu3 }
 0x305   : > { %v1432_v18 = vadd.f32 %v1431_v33, %v1326_v10  ;;  %v1258_v17 = vadd.f32 %v1257_v20, %v1201_v47  ;;  %v1695_v14 = vpop.f32.mrf.mxu0  ;;  %v1557_v5 = vpop.f32.mrf.mxu2 }
 0x307   : > { %v3718_v30 = vmul.f32 %v1734_v56, %v1258_v17  ;;  %v1731_v17 = vld [vmem:[%s3699_s18 + $0x28] sm:$0xff] }
 0x30a   : > { %v1204_v43 = vpop.f32.mrf.mxu1 }
 0x30b   : > { %v1205_v63 = vadd.f32 %v1204_v43, %v1128_v51 }
 0x30c   : > { %v1334_v46 = vpop.f32.mrf.mxu3 }
 0x30d   : > { %v1262_v8 = vadd.f32 %v1261_v9, %v1205_v63  ;;  %v1699_v26 = vpop.f32.mrf.mxu0  ;;  %v1563_v52 = vpop.f32.mrf.mxu2 }
 0x30f   : > { %v3723_v54 = vmul.f32 %v1736_v1, %v1262_v8 }
 0x312   : > { %v1208_v2 = vpop.f32.mrf.mxu1 }
 0x313   : > { %v1209_v31 = vadd.f32 %v1208_v2, %v1134_v50 }
 0x314   : > { %v1342_v0 = vpop.f32.mrf.mxu3 }
 0x315   : > { %v1266_v35 = vadd.f32 %v1265_v53, %v1209_v31  ;;  %v1703_v16 = vpop.f32.mrf.mxu0  ;;  %v1569_v6 = vpop.f32.mrf.mxu2  ;;  %v1733_v31 = vld [vmem:[%s3699_s18 + $0x38] sm:$0xff] }
 0x317   : > { %v3728_v39 = vmul.f32 %v1738_v58, %v1266_v35 }
 0x31a   : > { %v1212_v3 = vpop.f32.mrf.mxu1 }
 0x31b   : > { %v1213_v22 = vadd.f32 %v1212_v3, %v1140_v32 }
 0x31c   : > { %v3730_v51 = vpop.f32.mrf.mxu3 }
 0x31d   : > { %v1270_v11 = vadd.f32 %v1269_v29, %v1213_v22  ;;  %v1707_v47 = vpop.f32.mrf.mxu0  ;;  %v1575_v1 = vpop.f32.mrf.mxu2 }
 0x31f   : > { %v3733_v48 = vmul.f32 %v1740_v40, %v1270_v11 }
 0x322   : > { %v1485_v38 = vpop.f32.mrf.mxu1 }
 0x323   : > { %v1486_v50 = vadd.f32 %v1485_v38, %v1420_v59 }
 0x324   : > { %v3735_v37 = vpop.f32.mrf.mxu3 }
 0x325   : > { %v1552_v4 = vadd.f32 %v1551_v21, %v1486_v50  ;;  %v1711_v35 = vpop.f32.mrf.mxu0  ;;  %v1581_v38 = vpop.f32.mrf.mxu2  ;;  %v1735_v50 = vld [vmem:[%s3699_s18 + $0x48] sm:$0xff] }
 0x32a   : > { %v1490_v57 = vpop.f32.mrf.mxu1 }
 0x32b   : > { %v1491_v34 = vadd.f32 %v1490_v57, %v1424_v55 }
 0x32c   : > { %v1638_v32 = vpop.f32.mrf.mxu3 }
 0x32d   : > { %v1639_v33 = vadd.f32 %v1638_v32, %v1552_v4  ;;  %v1558_v25 = vadd.f32 %v1557_v5, %v1491_v34 }
 0x32f   : > { %v1696_v41 = vadd.f32 %v1695_v14, %v1639_v33  ;;  %v1444_v33 = vadd.f32 %v3720_v23, %v3730_v51  ;;  %v1448_v23 = vadd.f32 %v3725_v44, %v3735_v37 }
 0x331   : > { %v3738_v20 = vmul.f32 %v1727_v27, %v1696_v41  ;;  %v1587_v41 = vpop.f32.mrf.mxu2 }
 0x332   : > { %v1495_v49 = vpop.f32.mrf.mxu1 }
 0x333   : > { %v1496_v24 = vadd.f32 %v1495_v49, %v1428_v15  ;;  %v1436_v15 = vadd.f32 %v3708_v7, %v1334_v46 }
 0x334   : > { %v1642_v59 = vpop.f32.mrf.mxu3 }
 0x335   : > { %v1643_v42 = vadd.f32 %v1642_v59, %v1558_v25  ;;  %v1564_v9 = vadd.f32 %v1563_v52, %v1496_v24 }
 0x337   : > { %v1700_v62 = vadd.f32 %v1699_v26, %v1643_v42  ;;  %v1715_v26 = vpop.f32.mrf.mxu0 }
 0x339   : > { %v3741_v13 = vmul.f32 %v1729_v19, %v1700_v62  ;;  %v1739_v62 = vld [vmem:[%s3699_s18 + $0x68] sm:$0xff] }
 0x33a   : > { %v1500_v55 = vpop.f32.mrf.mxu1 }
 0x33b   : > { %v1501_v53 = vadd.f32 %v1500_v55, %v1432_v18  ;;  %v1440_v18 = vadd.f32 %v3715_v12, %v1342_v0  ;;  %v1737_v12 = vld [vmem:[%s3699_s18 + $0x58] sm:$0xff] }
 0x33c   : > { %v1646_v28 = vpop.f32.mrf.mxu3 }
 0x33d   : > { %v1647_v10 = vadd.f32 %v1646_v28, %v1564_v9  ;;  %v1570_v8 = vadd.f32 %v1569_v6, %v1501_v53  ;;  %v1593_v9 = vpop.f32.mrf.mxu2  ;;  %v1741_v53 = vld [vmem:[%s3699_s18 + $0x78] sm:$0xff]  ;;  %s2109_s18 = scalar_lea.sflag [#allocation3], %s284_s22 }
 0x33f   : > { %v1704_v56 = vadd.f32 %v1703_v16, %v1647_v10  ;;  %v1719_v49 = vpop.f32.mrf.mxu0 }
 0x341   : > { %v3744_v43 = vmul.f32 %v1731_v17, %v1704_v56 }
 0x342   : > { %v1505_v63 = vpop.f32.mrf.mxu1 }
 0x343   : > { %v1506_v3 = vadd.f32 %v1505_v63, %v1436_v15  ;;  %v1764_v37 = vadd.f32 %v3744_v43, %v3710_v36  ;;  %v1761_v15 = vadd.f32 %v3741_v13, %v3705_v60 }
 0x344   : > { %v1650_v29 = vpop.f32.mrf.mxu3 }
 0x345   : > { %v1651_v2 = vadd.f32 %v1650_v29, %v1570_v8  ;;  %v1576_v11 = vadd.f32 %v1575_v1, %v1506_v3  ;;  %v1758_v29 = vadd.f32 %v3738_v20, %v3702_v61 }
 0x347   : > { %v1708_v58 = vadd.f32 %v1707_v47, %v1651_v2  ;;  %v1723_v56 = vpop.f32.mrf.mxu0 }
 0x349   : > { %v3748_v22 = vmul.f32 %v1733_v31, %v1708_v58 }
 0x34a   : > { %v1510_v21 = vpop.f32.mrf.mxu1 }
 0x34b   : > { %v1511_v5 = vadd.f32 %v1510_v21, %v1440_v18  ;;  %v1767_v1 = vadd.f32 %v3748_v22, %v3713_v45 }
 0x34c   : > { %v1654_v40 = vpop.f32.mrf.mxu3 }
 0x34d   : > { %v1655_v14 = vadd.f32 %v1654_v40, %v1576_v11  ;;  %v1582_v57 = vadd.f32 %v1581_v38, %v1511_v5 }
 0x34f   : > { %v1712_v4 = vadd.f32 %v1711_v35, %v1655_v14 }
 0x351   : > { %v3752_v7 = vmul.f32 %v1735_v50, %v1712_v4 }
 0x352   : > { %v1515_v46 = vpop.f32.mrf.mxu1 }
 0x353   : > { %v1770_v34 = vadd.f32 %v3752_v7, %v3718_v30  ;;  %v1516_v27 = vadd.f32 %v1515_v46, %v1444_v33  ;;  %v315_v33 = vld [vmem:[%s3895_s5] sm:$0xff] }
 0x354   : > { %v1658_v32 = vpop.f32.mrf.mxu3 }
 0x355   : > { %v1659_v25 = vadd.f32 %v1658_v32, %v1582_v57  ;;  %1771 = vadd.xlane.f32.xlu2 %v1770_v34  ;;  %v1588_v16 = vadd.f32 %v1587_v41, %v1516_v27  ;;  %v314_v57 = vld [vmem:[%s3894_s4] sm:$0x3]  ;;  %v320_v41 = vld [vmem:[%s3895_s5 + $0x28] sm:$0xff] }
 0x356   : > { %v319_v27 = vld [vmem:[%s3895_s5 + $0x20] sm:$0xff] }
 0x357   : > { %v1716_v0 = vadd.f32 %v1715_v26, %v1659_v25  ;;  %v316_v25 = vld [vmem:[%s3895_s5 + $0x8] sm:$0xff] }
 0x359   : > { %v3759_v52 = vmul.f32 %v1737_v12, %v1716_v0  ;;  %v317_v12 = vld [vmem:[%s3895_s5 + $0x10] sm:$0xff]  ;;  %v318_v0 = vld [vmem:[%s3895_s5 + $0x18] sm:$0xff] }
 0x35a   : > { %v1520_v19 = vpop.f32.mrf.mxu1 }
 0x35b   : > { %v1773_v59 = vadd.f32 %v3759_v52, %v3723_v54  ;;  %v1521_v6 = vadd.f32 %v1520_v19, %v1448_v23 }
 0x35c   : > { %v1662_v42 = vpop.f32.mrf.mxu3 }
 0x35d   : > { %v1663_v51 = vadd.f32 %v1662_v42, %v1588_v16  ;;  %1774 = vadd.xlane.f32.xlu0 %v1773_v59  ;;  %v1594_v28 = vadd.f32 %v1593_v9, %v1521_v6  ;;  %v322_v16 = vld [vmem:[%s3895_s5 + $0x38] sm:$0xff] }
 0x35f   : > { %v1720_v24 = vadd.f32 %v1719_v49, %v1663_v51  ;;  %v321_v49 = vld [vmem:[%s3895_s5 + $0x30] sm:$0xff] }
 0x361   : > { %v3766_v55 = vmul.f32 %v1739_v62, %v1720_v24 }
 0x363   : > { %v1776_v47 = vadd.f32 %v3766_v55, %v3728_v39 }
 0x364   : > { %v1666_v10 = vpop.f32.mrf.mxu3 }
 0x365   : > { %v1667_v17 = vadd.f32 %v1666_v10, %v1594_v28  ;;  %1777 = vadd.xlane.f32.xlu2 %v1776_v47 }
 0x367   : > { %v1724_v63 = vadd.f32 %v1723_v56, %v1667_v17 }
 0x369   : > { %v3771_v8 = vmul.f32 %v1741_v53, %v1724_v63 }
 0x36b   : > { %v1779_v44 = vadd.f32 %v3771_v8, %v3733_v48 }
 0x36d   : > { %1780 = vadd.xlane.f32.xlu1 %v1779_v44  ;;  %1765 = vadd.xlane.f32.xlu2 %v1764_v37 }
 0x375   : > { %1768 = vadd.xlane.f32.xlu1 %v1767_v1  ;;  %1759 = vadd.xlane.f32.xlu2 %v1758_v29 }
 0x37d   : > { %1762 = vadd.xlane.f32.xlu1 %v1761_v15 }
 0x3c8   : > { %v1772_v2 = vpop.xlane.xlu2 %1771 }
 0x3c9   : > { %v1786_v18 = vmul.f32 0.00390625, %v1772_v2 }
 0x3d0   : > { %v1775_v3 = vpop.xlane.xlu0 %1774 }
 0x3d1   : > { %v1787_v11 = vmul.f32 0.00390625, %v1775_v3 }
 0x3d8   : > { %v1778_v31 = vpop.xlane.xlu2 %1777 }
 0x3d9   : > { %v1788_v21 = vmul.f32 0.00390625, %v1778_v31 }
 0x3e0   : > { %v1781_v35 = vpop.xlane.xlu1 %1780  ;;  %v1766_v40 = vpop.xlane.xlu2 %1765 }
 0x3e1   : > { %v1789_v58 = vmul.f32 0.00390625, %v1781_v35  ;;  %v1784_v50 = vmul.f32 0.00390625, %v1766_v40 }
 0x3e3   : > { %1801 = vmatpush.msra.mxu1 %v1789_v58 }
 0x3e5   : > { %1802 = vmatpush.msra.mxu1 %v1788_v21 }
 0x3e7   : > { %1803 = vmatpush.msra.mxu1 %v1787_v11 }
 0x3e8   : > { %v1769_v14 = vpop.xlane.xlu1 %1768  ;;  %v1760_v4 = vpop.xlane.xlu2 %1759 }
 0x3e9   : > { %v1785_v38 = vmul.f32 0.00390625, %v1769_v14  ;;  %1804 = vmatpush.msra.mxu1 %v1786_v18  ;;  %v1782_v46 = vmul.f32 0.00390625, %v1760_v4 }
 0x3eb   : > { %1805 = vmatpush.msra.mxu1 %v1785_v38 }
 0x3ed   : > { %1806 = vmatpush.msra.mxu1 %v1784_v50 }
 0x3f0   : > { %v1763_v5 = vpop.xlane.xlu1 %1762 }
 0x3f1   : > { %v1783_v26 = vmul.f32 0.00390625, %v1763_v5 }
 0x3f3   : > { %1807 = vmatpush.msra.mxu1 %v1783_v26 }
 0x3f5   : > { %1808 = vmatpush.msra.mxu1 %v1782_v46 }
 0x3f6   : > { %2307 = vmatmul.msk.f32.vlgmr.msra.gmra.mxu1 %vm461_vm1, %v314_v57 }
 0x473   : > { %v1810_v34 = vpop.f32.mrf.mxu1 }
 0x474   : > { %v1813_v32 = vmax.f32 %v1810_v34, 0.0 }
 0x476   : > { %2308 = vmatpush.msk.msrb.mxu2 %vm1839_vm11, %v1813_v32 }
 0x477   : > { %2309 = vmatmul.msk.f32.vlgmr.msrb.gmra.mxu2 %vm1814_vm7, %v315_v33 }
 0x47f   : > { %2310 = vmatmul.msk.f32.gmra.mxu2 %vm1814_vm7, %v316_v25 }
 0x487   : > { %2311 = vmatmul.msk.f32.gmra.mxu2 %vm1814_vm7, %v317_v12 }
 0x48f   : > { %2312 = vmatmul.msk.f32.gmra.mxu2 %vm1814_vm7, %v318_v0 }
 0x497   : > { %2313 = vmatmul.msk.f32.gmra.mxu2 %vm1814_vm7, %v319_v27 }
 0x49f   : > { %2314 = vmatmul.msk.f32.gmra.mxu2 %vm1814_vm7, %v320_v41 }
 0x4a7   : > { %2315 = vmatmul.msk.f32.gmra.mxu2 %vm1814_vm7, %v321_v49 }
 0x4af   : > { %2316 = vmatmul.msk.f32.gmra.mxu2 %vm1814_vm7, %v322_v16 }
 0x4fa   : > { %v1860_v59 = vpop.f32.mrf.mxu2 }
 0x4fb   : > { %v2317_v42 = vmul.f32 -1.442695, %v1860_v59 }
 0x4fd   : > { %2455 = vpow2.f32 %v2317_v42 }
 0x502   : > { %v1863_v19 = vpop.f32.mrf.mxu2 }
 0x503   : > { %v2456_v23 = vpop.eup %2455  ;;  %v2318_v51 = vmul.f32 -1.442695, %v1863_v19 }
 0x504   : > { %v1908_v62 = vadd.f32 1.0, %v2456_v23 }
 0x505   : > { %2457 = vpow2.f32 %v2318_v51 }
 0x506   : > { %2459 = vrcp.f32 %v1908_v62  ;;  %v1927_v56 = vand.u32 2147483648, %v1908_v62  ;;  %v1925_v63 = vand.u32 2147483647, %v1908_v62  ;;  %vm1921_vm12 = vweird.f32 %v1908_v62 }
 0x508   : > { %v1928_v31 = vor.u32 1.1754944e-38, %v1927_v56  ;;  %vm1926_vm8 = vcmp.eq.f32.partialorder %v1925_v63, 8.507059e+37 }
 0x50a   : > { %v1866_v24 = vpop.f32.mrf.mxu2 }
 0x50b   : > { %v2458_v6 = vpop.eup %2457  ;;  %v2319_v9 = vmul.f32 -1.442695, %v1866_v24 }
 0x50c   : > { %v2460_v28 = vpop.eup %2459  ;;  %v1909_v47 = vadd.f32 1.0, %v2458_v6 }
 0x50d   : > { %2461 = vpow2.f32 %v2319_v9  ;;  %v1917_v10 = vmul.f32 %v2460_v28, %v1908_v62  ;;  %vm1922_vm1 = vweird.f32 %v2460_v28 }
 0x50e   : > { %2463 = vrcp.f32 %v1909_v47  ;;  %vm1923_vm14 = vmor %vm1921_vm12, %vm1922_vm1  ;;  %v1942_v11 = vand.u32 2147483648, %v1909_v47  ;;  %v1940_v18 = vand.u32 2147483647, %v1909_v47  ;;  %vm1936_vm4 = vweird.f32 %v1909_v47 }
 0x50f   : > { %v1918_v17 = vsub.f32 1.0, %v1917_v10 }
 0x510   : > { %v1943_v46 = vor.u32 1.1754944e-38, %v1942_v11  ;;  %vm1941_vm9 = vcmp.eq.f32.partialorder %v1940_v18, 8.507059e+37 }
 0x511   : > { %v1919_v53 = vmul.f32 %v2460_v28, %v1918_v17 }
 0x512   : > { %v1869_v44 = vpop.f32.mrf.mxu2 }
 0x513   : > { %v2462_v37 = vpop.eup %2461  ;;  %v2320_v1 = vmul.f32 -1.442695, %v1869_v44  ;;  %v1920_v29 = vadd.f32 %v2460_v28, %v1919_v53 }
 0x514   : > { %v2464_v15 = vpop.eup %2463  ;;  %v1910_v2 = vadd.f32 1.0, %v2462_v37 }
 0x515   : > { %2465 = vpow2.f32 %v2320_v1  ;;  %v1924_v35 = vsel %vm1923_vm14, %v2460_v28, %v1920_v29  ;;  %v1932_v58 = vmul.f32 %v2464_v15, %v1909_v47  ;;  %vm1937_vm3 = vweird.f32 %v2464_v15 }
 0x516   : > { %2467 = vrcp.f32 %v1910_v2  ;;  %v1929_v3 = vsel %vm1926_vm8, %v1928_v31, %v1924_v35  ;;  %vm1938_vm6 = vmor %vm1936_vm4, %vm1937_vm3  ;;  %v1957_v25 = vand.u32 2147483648, %v1910_v2  ;;  %v1955_v0 = vand.u32 2147483647, %v1910_v2 }
 0x517   : > { %2038 = vperm.xlu0 %2419, %v1929_v3   ;;  %v1933_v21 = vsub.f32 1.0, %v1932_v58  ;;  %vm1951_vm10 = vweird.f32 %v1910_v2 }
 0x518   : > { %v1958_v19 = vor.u32 1.1754944e-38, %v1957_v25  ;;  %vm1956_vm13 = vcmp.eq.f32.partialorder %v1955_v0, 8.507059e+37 }
 0x519   : > { %v1934_v40 = vmul.f32 %v2464_v15, %v1933_v21 }
 0x51a   : > { %v1872_v14 = vpop.f32.mrf.mxu2 }
 0x51b   : > { %v2466_v38 = vpop.eup %2465  ;;  %v2321_v50 = vmul.f32 -1.442695, %v1872_v14  ;;  %v1935_v4 = vadd.f32 %v2464_v15, %v1934_v40 }
 0x51c   : > { %v2468_v5 = vpop.eup %2467  ;;  %v1911_v26 = vadd.f32 1.0, %v2466_v38 }
 0x51d   : > { %2469 = vpow2.f32 %v2321_v50  ;;  %v1939_v57 = vsel %vm1938_vm6, %v2464_v15, %v1935_v4  ;;  %v1947_v34 = vmul.f32 %v2468_v5, %v1910_v2  ;;  %vm1952_vm2 = vweird.f32 %v2468_v5 }
 0x51e   : > { %2471 = vrcp.f32 %v1911_v26  ;;  %v1944_v32 = vsel %vm1941_vm9, %v1943_v46, %v1939_v57  ;;  %vm1953_vm5 = vmor %vm1951_vm10, %vm1952_vm2  ;;  %v1972_v6 = vand.u32 2147483648, %v1911_v26  ;;  %v1970_v28 = vand.u32 2147483647, %v1911_v26 }
 0x51f   : > { %2043 = vperm.xlu1 %2416, %v1944_v32   ;;  %v1948_v33 = vsub.f32 1.0, %v1947_v34  ;;  %vm1966_vm0 = vweird.f32 %v1911_v26 }
 0x520   : > { %v1973_v44 = vor.u32 1.1754944e-38, %v1972_v6  ;;  %vm1971_vm7 = vcmp.eq.f32.partialorder %v1970_v28, 8.507059e+37 }
 0x521   : > { %v1949_v12 = vmul.f32 %v2468_v5, %v1948_v33 }
 0x522   : > { %v1875_v27 = vpop.f32.mrf.mxu2 }
 0x523   : > { %v2470_v41 = vpop.eup %2469  ;;  %v2322_v49 = vmul.f32 -1.442695, %v1875_v27  ;;  %v1950_v16 = vadd.f32 %v2468_v5, %v1949_v12 }
 0x524   : > { %v2472_v59 = vpop.eup %2471  ;;  %v1912_v42 = vadd.f32 1.0, %v2470_v41 }
 0x525   : > { %2473 = vpow2.f32 %v2322_v49  ;;  %v1954_v23 = vsel %vm1953_vm5, %v2468_v5, %v1950_v16  ;;  %v1962_v51 = vmul.f32 %v2472_v59, %v1911_v26  ;;  %vm1967_vm15 = vweird.f32 %v2472_v59 }
 0x526   : > { %2475 = vrcp.f32 %v1912_v42  ;;  %v1959_v62 = vsel %vm1956_vm13, %v1958_v19, %v1954_v23  ;;  %vm1968_vm11 = vmor %vm1966_vm0, %vm1967_vm15  ;;  %v1987_v2 = vand.u32 2147483648, %v1912_v42  ;;  %v1985_v35 = vand.u32 2147483647, %v1912_v42 }
 0x527   : > { %2048 = vperm.xlu2 %2420, %v1959_v62   ;;  %v1963_v24 = vsub.f32 1.0, %v1962_v51  ;;  %vm1981_vm12 = vweird.f32 %v1912_v42 }
 0x528   : > { %v1988_v14 = vor.u32 1.1754944e-38, %v1987_v2  ;;  %vm1986_vm8 = vcmp.eq.f32.partialorder %v1985_v35, 8.507059e+37 }
 0x529   : > { %v1964_v9 = vmul.f32 %v2472_v59, %v1963_v24 }
 0x52a   : > { %v1878_v47 = vpop.f32.mrf.mxu2 }
 0x52b   : > { %v2474_v10 = vpop.eup %2473  ;;  %v2323_v17 = vmul.f32 -1.442695, %v1878_v47  ;;  %v1965_v56 = vadd.f32 %v2472_v59, %v1964_v9 }
 0x52c   : > { %v2476_v53 = vpop.eup %2475  ;;  %v1913_v63 = vadd.f32 1.0, %v2474_v10 }
 0x52d   : > { %2477 = vpow2.f32 %v2323_v17  ;;  %v1969_v37 = vsel %vm1968_vm11, %v2472_v59, %v1965_v56  ;;  %v1977_v1 = vmul.f32 %v2476_v53, %v1912_v42  ;;  %vm1982_vm1 = vweird.f32 %v2476_v53 }
 0x52e   : > { %2479 = vrcp.f32 %v1913_v63  ;;  %v1974_v29 = vsel %vm1971_vm7, %v1973_v44, %v1969_v37  ;;  %vm1983_vm14 = vmor %vm1981_vm12, %vm1982_vm1  ;;  %v2002_v26 = vand.u32 2147483648, %v1913_v63  ;;  %v2000_v57 = vand.u32 2147483647, %v1913_v63 }
 0x52f   : > { %2053 = vperm.xlu1 %2416, %v1974_v29   ;;  %v1978_v15 = vsub.f32 1.0, %v1977_v1  ;;  %vm1996_vm4 = vweird.f32 %v1913_v63 }
 0x530   : > { %v2003_v12 = vor.u32 1.1754944e-38, %v2002_v26  ;;  %vm2001_vm9 = vcmp.eq.f32.partialorder %v2000_v57, 8.507059e+37 }
 0x531   : > { %v1979_v31 = vmul.f32 %v2476_v53, %v1978_v15 }
 0x532   : > { %v1881_v58 = vpop.f32.mrf.mxu2 }
 0x533   : > { %v2478_v3 = vpop.eup %2477  ;;  %v2324_v21 = vmul.f32 -1.442695, %v1881_v58  ;;  %v1980_v11 = vadd.f32 %v2476_v53, %v1979_v31 }
 0x534   : > { %v2480_v40 = vpop.eup %2479  ;;  %v1914_v18 = vadd.f32 1.0, %v2478_v3 }
 0x535   : > { %2481 = vpow2.f32 %v2324_v21  ;;  %v1984_v38 = vsel %vm1983_vm14, %v2476_v53, %v1980_v11  ;;  %v1992_v50 = vmul.f32 %v2480_v40, %v1913_v63  ;;  %vm1997_vm3 = vweird.f32 %v2480_v40 }
 0x536   : > { %2483 = vrcp.f32 %v1914_v18  ;;  %v1989_v4 = vsel %vm1986_vm8, %v1988_v14, %v1984_v38  ;;  %vm1998_vm6 = vmor %vm1996_vm4, %vm1997_vm3  ;;  %v2017_v16 = vand.u32 2147483648, %v1914_v18  ;;  %v2015_v42 = vand.u32 2147483647, %v1914_v18 }
 0x537   : > { %2058 = vperm.xlu2 %2420, %v1989_v4   ;;  %v1993_v5 = vsub.f32 1.0, %v1992_v50  ;;  %vm2011_vm10 = vweird.f32 %v1914_v18 }
 0x538   : > { %v2018_v51 = vor.u32 1.1754944e-38, %v2017_v16  ;;  %vm2016_vm13 = vcmp.eq.f32.partialorder %v2015_v42, 8.507059e+37 }
 0x539   : > { %v1994_v46 = vmul.f32 %v2480_v40, %v1993_v5 }
 0x53b   : > { %v2482_v34 = vpop.eup %2481  ;;  %v1995_v32 = vadd.f32 %v2480_v40, %v1994_v46 }
 0x53c   : > { %v2484_v33 = vpop.eup %2483  ;;  %v1915_v25 = vadd.f32 1.0, %v2482_v34 }
 0x53d   : > { %v1999_v0 = vsel %vm1998_vm6, %v2480_v40, %v1995_v32  ;;  %v2007_v27 = vmul.f32 %v2484_v33, %v1914_v18  ;;  %vm2012_vm2 = vweird.f32 %v2484_v33 }
 0x53e   : > { %2485 = vrcp.f32 %v1915_v25  ;;  %v2004_v41 = vsel %vm2001_vm9, %v2003_v12, %v1999_v0  ;;  %vm2013_vm5 = vmor %vm2011_vm10, %vm2012_vm2  ;;  %v2032_v28 = vand.u32 2147483648, %v1915_v25  ;;  %v2030_v10 = vand.u32 2147483647, %v1915_v25 }
 0x53f   : > { %2063 = vperm.xlu1 %2416, %v2004_v41   ;;  %v2008_v49 = vsub.f32 1.0, %v2007_v27  ;;  %vm2026_vm0 = vweird.f32 %v1915_v25 }
 0x540   : > { %v2033_v56 = vor.u32 1.1754944e-38, %v2032_v28  ;;  %vm2031_vm7 = vcmp.eq.f32.partialorder %v2030_v10, 8.507059e+37 }
 0x541   : > { %v2009_v59 = vmul.f32 %v2484_v33, %v2008_v49 }
 0x543   : > { %v2010_v19 = vadd.f32 %v2484_v33, %v2009_v59 }
 0x544   : > { %v2486_v23 = vpop.eup %2485 }
 0x545   : > { %v2014_v62 = vsel %vm2013_vm5, %v2484_v33, %v2010_v19  ;;  %v2022_v24 = vmul.f32 %v2486_v23, %v1915_v25  ;;  %vm2027_vm15 = vweird.f32 %v2486_v23 }
 0x546   : > { %v2019_v6 = vsel %vm2016_vm13, %v2018_v51, %v2014_v62  ;;  %vm2028_vm11 = vmor %vm2026_vm0, %vm2027_vm15 }
 0x547   : > { %2068 = vperm.xlu2 %2420, %v2019_v6   ;;  %v2023_v9 = vsub.f32 1.0, %v2022_v24 }
 0x549   : > { %v2024_v47 = vmul.f32 %v2486_v23, %v2023_v9 }
 0x54b   : > { %v2025_v17 = vadd.f32 %v2486_v23, %v2024_v47 }
 0x54d   : > { %v2029_v53 = vsel %vm2028_vm11, %v2486_v23, %v2025_v17 }
 0x54e   : > { %v2034_v63 = vsel %vm2031_vm7, %v2033_v56, %v2029_v53 }
 0x54f   : > { %2073 = vperm.xlu0 %2419, %v2034_v63  }
 0x581   : > { %v2049_v44 = vpop.permute.xlu2 %2048 }
 0x582   : > { %v2080_v37 = vmul.f32 %v2049_v44, %v3710_v36  ;;  %v2081_v1 = vmul.f32 %v2049_v44, %v3744_v43 }
 0x584   : > { %2096 = vst [vmem:[%s3824_s29 + $0x20] sm:$0xff] %v2080_v37 }
 0x585   : > { %2097 = vst [vmem:[%s3824_s29 + $0x28] sm:$0xff] %v2081_v1 }
 0x589   : > { %v2039_v29 = vpop.permute.xlu0 %2038 }
 0x58a   : > { %v2076_v15 = vmul.f32 %v2039_v29, %v3702_v61  ;;  %v2077_v2 = vmul.f32 %v2039_v29, %v3738_v20 }
 0x58c   : > { %2092 = vst [vmem:[%s3824_s29] sm:$0xff] %v2076_v15 }
 0x58d   : > { %2093 = vst [vmem:[%s3824_s29 + $0x8] sm:$0xff] %v2077_v2 }
 0x591   : > { %v2044_v36 = vpop.permute.xlu1 %2043  ;;  %v2059_v43 = vpop.permute.xlu2 %2058 }
 0x592   : > { %v2078_v31 = vmul.f32 %v2044_v36, %v3705_v60  ;;  %v2079_v35 = vmul.f32 %v2044_v36, %v3741_v13  ;;  %v2084_v58 = vmul.f32 %v2059_v43, %v3718_v30  ;;  %v2085_v3 = vmul.f32 %v2059_v43, %v3752_v7 }
 0x594   : > { %2094 = vst [vmem:[%s3824_s29 + $0x10] sm:$0xff] %v2078_v31 }
 0x595   : > { %2095 = vst [vmem:[%s3824_s29 + $0x18] sm:$0xff] %v2079_v35 }
 0x596   : > { %2100 = vst [vmem:[%s3824_s29 + $0x40] sm:$0xff] %v2084_v58 }
 0x597   : > { %2101 = vst [vmem:[%s3824_s29 + $0x48] sm:$0xff] %v2085_v3 }
 0x5a1   : > { %v2054_v61 = vpop.permute.xlu1 %2053  ;;  %v2069_v20 = vpop.permute.xlu2 %2068 }
 0x5a2   : > { %v2082_v60 = vmul.f32 %v2054_v61, %v3713_v45  ;;  %v2083_v21 = vmul.f32 %v2054_v61, %v3748_v22  ;;  %v2088_v13 = vmul.f32 %v2069_v20, %v3728_v39  ;;  %v2089_v30 = vmul.f32 %v2069_v20, %v3766_v55 }
 0x5a4   : > { %2098 = vst [vmem:[%s3824_s29 + $0x30] sm:$0xff] %v2082_v60 }
 0x5a5   : > { %2099 = vst [vmem:[%s3824_s29 + $0x38] sm:$0xff] %v2083_v21 }
 0x5a6   : > { %2104 = vst [vmem:[%s3824_s29 + $0x60] sm:$0xff] %v2088_v13 }
 0x5a7   : > { %2105 = vst [vmem:[%s3824_s29 + $0x68] sm:$0xff] %v2089_v30 }
 0x5b1   : > { %v2064_v7 = vpop.permute.xlu1 %2063 }
 0x5b2   : > { %v2086_v11 = vmul.f32 %v2064_v7, %v3723_v54  ;;  %v2087_v40 = vmul.f32 %v2064_v7, %v3759_v52 }
 0x5b4   : > { %2102 = vst [vmem:[%s3824_s29 + $0x50] sm:$0xff] %v2086_v11 }
 0x5b5   : > { %2103 = vst [vmem:[%s3824_s29 + $0x58] sm:$0xff] %v2087_v40 }
 0x5c1   : > { %v2074_v45 = vpop.permute.xlu0 %2073 }
 0x5c2   : > { %v2090_v39 = vmul.f32 %v2074_v45, %v3733_v48  ;;  %v2091_v22 = vmul.f32 %v2074_v45, %v3771_v8 }
 0x5c4   : > { %2106 = vst [vmem:[%s3824_s29 + $0x70] sm:$0xff] %v2090_v39 }
 0x5c5   : > { %2107 = vst [vmem:[%s3824_s29 + $0x78] sm:$0xff] %v2091_v22 }
 0x5c6   : > { %2514 = shalt.err (!%p2511_p3)
}
 0x5c7   : > { %s2556_s22 = smov 256   ;;  %s2557_s29 = smov 16  }
 0x5c8   : > { %2361 = dma.vmem_to_hbm [thread:$0]  (%p2636_p5), %s2122_s16, 2048, %s2124_s17, %s2109_s18, %s2556_s22, %s2556_s22, %s2557_s29  }
 0x5c9 PF: > { %p2367_p4 = scmp.ge.s32.totalorder %s2549_s27, 2  ;;  %s2138_s9 = sand.u32 1, %s2537_s24  }
 0x5ca   : > { %s2139_s14 = scalar_lea.sflag [#allocation3], %s2138_s9 }
 0x5cb   : > { %p2364_p7 = pnand %p2367_p4, %p2640_p6 }
 0x5cd   : > { %p2365_p8 = pneg %p2364_p7 }
 0x5cf   : > { %2532 = dma.done.wait (%p2365_p8), %s2139_s14, 2048  }
 0x5d0   : > { %2534 = vsyncadd (%p2365_p8), %s2139_s14, 4294965248  ;;  %p17_p9 = scmp.ge.s32.totalorder %s2623_s30, 4   ;;  %s3955_s24 = smov %s2541_s25 }
 0x5d1   : > { %s3956_s25 = smov %s2545_s26  ;;  %s3957_s26 = smov %s2634_s10 }
 0x5d2   : > { %s3958_s27 = smov %s2623_s30  ;;  %19 = sbr.rel (!%p17_p9) target bundleno = 3 (0x3), region = 86 }
 0x5d7   :  { %2145 = vsyncpa [#allocation3], 1 }
 0x5d8   :  { %2147 = vsyncpa [#allocation3 + $0x1], 1 }

</bundles_post_ra>
